<compile_context>
chip_gen: v7x
topology: tpu7x:2x2x1
jax: 0.10.0
libtpu: 0.0.40
codegen_flags: <defaults>
</compile_context>

<pallas_src>
import functools

import jax
import jax.numpy as jnp
from jax import lax
from jax.experimental import pallas as pl
from jax.experimental.pallas import tpu as pltpu


def _round_up(x, m):
    return (x + m - 1) // m * m


# ----------------------------- Pallas kernels -----------------------------

def _matmul_bn_relu_kernel(x_ref, w_ref, scale_ref, bias_ref, o_ref, *, relu):
    """Single-pass matmul (full K) with fused per-column scale/bias (+ ReLU)."""
    y = jnp.dot(x_ref[...], w_ref[...], preferred_element_type=jnp.float32)
    y = y * scale_ref[...] + bias_ref[...]
    if relu:
        y = jnp.maximum(y, 0.0)
    o_ref[...] = y.astype(o_ref.dtype)


def _maxpool_kernel(x_ref, o_ref):
    """Max over the (major) window axis: (9, OH, OW*C) -> (OH, OW*C)."""
    o_ref[...] = jnp.max(x_ref[...], axis=0)


# --------------------------- conv layer (im2col) ---------------------------

def _pick_m_tile(M):
    """Right-size the M tile: single tile for small M, 256-row tiles otherwise."""
    if M <= 1024:
        mp = _round_up(M, 16)          # bf16 sublane packing -> multiples of 16
        return mp, mp
    tm = 256
    return tm, _round_up(M, tm)


def conv_bn_relu(x, w, b, bn, stride, groups, relu):
    """Conv2d (VALID) + optional folded eval-mode BN + optional ReLU.

    x: NHWC (any float dtype).  w: PyTorch layout (Cout, Cin/groups, kh, kw).
    b: (Cout,).  bn: (gamma, beta, running_mean, running_var) or None.
    All `groups` matmuls run inside ONE pallas_call (leading grid axis = group).
    """
    Cout, Cin_g, kh, kw = w.shape
    Cout_g = Cout // groups

    if bn is None:
        scale = jnp.ones((Cout,), jnp.float32)
        bias = b.astype(jnp.float32)
    else:
        gamma, beta, mean, var = bn
        s = gamma * lax.rsqrt(var + 1e-5)
        scale = s
        bias = beta + (b - mean) * s

    xb = x.astype(jnp.bfloat16)
    N, H, W_, _ = xb.shape
    OH = (H - kh) // stride + 1
    OW = (W_ - kw) // stride + 1
    M = N * OH * OW
    Kg = kh * kw * Cin_g
    Kp = _round_up(Kg, 128)            # full-K single pass (K <= 1152 everywhere)
    Np = _round_up(Cout_g, 128)        # full-N single tile, lane-dense output
    tm, Mp = _pick_m_tile(M)

    # im2col per group -> (G, M, Kg) with (i, j, c) window-major ordering.
    patches = []
    for g in range(groups):
        xs = xb[..., g * Cin_g:(g + 1) * Cin_g]
        cols = []
        for i in range(kh):
            for j in range(kw):
                cols.append(xs[:, i:i + stride * OH:stride,
                               j:j + stride * OW:stride, :])
        pg = jnp.stack(cols, axis=3).reshape(M, Kg)
        patches.append(pg)
    xg = jnp.stack(patches, axis=0)                               # (G, M, Kg)
    xg = jnp.pad(xg, ((0, 0), (0, Mp - M), (0, Kp - Kg)))

    # Weights: (Cout, Cin_g, kh, kw) -> (G, kh*kw*Cin_g, Cout_g), bf16, padded.
    wg = w.astype(jnp.bfloat16).reshape(groups, Cout_g, Cin_g, kh, kw)
    wg = jnp.transpose(wg, (0, 3, 4, 2, 1)).reshape(groups, Kg, Cout_g)
    wg = jnp.pad(wg, ((0, 0), (0, Kp - Kg), (0, Np - Cout_g)))

    sg = jnp.pad(scale.astype(jnp.float32).reshape(groups, 1, Cout_g),
                 ((0, 0), (0, 0), (0, Np - Cout_g)))
    bg = jnp.pad(bias.astype(jnp.float32).reshape(groups, 1, Cout_g),
                 ((0, 0), (0, 0), (0, Np - Cout_g)))

    kernel = functools.partial(_matmul_bn_relu_kernel, relu=relu)
    out = pl.pallas_call(
        kernel,
        out_shape=jax.ShapeDtypeStruct((groups, Mp, Np), jnp.float32),
        grid_spec=pltpu.PrefetchScalarGridSpec(
            num_scalar_prefetch=0,
            grid=(groups, Mp // tm),
            in_specs=[
                pl.BlockSpec((None, tm, Kp), lambda g, i: (g, i, 0)),
                pl.BlockSpec((None, Kp, Np), lambda g, i: (g, 0, 0)),
                pl.BlockSpec((None, 1, Np), lambda g, i: (g, 0, 0)),
                pl.BlockSpec((None, 1, Np), lambda g, i: (g, 0, 0)),
            ],
            out_specs=pl.BlockSpec((None, tm, Np), lambda g, i: (g, i, 0)),
        ),
        compiler_params=pltpu.CompilerParams(
            dimension_semantics=("parallel", "parallel"),
            vmem_limit_bytes=32 * 1024 * 1024),   # stay inside v7x scoped VMEM
    )(xg, wg, sg, bg)

    y = out[:, :M, :Cout_g]                                       # (G, M, Cout_g)
    y = jnp.transpose(y, (1, 0, 2)).reshape(M, Cout)               # group-major C
    return y.reshape(N, OH, OW, Cout)


# -------------------------------- max pool --------------------------------

def maxpool_3x3_s2(x):
    """MaxPool2d(kernel=3, stride=2), VALID padding. x is NHWC."""
    N, H, W_, C = x.shape
    kh = kw = 3
    stride = 2
    OH = (H - kh) // stride + 1
    OW = (W_ - kw) // stride + 1
    L = OW * C

    xb = x.astype(jnp.bfloat16)
    wins = []
    for i in range(kh):
        for j in range(kw):
            wins.append(xb[:, i:i + stride * OH:stride,
                           j:j + stride * OW:stride, :].reshape(N, OH, L))
    # Window axis on a MAJOR dim (not sublane); last dims (OH, OW*C) lane-dense.
    stacked = jnp.stack(wins, axis=1)                              # (N, 9, OH, L)

    out = pl.pallas_call(
        _maxpool_kernel,
        out_shape=jax.ShapeDtypeStruct((N, OH, L), jnp.bfloat16),
        grid=(N,),
        in_specs=[pl.BlockSpec((None, kh * kw, OH, L), lambda n: (n, 0, 0, 0))],
        out_specs=pl.BlockSpec((None, OH, L), lambda n: (n, 0, 0)),
        compiler_params=pltpu.CompilerParams(
            dimension_semantics=("parallel",)),
    )(stacked)
    return out.reshape(N, OH, OW, C)


# ------------------------------ full forward ------------------------------

def alexnet_like_forward(x_nchw, params):
    x = jnp.transpose(x_nchw, (0, 2, 3, 1))            # NCHW -> NHWC
    x = conv_bn_relu(x, params['w1'], params['b1'], params['bn1'], 2, 1, True)
    x = maxpool_3x3_s2(x)
    x = conv_bn_relu(x, params['w2'], params['b2'], params['bn2'], 1, 2, True)
    x = maxpool_3x3_s2(x)
    x = conv_bn_relu(x, params['w3'], params['b3'], params['bn3'], 1, 1, True)
    x = conv_bn_relu(x, params['w4'], params['b4'], params['bn4'], 1, 2, True)
    x = conv_bn_relu(x, params['w5'], params['b5'], None, 1, 2, False)
    return jnp.transpose(x, (0, 3, 1, 2))              # NHWC -> NCHW


def init_params(key):
    # (name, Cout, Cin/groups, k, has_bn)
    defs = [
        ('1', 48, 3, 11, True),
        ('2', 128, 24, 5, True),
        ('3', 192, 128, 3, True),
        ('4', 192, 96, 3, True),
        ('5', 128, 96, 3, False),
    ]
    params = {}
    for name, cout, cin_g, k, has_bn in defs:
        key, kw_, kb, kg, kbe, km, kv = jax.random.split(key, 7)
        params['w' + name] = 0.05 * jax.random.normal(kw_, (cout, cin_g, k, k), jnp.float32)
        params['b' + name] = 0.05 * jax.random.normal(kb, (cout,), jnp.float32)
        if has_bn:
            gamma = 1.0 + 0.1 * jax.random.normal(kg, (cout,), jnp.float32)
            beta = 0.1 * jax.random.normal(kbe, (cout,), jnp.float32)
            mean = 0.1 * jax.random.normal(km, (cout,), jnp.float32)
            var = 0.9 + 0.2 * jax.random.uniform(kv, (cout,), jnp.float32)
            params['bn' + name] = (gamma, beta, mean, var)
        else:
            params['bn' + name] = None
    return params


# ----------------------- plain-JAX reference (check) -----------------------
# The reference mirrors the kernel's compute precision: bf16 conv operands with
# f32 accumulation (same as the MXU path), f32 BN/ReLU epilogue.

def _ref_conv(x, w, b, stride, groups):
    rhs = jnp.transpose(w, (2, 3, 1, 0)).astype(jnp.bfloat16)   # OIHW -> HWIO
    y = lax.conv_general_dilated(
        x.astype(jnp.bfloat16), rhs, (stride, stride), 'VALID',
        dimension_numbers=('NHWC', 'HWIO', 'NHWC'),
        feature_group_count=groups,
        preferred_element_type=jnp.float32)
    return y + b


def _ref_forward(x_nchw, params):
    def bn_relu(y, bn):
        gamma, beta, mean, var = bn
        y = (y - mean) / jnp.sqrt(var + 1e-5) * gamma + beta
        return jnp.maximum(y, 0.0)

    def pool(y):
        return lax.reduce_window(y, -jnp.inf, lax.max,
                                 (1, 3, 3, 1), (1, 2, 2, 1), 'VALID')

    x = jnp.transpose(x_nchw, (0, 2, 3, 1))
    y = pool(bn_relu(_ref_conv(x, params['w1'], params['b1'], 2, 1), params['bn1']))
    y = pool(bn_relu(_ref_conv(y, params['w2'], params['b2'], 1, 2), params['bn2']))
    y = bn_relu(_ref_conv(y, params['w3'], params['b3'], 1, 1), params['bn3'])
    y = bn_relu(_ref_conv(y, params['w4'], params['b4'], 1, 2), params['bn4'])
    y = _ref_conv(y, params['w5'], params['b5'], 1, 2)
    return jnp.transpose(y, (0, 3, 1, 2))


if __name__ == "__main__":
    key = jax.random.PRNGKey(0)
    kx, kp = jax.random.split(key)
    # Smallest-ish spatial size that survives the 5-layer reduction chain:
    # 95 -> 43 -> 21 -> 17 -> 8 -> 6 -> 4 -> 2
    x = jax.random.normal(kx, (2, 3, 95, 95), jnp.float32)   # NCHW (PyTorch convention)
    params = init_params(kp)

    out = jax.jit(alexnet_like_forward)(x, params)
    out = jax.block_until_ready(out)
    assert out.shape == (2, 128, 2, 2), out.shape

    ref = _ref_forward(x, params)
    max_err = float(jnp.max(jnp.abs(out - ref)))
    assert max_err < 1e-2, f"mismatch vs reference: {max_err}"

    print("KERNEL_OK")
</pallas_src>

<mosaic_0001>
module attributes {stable_mosaic.version = 11 : i64} {
  func.func @_matmul_bn_relu_kernel(%arg0: i32, %arg1: i32, %arg2: memref<1x256x384xbf16, #tpu.memory_space<vmem>>, %arg3: memref<1x384x128xbf16, #tpu.memory_space<vmem>>, %arg4: memref<1x1x128xf32, #tpu.memory_space<vmem>>, %arg5: memref<1x1x128xf32, #tpu.memory_space<vmem>>, %arg6: memref<1x256x128xf32, #tpu.memory_space<vmem>>) attributes {dimension_semantics = [#tpu.dimension_semantics<parallel>, #tpu.dimension_semantics<parallel>], iteration_bounds = array<i64: 1, 15>, scalar_prefetch = 0 : i64, scratch_operands = 0 : i64, tpu.core_type = #tpu.core_type<tc>, window_params = [{transform_indices = @transform_0, window_bounds = array<i64: 1, 256, 384>}, {transform_indices = @transform_1, window_bounds = array<i64: 1, 384, 128>}, {transform_indices = @transform_2, window_bounds = array<i64: 1, 1, 128>}, {transform_indices = @transform_3, window_bounds = array<i64: 1, 1, 128>}, {transform_indices = @transform_4, window_bounds = array<i64: 1, 256, 128>}]} {
    %c0 = arith.constant 0 : index
    %c0_0 = arith.constant 0 : index
    %c0_1 = arith.constant 0 : index
    %0 = vector.load %arg2[%c0, %c0_0, %c0_1] : memref<1x256x384xbf16, #tpu.memory_space<vmem>>, vector<1x256x384xbf16>
    %1 = vector.shape_cast %0 : vector<1x256x384xbf16> to vector<256x384xbf16>
    %c0_2 = arith.constant 0 : index
    %c0_3 = arith.constant 0 : index
    %c0_4 = arith.constant 0 : index
    %2 = vector.load %arg3[%c0_2, %c0_3, %c0_4] : memref<1x384x128xbf16, #tpu.memory_space<vmem>>, vector<1x384x128xbf16>
    %3 = vector.shape_cast %2 : vector<1x384x128xbf16> to vector<384x128xbf16>
    %cst = arith.constant dense<0.000000e+00> : vector<256x128xf32>
    %4 = tpu.matmul %1, %3, %cst {dimension_numbers = #tpu.dot_dimension_numbers<[1], [0], [0], [1], [0, 0, 1, 1], [], []>} : vector<256x384xbf16>, vector<384x128xbf16>, vector<256x128xf32> -> vector<256x128xf32>
    %c0_5 = arith.constant 0 : index
    %c0_6 = arith.constant 0 : index
    %c0_7 = arith.constant 0 : index
    %5 = vector.load %arg4[%c0_5, %c0_6, %c0_7] : memref<1x1x128xf32, #tpu.memory_space<vmem>>, vector<1x1x128xf32>
    %6 = vector.shape_cast %5 : vector<1x1x128xf32> to vector<1x128xf32>
    %7 = vector.broadcast %6 : vector<1x128xf32> to vector<256x128xf32>
    %8 = arith.mulf %4, %7 : vector<256x128xf32>
    %c0_8 = arith.constant 0 : index
    %c0_9 = arith.constant 0 : index
    %c0_10 = arith.constant 0 : index
    %9 = vector.load %arg5[%c0_8, %c0_9, %c0_10] : memref<1x1x128xf32, #tpu.memory_space<vmem>>, vector<1x1x128xf32>
    %10 = vector.shape_cast %9 : vector<1x1x128xf32> to vector<1x128xf32>
    %11 = vector.broadcast %10 : vector<1x128xf32> to vector<256x128xf32>
    %12 = arith.addf %8, %11 : vector<256x128xf32>
    %cst_11 = arith.constant 0.000000e+00 : f32
    %13 = vector.broadcast %cst_11 : f32 to vector<256x128xf32>
    %14 = arith.maximumf %12, %13 : vector<256x128xf32>
    %c0_12 = arith.constant 0 : index
    %c0_13 = arith.constant 0 : index
    %c0_14 = arith.constant 0 : index
    %15 = vector.load %arg6[%c0_12, %c0_13, %c0_14] : memref<1x256x128xf32, #tpu.memory_space<vmem>>, vector<1x256x128xf32>
    %16 = vector.shape_cast %15 : vector<1x256x128xf32> to vector<256x128xf32>
    %17 = vector.shape_cast %14 : vector<256x128xf32> to vector<1x256x128xf32>
    tpu.vector_store %arg6[%c0_12, %c0_13, %c0_14], %17 {strides = array<i32>} : memref<1x256x128xf32, #tpu.memory_space<vmem>>, vector<1x256x128xf32>,
    return
  }
  func.func @transform_0(%arg0: i32, %arg1: i32) -> (i32, i32, i32) {
    %c0_i32 = arith.constant 0 : i32
    %c0_i32_0 = arith.constant 0 : i32
    return %arg0, %arg1, %c0_i32 : i32, i32, i32
  }
  func.func @transform_1(%arg0: i32, %arg1: i32) -> (i32, i32, i32) {
    %c0_i32 = arith.constant 0 : i32
    %c0_i32_0 = arith.constant 0 : i32
    %c0_i32_1 = arith.constant 0 : i32
    return %arg0, %c0_i32, %c0_i32_0 : i32, i32, i32
  }
  func.func @transform_2(%arg0: i32, %arg1: i32) -> (i32, i32, i32) {
    %c0_i32 = arith.constant 0 : i32
    %c0_i32_0 = arith.constant 0 : i32
    %c0_i32_1 = arith.constant 0 : i32
    return %arg0, %c0_i32, %c0_i32_0 : i32, i32, i32
  }
  func.func @transform_3(%arg0: i32, %arg1: i32) -> (i32, i32, i32) {
    %c0_i32 = arith.constant 0 : i32
    %c0_i32_0 = arith.constant 0 : i32
    %c0_i32_1 = arith.constant 0 : i32
    return %arg0, %c0_i32, %c0_i32_0 : i32, i32, i32
  }
  func.func @transform_4(%arg0: i32, %arg1: i32) -> (i32, i32, i32) {
    %c0_i32 = arith.constant 0 : i32
    %c0_i32_0 = arith.constant 0 : i32
    return %arg0, %arg1, %c0_i32 : i32, i32, i32
  }
}

module attributes {stable_mosaic.version = 11 : i64} {
  func.func @_maxpool_kernel(%arg0: i32, %arg1: memref<1x9x21x1008xbf16, #tpu.memory_space<vmem>>, %arg2: memref<1x21x1008xbf16, #tpu.memory_space<vmem>>) attributes {dimension_semantics = [#tpu.dimension_semantics<parallel>], iteration_bounds = array<i64: 2>, scalar_prefetch = 0 : i64, scratch_operands = 0 : i64, tpu.core_type = #tpu.core_type<tc>, window_params = [{transform_indices = @transform_0, window_bounds = array<i64: 1, 9, 21, 1008>}, {transform_indices = @transform_1, window_bounds = array<i64: 1, 21, 1008>}]} {
    %c0 = arith.constant 0 : index
    %c0_0 = arith.constant 0 : index
    %c0_1 = arith.constant 0 : index
    %c0_2 = arith.constant 0 : index
    %0 = vector.load %arg1[%c0, %c0_0, %c0_1, %c0_2] : memref<1x9x21x1008xbf16, #tpu.memory_space<vmem>>, vector<1x9x21x1008xbf16>
    %1 = vector.shape_cast %0 : vector<1x9x21x1008xbf16> to vector<9x21x1008xbf16>
    %cst = arith.constant dense<0xFF80> : vector<21x1008xbf16>
    %2 = vector.multi_reduction <maximumf>, %1, %cst [0] : vector<9x21x1008xbf16> to vector<21x1008xbf16>
    %c0_3 = arith.constant 0 : index
    %c0_4 = arith.constant 0 : index
    %c0_5 = arith.constant 0 : index
    %3 = vector.load %arg2[%c0_3, %c0_4, %c0_5] : memref<1x21x1008xbf16, #tpu.memory_space<vmem>>, vector<1x21x1008xbf16>
    %4 = vector.shape_cast %3 : vector<1x21x1008xbf16> to vector<21x1008xbf16>
    %5 = vector.shape_cast %2 : vector<21x1008xbf16> to vector<1x21x1008xbf16>
    tpu.vector_store %arg2[%c0_3, %c0_4, %c0_5], %5 {strides = array<i32>} : memref<1x21x1008xbf16, #tpu.memory_space<vmem>>, vector<1x21x1008xbf16>,
    return
  }
  func.func @transform_0(%arg0: i32) -> (i32, i32, i32, i32) {
    %c0_i32 = arith.constant 0 : i32
    %c0_i32_0 = arith.constant 0 : i32
    %c0_i32_1 = arith.constant 0 : i32
    %c0_i32_2 = arith.constant 0 : i32
    return %arg0, %c0_i32, %c0_i32_0, %c0_i32_1 : i32, i32, i32, i32
  }
  func.func @transform_1(%arg0: i32) -> (i32, i32, i32) {
    %c0_i32 = arith.constant 0 : i32
    %c0_i32_0 = arith.constant 0 : i32
    %c0_i32_1 = arith.constant 0 : i32
    return %arg0, %c0_i32, %c0_i32_0 : i32, i32, i32
  }
}

module attributes {stable_mosaic.version = 11 : i64} {
  func.func @_matmul_bn_relu_kernel(%arg0: i32, %arg1: i32, %arg2: memref<1x592x640xbf16, #tpu.memory_space<vmem>>, %arg3: memref<1x640x128xbf16, #tpu.memory_space<vmem>>, %arg4: memref<1x1x128xf32, #tpu.memory_space<vmem>>, %arg5: memref<1x1x128xf32, #tpu.memory_space<vmem>>, %arg6: memref<1x592x128xf32, #tpu.memory_space<vmem>>) attributes {dimension_semantics = [#tpu.dimension_semantics<parallel>, #tpu.dimension_semantics<parallel>], iteration_bounds = array<i64: 2, 1>, scalar_prefetch = 0 : i64, scratch_operands = 0 : i64, tpu.core_type = #tpu.core_type<tc>, window_params = [{transform_indices = @transform_0, window_bounds = array<i64: 1, 592, 640>}, {transform_indices = @transform_1, window_bounds = array<i64: 1, 640, 128>}, {transform_indices = @transform_2, window_bounds = array<i64: 1, 1, 128>}, {transform_indices = @transform_3, window_bounds = array<i64: 1, 1, 128>}, {transform_indices = @transform_4, window_bounds = array<i64: 1, 592, 128>}]} {
    %c0 = arith.constant 0 : index
    %c0_0 = arith.constant 0 : index
    %c0_1 = arith.constant 0 : index
    %0 = vector.load %arg2[%c0, %c0_0, %c0_1] : memref<1x592x640xbf16, #tpu.memory_space<vmem>>, vector<1x592x640xbf16>
    %1 = vector.shape_cast %0 : vector<1x592x640xbf16> to vector<592x640xbf16>
    %c0_2 = arith.constant 0 : index
    %c0_3 = arith.constant 0 : index
    %c0_4 = arith.constant 0 : index
    %2 = vector.load %arg3[%c0_2, %c0_3, %c0_4] : memref<1x640x128xbf16, #tpu.memory_space<vmem>>, vector<1x640x128xbf16>
    %3 = vector.shape_cast %2 : vector<1x640x128xbf16> to vector<640x128xbf16>
    %cst = arith.constant dense<0.000000e+00> : vector<592x128xf32>
    %4 = tpu.matmul %1, %3, %cst {dimension_numbers = #tpu.dot_dimension_numbers<[1], [0], [0], [1], [0, 0, 1, 1], [], []>} : vector<592x640xbf16>, vector<640x128xbf16>, vector<592x128xf32> -> vector<592x128xf32>
    %c0_5 = arith.constant 0 : index
    %c0_6 = arith.constant 0 : index
    %c0_7 = arith.constant 0 : index
    %5 = vector.load %arg4[%c0_5, %c0_6, %c0_7] : memref<1x1x128xf32, #tpu.memory_space<vmem>>, vector<1x1x128xf32>
    %6 = vector.shape_cast %5 : vector<1x1x128xf32> to vector<1x128xf32>
    %7 = vector.broadcast %6 : vector<1x128xf32> to vector<592x128xf32>
    %8 = arith.mulf %4, %7 : vector<592x128xf32>
    %c0_8 = arith.constant 0 : index
    %c0_9 = arith.constant 0 : index
    %c0_10 = arith.constant 0 : index
    %9 = vector.load %arg5[%c0_8, %c0_9, %c0_10] : memref<1x1x128xf32, #tpu.memory_space<vmem>>, vector<1x1x128xf32>
    %10 = vector.shape_cast %9 : vector<1x1x128xf32> to vector<1x128xf32>
    %11 = vector.broadcast %10 : vector<1x128xf32> to vector<592x128xf32>
    %12 = arith.addf %8, %11 : vector<592x128xf32>
    %cst_11 = arith.constant 0.000000e+00 : f32
    %13 = vector.broadcast %cst_11 : f32 to vector<592x128xf32>
    %14 = arith.maximumf %12, %13 : vector<592x128xf32>
    %c0_12 = arith.constant 0 : index
    %c0_13 = arith.constant 0 : index
    %c0_14 = arith.constant 0 : index
    %15 = vector.load %arg6[%c0_12, %c0_13, %c0_14] : memref<1x592x128xf32, #tpu.memory_space<vmem>>, vector<1x592x128xf32>
    %16 = vector.shape_cast %15 : vector<1x592x128xf32> to vector<592x128xf32>
    %17 = vector.shape_cast %14 : vector<592x128xf32> to vector<1x592x128xf32>
    tpu.vector_store %arg6[%c0_12, %c0_13, %c0_14], %17 {strides = array<i32>} : memref<1x592x128xf32, #tpu.memory_space<vmem>>, vector<1x592x128xf32>,
    return
  }
  func.func @transform_0(%arg0: i32, %arg1: i32) -> (i32, i32, i32) {
    %c0_i32 = arith.constant 0 : i32
    %c0_i32_0 = arith.constant 0 : i32
    return %arg0, %arg1, %c0_i32 : i32, i32, i32
  }
  func.func @transform_1(%arg0: i32, %arg1: i32) -> (i32, i32, i32) {
    %c0_i32 = arith.constant 0 : i32
    %c0_i32_0 = arith.constant 0 : i32
    %c0_i32_1 = arith.constant 0 : i32
    return %arg0, %c0_i32, %c0_i32_0 : i32, i32, i32
  }
  func.func @transform_2(%arg0: i32, %arg1: i32) -> (i32, i32, i32) {
    %c0_i32 = arith.constant 0 : i32
    %c0_i32_0 = arith.constant 0 : i32
    %c0_i32_1 = arith.constant 0 : i32
    return %arg0, %c0_i32, %c0_i32_0 : i32, i32, i32
  }
  func.func @transform_3(%arg0: i32, %arg1: i32) -> (i32, i32, i32) {
    %c0_i32 = arith.constant 0 : i32
    %c0_i32_0 = arith.constant 0 : i32
    %c0_i32_1 = arith.constant 0 : i32
    return %arg0, %c0_i32, %c0_i32_0 : i32, i32, i32
  }
  func.func @transform_4(%arg0: i32, %arg1: i32) -> (i32, i32, i32) {
    %c0_i32 = arith.constant 0 : i32
    %c0_i32_0 = arith.constant 0 : i32
    return %arg0, %arg1, %c0_i32 : i32, i32, i32
  }
}

module attributes {stable_mosaic.version = 11 : i64} {
  func.func @_maxpool_kernel(%arg0: i32, %arg1: memref<1x9x8x1024xbf16, #tpu.memory_space<vmem>>, %arg2: memref<1x8x1024xbf16, #tpu.memory_space<vmem>>) attributes {dimension_semantics = [#tpu.dimension_semantics<parallel>], iteration_bounds = array<i64: 2>, scalar_prefetch = 0 : i64, scratch_operands = 0 : i64, tpu.core_type = #tpu.core_type<tc>, window_params = [{transform_indices = @transform_0, window_bounds = array<i64: 1, 9, 8, 1024>}, {transform_indices = @transform_1, window_bounds = array<i64: 1, 8, 1024>}]} {
    %c0 = arith.constant 0 : index
    %c0_0 = arith.constant 0 : index
    %c0_1 = arith.constant 0 : index
    %c0_2 = arith.constant 0 : index
    %0 = vector.load %arg1[%c0, %c0_0, %c0_1, %c0_2] : memref<1x9x8x1024xbf16, #tpu.memory_space<vmem>>, vector<1x9x8x1024xbf16>
    %1 = vector.shape_cast %0 : vector<1x9x8x1024xbf16> to vector<9x8x1024xbf16>
    %cst = arith.constant dense<0xFF80> : vector<8x1024xbf16>
    %2 = vector.multi_reduction <maximumf>, %1, %cst [0] : vector<9x8x1024xbf16> to vector<8x1024xbf16>
    %c0_3 = arith.constant 0 : index
    %c0_4 = arith.constant 0 : index
    %c0_5 = arith.constant 0 : index
    %3 = vector.load %arg2[%c0_3, %c0_4, %c0_5] : memref<1x8x1024xbf16, #tpu.memory_space<vmem>>, vector<1x8x1024xbf16>
    %4 = vector.shape_cast %3 : vector<1x8x1024xbf16> to vector<8x1024xbf16>
    %5 = vector.shape_cast %2 : vector<8x1024xbf16> to vector<1x8x1024xbf16>
    tpu.vector_store %arg2[%c0_3, %c0_4, %c0_5], %5 {strides = array<i32>} : memref<1x8x1024xbf16, #tpu.memory_space<vmem>>, vector<1x8x1024xbf16>,
    return
  }
  func.func @transform_0(%arg0: i32) -> (i32, i32, i32, i32) {
    %c0_i32 = arith.constant 0 : i32
    %c0_i32_0 = arith.constant 0 : i32
    %c0_i32_1 = arith.constant 0 : i32
    %c0_i32_2 = arith.constant 0 : i32
    return %arg0, %c0_i32, %c0_i32_0, %c0_i32_1 : i32, i32, i32, i32
  }
  func.func @transform_1(%arg0: i32) -> (i32, i32, i32) {
    %c0_i32 = arith.constant 0 : i32
    %c0_i32_0 = arith.constant 0 : i32
    %c0_i32_1 = arith.constant 0 : i32
    return %arg0, %c0_i32, %c0_i32_0 : i32, i32, i32
  }
}

module attributes {stable_mosaic.version = 11 : i64} {
  func.func @_matmul_bn_relu_kernel(%arg0: i32, %arg1: i32, %arg2: memref<1x80x1152xbf16, #tpu.memory_space<vmem>>, %arg3: memref<1x1152x256xbf16, #tpu.memory_space<vmem>>, %arg4: memref<1x1x256xf32, #tpu.memory_space<vmem>>, %arg5: memref<1x1x256xf32, #tpu.memory_space<vmem>>, %arg6: memref<1x80x256xf32, #tpu.memory_space<vmem>>) attributes {dimension_semantics = [#tpu.dimension_semantics<parallel>, #tpu.dimension_semantics<parallel>], iteration_bounds = array<i64: 1, 1>, scalar_prefetch = 0 : i64, scratch_operands = 0 : i64, tpu.core_type = #tpu.core_type<tc>, window_params = [{transform_indices = @transform_0, window_bounds = array<i64: 1, 80, 1152>}, {transform_indices = @transform_1, window_bounds = array<i64: 1, 1152, 256>}, {transform_indices = @transform_2, window_bounds = array<i64: 1, 1, 256>}, {transform_indices = @transform_3, window_bounds = array<i64: 1, 1, 256>}, {transform_indices = @transform_4, window_bounds = array<i64: 1, 80, 256>}]} {
    %c0 = arith.constant 0 : index
    %c0_0 = arith.constant 0 : index
    %c0_1 = arith.constant 0 : index
    %0 = vector.load %arg2[%c0, %c0_0, %c0_1] : memref<1x80x1152xbf16, #tpu.memory_space<vmem>>, vector<1x80x1152xbf16>
    %1 = vector.shape_cast %0 : vector<1x80x1152xbf16> to vector<80x1152xbf16>
    %c0_2 = arith.constant 0 : index
    %c0_3 = arith.constant 0 : index
    %c0_4 = arith.constant 0 : index
    %2 = vector.load %arg3[%c0_2, %c0_3, %c0_4] : memref<1x1152x256xbf16, #tpu.memory_space<vmem>>, vector<1x1152x256xbf16>
    %3 = vector.shape_cast %2 : vector<1x1152x256xbf16> to vector<1152x256xbf16>
    %cst = arith.constant dense<0.000000e+00> : vector<80x256xf32>
    %4 = tpu.matmul %1, %3, %cst {dimension_numbers = #tpu.dot_dimension_numbers<[1], [0], [0], [1], [0, 0, 1, 1], [], []>} : vector<80x1152xbf16>, vector<1152x256xbf16>, vector<80x256xf32> -> vector<80x256xf32>
    %c0_5 = arith.constant 0 : index
    %c0_6 = arith.constant 0 : index
    %c0_7 = arith.constant 0 : index
    %5 = vector.load %arg4[%c0_5, %c0_6, %c0_7] : memref<1x1x256xf32, #tpu.memory_space<vmem>>, vector<1x1x256xf32>
    %6 = vector.shape_cast %5 : vector<1x1x256xf32> to vector<1x256xf32>
    %7 = vector.broadcast %6 : vector<1x256xf32> to vector<80x256xf32>
    %8 = arith.mulf %4, %7 : vector<80x256xf32>
    %c0_8 = arith.constant 0 : index
    %c0_9 = arith.constant 0 : index
    %c0_10 = arith.constant 0 : index
    %9 = vector.load %arg5[%c0_8, %c0_9, %c0_10] : memref<1x1x256xf32, #tpu.memory_space<vmem>>, vector<1x1x256xf32>
    %10 = vector.shape_cast %9 : vector<1x1x256xf32> to vector<1x256xf32>
    %11 = vector.broadcast %10 : vector<1x256xf32> to vector<80x256xf32>
    %12 = arith.addf %8, %11 : vector<80x256xf32>
    %cst_11 = arith.constant 0.000000e+00 : f32
    %13 = vector.broadcast %cst_11 : f32 to vector<80x256xf32>
    %14 = arith.maximumf %12, %13 : vector<80x256xf32>
    %c0_12 = arith.constant 0 : index
    %c0_13 = arith.constant 0 : index
    %c0_14 = arith.constant 0 : index
    %15 = vector.load %arg6[%c0_12, %c0_13, %c0_14] : memref<1x80x256xf32, #tpu.memory_space<vmem>>, vector<1x80x256xf32>
    %16 = vector.shape_cast %15 : vector<1x80x256xf32> to vector<80x256xf32>
    %17 = vector.shape_cast %14 : vector<80x256xf32> to vector<1x80x256xf32>
    tpu.vector_store %arg6[%c0_12, %c0_13, %c0_14], %17 {strides = array<i32>} : memref<1x80x256xf32, #tpu.memory_space<vmem>>, vector<1x80x256xf32>,
    return
  }
  func.func @transform_0(%arg0: i32, %arg1: i32) -> (i32, i32, i32) {
    %c0_i32 = arith.constant 0 : i32
    %c0_i32_0 = arith.constant 0 : i32
    return %arg0, %arg1, %c0_i32 : i32, i32, i32
  }
  func.func @transform_1(%arg0: i32, %arg1: i32) -> (i32, i32, i32) {
    %c0_i32 = arith.constant 0 : i32
    %c0_i32_0 = arith.constant 0 : i32
    %c0_i32_1 = arith.constant 0 : i32
    return %arg0, %c0_i32, %c0_i32_0 : i32, i32, i32
  }
  func.func @transform_2(%arg0: i32, %arg1: i32) -> (i32, i32, i32) {
    %c0_i32 = arith.constant 0 : i32
    %c0_i32_0 = arith.constant 0 : i32
    %c0_i32_1 = arith.constant 0 : i32
    return %arg0, %c0_i32, %c0_i32_0 : i32, i32, i32
  }
  func.func @transform_3(%arg0: i32, %arg1: i32) -> (i32, i32, i32) {
    %c0_i32 = arith.constant 0 : i32
    %c0_i32_0 = arith.constant 0 : i32
    %c0_i32_1 = arith.constant 0 : i32
    return %arg0, %c0_i32, %c0_i32_0 : i32, i32, i32
  }
  func.func @transform_4(%arg0: i32, %arg1: i32) -> (i32, i32, i32) {
    %c0_i32 = arith.constant 0 : i32
    %c0_i32_0 = arith.constant 0 : i32
    return %arg0, %arg1, %c0_i32 : i32, i32, i32
  }
}

module attributes {stable_mosaic.version = 11 : i64} {
  func.func @_matmul_bn_relu_kernel(%arg0: i32, %arg1: i32, %arg2: memref<1x32x896xbf16, #tpu.memory_space<vmem>>, %arg3: memref<1x896x128xbf16, #tpu.memory_space<vmem>>, %arg4: memref<1x1x128xf32, #tpu.memory_space<vmem>>, %arg5: memref<1x1x128xf32, #tpu.memory_space<vmem>>, %arg6: memref<1x32x128xf32, #tpu.memory_space<vmem>>) attributes {dimension_semantics = [#tpu.dimension_semantics<parallel>, #tpu.dimension_semantics<parallel>], iteration_bounds = array<i64: 2, 1>, scalar_prefetch = 0 : i64, scratch_operands = 0 : i64, tpu.core_type = #tpu.core_type<tc>, window_params = [{transform_indices = @transform_0, window_bounds = array<i64: 1, 32, 896>}, {transform_indices = @transform_1, window_bounds = array<i64: 1, 896, 128>}, {transform_indices = @transform_2, window_bounds = array<i64: 1, 1, 128>}, {transform_indices = @transform_3, window_bounds = array<i64: 1, 1, 128>}, {transform_indices = @transform_4, window_bounds = array<i64: 1, 32, 128>}]} {
    %c0 = arith.constant 0 : index
    %c0_0 = arith.constant 0 : index
    %c0_1 = arith.constant 0 : index
    %0 = vector.load %arg2[%c0, %c0_0, %c0_1] : memref<1x32x896xbf16, #tpu.memory_space<vmem>>, vector<1x32x896xbf16>
    %1 = vector.shape_cast %0 : vector<1x32x896xbf16> to vector<32x896xbf16>
    %c0_2 = arith.constant 0 : index
    %c0_3 = arith.constant 0 : index
    %c0_4 = arith.constant 0 : index
    %2 = vector.load %arg3[%c0_2, %c0_3, %c0_4] : memref<1x896x128xbf16, #tpu.memory_space<vmem>>, vector<1x896x128xbf16>
    %3 = vector.shape_cast %2 : vector<1x896x128xbf16> to vector<896x128xbf16>
    %cst = arith.constant dense<0.000000e+00> : vector<32x128xf32>
    %4 = tpu.matmul %1, %3, %cst {dimension_numbers = #tpu.dot_dimension_numbers<[1], [0], [0], [1], [0, 0, 1, 1], [], []>} : vector<32x896xbf16>, vector<896x128xbf16>, vector<32x128xf32> -> vector<32x128xf32>
    %c0_5 = arith.constant 0 : index
    %c0_6 = arith.constant 0 : index
    %c0_7 = arith.constant 0 : index
    %5 = vector.load %arg4[%c0_5, %c0_6, %c0_7] : memref<1x1x128xf32, #tpu.memory_space<vmem>>, vector<1x1x128xf32>
    %6 = vector.shape_cast %5 : vector<1x1x128xf32> to vector<1x128xf32>
    %7 = vector.broadcast %6 : vector<1x128xf32> to vector<32x128xf32>
    %8 = arith.mulf %4, %7 : vector<32x128xf32>
    %c0_8 = arith.constant 0 : index
    %c0_9 = arith.constant 0 : index
    %c0_10 = arith.constant 0 : index
    %9 = vector.load %arg5[%c0_8, %c0_9, %c0_10] : memref<1x1x128xf32, #tpu.memory_space<vmem>>, vector<1x1x128xf32>
    %10 = vector.shape_cast %9 : vector<1x1x128xf32> to vector<1x128xf32>
    %11 = vector.broadcast %10 : vector<1x128xf32> to vector<32x128xf32>
    %12 = arith.addf %8, %11 : vector<32x128xf32>
    %cst_11 = arith.constant 0.000000e+00 : f32
    %13 = vector.broadcast %cst_11 : f32 to vector<32x128xf32>
    %14 = arith.maximumf %12, %13 : vector<32x128xf32>
    %c0_12 = arith.constant 0 : index
    %c0_13 = arith.constant 0 : index
    %c0_14 = arith.constant 0 : index
    %15 = vector.load %arg6[%c0_12, %c0_13, %c0_14] : memref<1x32x128xf32, #tpu.memory_space<vmem>>, vector<1x32x128xf32>
    %16 = vector.shape_cast %15 : vector<1x32x128xf32> to vector<32x128xf32>
    %17 = vector.shape_cast %14 : vector<32x128xf32> to vector<1x32x128xf32>
    tpu.vector_store %arg6[%c0_12, %c0_13, %c0_14], %17 {strides = array<i32>} : memref<1x32x128xf32, #tpu.memory_space<vmem>>, vector<1x32x128xf32>,
    return
  }
  func.func @transform_0(%arg0: i32, %arg1: i32) -> (i32, i32, i32) {
    %c0_i32 = arith.constant 0 : i32
    %c0_i32_0 = arith.constant 0 : i32
    return %arg0, %arg1, %c0_i32 : i32, i32, i32
  }
  func.func @transform_1(%arg0: i32, %arg1: i32) -> (i32, i32, i32) {
    %c0_i32 = arith.constant 0 : i32
    %c0_i32_0 = arith.constant 0 : i32
    %c0_i32_1 = arith.constant 0 : i32
    return %arg0, %c0_i32, %c0_i32_0 : i32, i32, i32
  }
  func.func @transform_2(%arg0: i32, %arg1: i32) -> (i32, i32, i32) {
    %c0_i32 = arith.constant 0 : i32
    %c0_i32_0 = arith.constant 0 : i32
    %c0_i32_1 = arith.constant 0 : i32
    return %arg0, %c0_i32, %c0_i32_0 : i32, i32, i32
  }
  func.func @transform_3(%arg0: i32, %arg1: i32) -> (i32, i32, i32) {
    %c0_i32 = arith.constant 0 : i32
    %c0_i32_0 = arith.constant 0 : i32
    %c0_i32_1 = arith.constant 0 : i32
    return %arg0, %c0_i32, %c0_i32_0 : i32, i32, i32
  }
  func.func @transform_4(%arg0: i32, %arg1: i32) -> (i32, i32, i32) {
    %c0_i32 = arith.constant 0 : i32
    %c0_i32_0 = arith.constant 0 : i32
    return %arg0, %arg1, %c0_i32 : i32, i32, i32
  }
}

module attributes {stable_mosaic.version = 11 : i64} {
  func.func @_matmul_bn_relu_kernel(%arg0: i32, %arg1: i32, %arg2: memref<1x16x896xbf16, #tpu.memory_space<vmem>>, %arg3: memref<1x896x128xbf16, #tpu.memory_space<vmem>>, %arg4: memref<1x1x128xf32, #tpu.memory_space<vmem>>, %arg5: memref<1x1x128xf32, #tpu.memory_space<vmem>>, %arg6: memref<1x16x128xf32, #tpu.memory_space<vmem>>) attributes {dimension_semantics = [#tpu.dimension_semantics<parallel>, #tpu.dimension_semantics<parallel>], iteration_bounds = array<i64: 2, 1>, scalar_prefetch = 0 : i64, scratch_operands = 0 : i64, tpu.core_type = #tpu.core_type<tc>, window_params = [{transform_indices = @transform_0, window_bounds = array<i64: 1, 16, 896>}, {transform_indices = @transform_1, window_bounds = array<i64: 1, 896, 128>}, {transform_indices = @transform_2, window_bounds = array<i64: 1, 1, 128>}, {transform_indices = @transform_3, window_bounds = array<i64: 1, 1, 128>}, {transform_indices = @transform_4, window_bounds = array<i64: 1, 16, 128>}]} {
    %c0 = arith.constant 0 : index
    %c0_0 = arith.constant 0 : index
    %c0_1 = arith.constant 0 : index
    %0 = vector.load %arg2[%c0, %c0_0, %c0_1] : memref<1x16x896xbf16, #tpu.memory_space<vmem>>, vector<1x16x896xbf16>
    %1 = vector.shape_cast %0 : vector<1x16x896xbf16> to vector<16x896xbf16>
    %c0_2 = arith.constant 0 : index
    %c0_3 = arith.constant 0 : index
    %c0_4 = arith.constant 0 : index
    %2 = vector.load %arg3[%c0_2, %c0_3, %c0_4] : memref<1x896x128xbf16, #tpu.memory_space<vmem>>, vector<1x896x128xbf16>
    %3 = vector.shape_cast %2 : vector<1x896x128xbf16> to vector<896x128xbf16>
    %cst = arith.constant dense<0.000000e+00> : vector<16x128xf32>
    %4 = tpu.matmul %1, %3, %cst {dimension_numbers = #tpu.dot_dimension_numbers<[1], [0], [0], [1], [0, 0, 1, 1], [], []>} : vector<16x896xbf16>, vector<896x128xbf16>, vector<16x128xf32> -> vector<16x128xf32>
    %c0_5 = arith.constant 0 : index
    %c0_6 = arith.constant 0 : index
    %c0_7 = arith.constant 0 : index
    %5 = vector.load %arg4[%c0_5, %c0_6, %c0_7] : memref<1x1x128xf32, #tpu.memory_space<vmem>>, vector<1x1x128xf32>
    %6 = vector.shape_cast %5 : vector<1x1x128xf32> to vector<1x128xf32>
    %7 = vector.broadcast %6 : vector<1x128xf32> to vector<16x128xf32>
    %8 = arith.mulf %4, %7 : vector<16x128xf32>
    %c0_8 = arith.constant 0 : index
    %c0_9 = arith.constant 0 : index
    %c0_10 = arith.constant 0 : index
    %9 = vector.load %arg5[%c0_8, %c0_9, %c0_10] : memref<1x1x128xf32, #tpu.memory_space<vmem>>, vector<1x1x128xf32>
    %10 = vector.shape_cast %9 : vector<1x1x128xf32> to vector<1x128xf32>
    %11 = vector.broadcast %10 : vector<1x128xf32> to vector<16x128xf32>
    %12 = arith.addf %8, %11 : vector<16x128xf32>
    %c0_11 = arith.constant 0 : index
    %c0_12 = arith.constant 0 : index
    %c0_13 = arith.constant 0 : index
    %13 = vector.load %arg6[%c0_11, %c0_12, %c0_13] : memref<1x16x128xf32, #tpu.memory_space<vmem>>, vector<1x16x128xf32>
    %14 = vector.shape_cast %13 : vector<1x16x128xf32> to vector<16x128xf32>
    %15 = vector.shape_cast %12 : vector<16x128xf32> to vector<1x16x128xf32>
    tpu.vector_store %arg6[%c0_11, %c0_12, %c0_13], %15 {strides = array<i32>} : memref<1x16x128xf32, #tpu.memory_space<vmem>>, vector<1x16x128xf32>,
    return
  }
  func.func @transform_0(%arg0: i32, %arg1: i32) -> (i32, i32, i32) {
    %c0_i32 = arith.constant 0 : i32
    %c0_i32_0 = arith.constant 0 : i32
    return %arg0, %arg1, %c0_i32 : i32, i32, i32
  }
  func.func @transform_1(%arg0: i32, %arg1: i32) -> (i32, i32, i32) {
    %c0_i32 = arith.constant 0 : i32
    %c0_i32_0 = arith.constant 0 : i32
    %c0_i32_1 = arith.constant 0 : i32
    return %arg0, %c0_i32, %c0_i32_0 : i32, i32, i32
  }
  func.func @transform_2(%arg0: i32, %arg1: i32) -> (i32, i32, i32) {
    %c0_i32 = arith.constant 0 : i32
    %c0_i32_0 = arith.constant 0 : i32
    %c0_i32_1 = arith.constant 0 : i32
    return %arg0, %c0_i32, %c0_i32_0 : i32, i32, i32
  }
  func.func @transform_3(%arg0: i32, %arg1: i32) -> (i32, i32, i32) {
    %c0_i32 = arith.constant 0 : i32
    %c0_i32_0 = arith.constant 0 : i32
    %c0_i32_1 = arith.constant 0 : i32
    return %arg0, %c0_i32, %c0_i32_0 : i32, i32, i32
  }
  func.func @transform_4(%arg0: i32, %arg1: i32) -> (i32, i32, i32) {
    %c0_i32 = arith.constant 0 : i32
    %c0_i32_0 = arith.constant 0 : i32
    return %arg0, %arg1, %c0_i32 : i32, i32, i32
  }
}

</mosaic_0001>

<bundles_post_ra>
// kernel: alexnet_like_forward.7
= control target key start
LH: loop header
LB: loop body
LE: loop exit
PB: predicated region body
PF: predicated region fallthrough
CT: control target
= control target key end

     0   :  { %s1844_s15 = smov 0   ;;  %s1846_s16 = smov 0   ;;  %s2144_s0 = inlined_call_operand.vmem [shape: bf16[1,3840,384], index: 0, kind: input, shape index: {}]   ;;  %s2145_s1 = inlined_call_operand.vmem [shape: bf16[1,384,128], index: 1, kind: input, shape index: {}]   ;;  %s2146_s2 = inlined_call_operand.vmem [shape: f32[1,1,128], index: 2, kind: input, shape index: {}]   ;;  %s2147_s3 = inlined_call_operand.vmem [shape: f32[1,1,128], index: 3, kind: input, shape index: {}]   ;;  %s2148_s4 = inlined_call_operand.vmem [shape: f32[1,3840,128], index: 4, kind: output, shape index: {}]  }
   0x1   :  { %s1848_s17 = smov 0  }
   0x2 LB: > { %s23_s18 = sadd.s32 1, %s1813_s16  ;;  %p1401_p0 = scmp.ge.s32.totalorder %s1817_s17, 1  ;;  %s1817_s17 = sphi %s1848_s17, %s14_s17   ;;  %s1813_s16 = sphi %s1846_s16, %s2150_s16   ;;  %s1809_s15 = sphi %s1844_s15, %s2149_s15  }
   0x3   : > { %p24_p1 = scmp.ge.s32.totalorder %s23_s18, 15  ;;  %p210_p2 = scmp.lt.s32.totalorder %s1817_s17, 16 }
   0x5   : > { %s2152_s18 = smov (%p24_p1, %s23_s18), 0  ;;  %p211_p3 = pnand %p1401_p0, %p210_p2 }
   0x6   : > { %v1707_v0 = vld [vmem:[%s2145_s1 + $0x40] sm:$0xff] (!%p211_p3)   ;;  %s1402_s21 = sshll.u32 (!%p211_p3), %s1809_s15, 5  ;;  %v1709_v2 = vld [vmem:[%s2145_s1 + $0x48] sm:$0xff] (!%p211_p3)   ;;  %v1711_v4 = vld [vmem:[%s2145_s1 + $0x50] sm:$0xff] (!%p211_p3)  }
   0x7   : > { %214 = sbr.rel (%p211_p3) target bundleno = 353 (0x161), region = 36  ;;  %v1708_v1 = vld [vmem:[%s2145_s1] sm:$0xff] (!%p211_p3)   ;;  %1482 = vmatprep.subr.bf16.mxu0 (!%p211_p3), %v1707_v0  ;;  %1666 = vmatprep.subr.bf16.mxu1 (!%p211_p3), %v1707_v0  ;;  %p259_p4 = scmp.lt.s32.totalorder (!%p211_p3), %s1402_s21, 479  ;;  %v1710_v3 = vld [vmem:[%s2145_s1 + $0x8] sm:$0xff] (!%p211_p3)   ;;  %v1712_v5 = vld [vmem:[%s2145_s1 + $0x10] sm:$0xff] (!%p211_p3)  }
   0x8   : > { %1483 = vmatpush3.bf16.msra.mxu0 (!%p211_p3), %v1708_v1  ;;  %1674 = vmatpush3.bf16.msra.mxu1 (!%p211_p3), %v1708_v1  ;;  %v1713_v6 = vld [vmem:[%s2145_s1 + $0x58] sm:$0xff] (!%p211_p3)   ;;  %v1715_v8 = vld [vmem:[%s2145_s1 + $0x60] sm:$0xff] (!%p211_p3)   ;;  %v1717_v10 = vld [vmem:[%s2145_s1 + $0x68] sm:$0xff] (!%p211_p3)  }
   0x9   : > { %1484 = vmatprep.subr.bf16.mxu0 (!%p211_p3), %v1709_v2  ;;  %1667 = vmatprep.subr.bf16.mxu1 (!%p211_p3), %v1709_v2  ;;  %v1714_v7 = vld [vmem:[%s2145_s1 + $0x18] sm:$0xff] (!%p211_p3)   ;;  %v1716_v9 = vld [vmem:[%s2145_s1 + $0x20] sm:$0xff] (!%p211_p3)   ;;  %v1718_v13 = vld [vmem:[%s2145_s1 + $0x28] sm:$0xff] (!%p211_p3)  }
   0xa   : > { %v1719_v14 = vld [vmem:[%s2145_s1 + $0x70] sm:$0xff] (!%p211_p3)   ;;  %v1721_v16 = vld [vmem:[%s2145_s1 + $0x78] sm:$0xff] (!%p211_p3)   ;;  %v1729_v18 = vld [vmem:[%s2145_s1 + $0x80] sm:$0xff] (!%p211_p3)  }
   0xb   : > { %v1720_v15 = vld [vmem:[%s2145_s1 + $0x30] sm:$0xff] (!%p211_p3)   ;;  %v1722_v17 = vld [vmem:[%s2145_s1 + $0x38] sm:$0xff] (!%p211_p3)   ;;  %v1730_v22 = vld [vmem:[%s2145_s1 + $0x88] sm:$0xff] (!%p211_p3)  }
   0xc   : > { %1485 = vmatpush3.bf16.msra.mxu0 (!%p211_p3), %v1710_v3  ;;  %1675 = vmatpush3.bf16.msra.mxu1 (!%p211_p3), %v1710_v3  ;;  %v1737_v25 = vld [vmem:[%s2145_s1 + $0x90] sm:$0xff] (!%p211_p3)   ;;  %v1738_v27 = vld [vmem:[%s2145_s1 + $0x98] sm:$0xff] (!%p211_p3)   ;;  %v1745_v30 = vld [vmem:[%s2145_s1 + $0xa0] sm:$0xff] (!%p211_p3)  }
   0xd   : > { %1486 = vmatprep.subr.bf16.mxu0 (!%p211_p3), %v1711_v4  ;;  %1668 = vmatprep.subr.bf16.mxu1 (!%p211_p3), %v1711_v4  ;;  %v1746_v33 = vld [vmem:[%s2145_s1 + $0xa8] sm:$0xff] (!%p211_p3)   ;;  %v1753_v36 = vld [vmem:[%s2145_s1 + $0xb0] sm:$0xff] (!%p211_p3)   ;;  %v1754_v40 = vld [vmem:[%s2145_s1 + $0xb8] sm:$0xff] (!%p211_p3)  }
   0xe   : > { %s2154_s21 = smov (!%p259_p4, %s1402_s21), 479 }
   0xf   : > { %s1682_s8 = smul.u32 12, %s2154_s21  ;;  %s1405_s6 = sshll.u32 %s2154_s21, 3 }
  0x10   : > { %1487 = vmatpush3.bf16.msra.mxu0 %v1712_v5  ;;  %1676 = vmatpush3.bf16.msra.mxu1 %v1712_v5  ;;  %s2026_s9 = scalar_lea.vmem %s2148_s4, %s1405_s6 }
  0x11   : > { %1488 = vmatprep.subr.bf16.mxu0 %v1713_v6  ;;  %1669 = vmatprep.subr.bf16.mxu1 %v1713_v6  ;;  %s1895_s15 = scalar_lea.vmem %s2144_s0, %s1682_s8 }
  0x12   : > { %v1725_v11 = vld [vmem:[%s1895_s15 + $0x4] ss:$12 sps:$4 sm:$0xff]   ;;  %v1723_v19 = vld [vmem:[%s1895_s15] ss:$12 sps:$4 sm:$0xff]   ;;  %v1731_v21 = vld [vmem:[%s1895_s15 + $0x1c] ss:$12 sps:$4 sm:$0xff]  }
  0x13   : > { %v1728_v12 = vld [vmem:[%s1895_s15 + $0x124] ss:$12 sps:$4 sm:$0xff]   ;;  %833 = vmatprep.mubr.bf16.mxu0 %v1725_v11  ;;  %v1726_v20 = vld [vmem:[%s1895_s15 + $0x120] ss:$12 sps:$4 sm:$0xff]   ;;  %v1733_v23 = vld [vmem:[%s1895_s15 + $0x13c] ss:$12 sps:$4 sm:$0xff]  }
  0x14   : > { %1489 = vmatpush3.bf16.msra.mxu0 %v1714_v7  ;;  %1677 = vmatpush3.bf16.msra.mxu1 %v1714_v7  ;;  %v1735_v24 = vld [vmem:[%s1895_s15 + $0x18] ss:$12 sps:$4 sm:$0xff]   ;;  %v1739_v28 = vld [vmem:[%s1895_s15 + $0x34] ss:$12 sps:$4 sm:$0xff]   ;;  %v1743_v31 = vld [vmem:[%s1895_s15 + $0x30] ss:$12 sps:$4 sm:$0xff]  }
  0x15   : > { %1490 = vmatprep.subr.bf16.mxu0 %v1715_v8  ;;  %1670 = vmatprep.subr.bf16.mxu1 %v1715_v8  ;;  %v1736_v26 = vld [vmem:[%s1895_s15 + $0x138] ss:$12 sps:$4 sm:$0xff]   ;;  %v1741_v29 = vld [vmem:[%s1895_s15 + $0x154] ss:$12 sps:$4 sm:$0xff]   ;;  %v1744_v32 = vld [vmem:[%s1895_s15 + $0x150] ss:$12 sps:$4 sm:$0xff]  }
  0x16   : > { %929 = vmatprep.mubr.bf16.mxu1 %v1728_v12  ;;  %v1747_v34 = vld [vmem:[%s1895_s15 + $0x4c] ss:$12 sps:$4 sm:$0xff]   ;;  %v1751_v37 = vld [vmem:[%s1895_s15 + $0x48] ss:$12 sps:$4 sm:$0xff]   ;;  %v1755_v39 = vld [vmem:[%s1895_s15 + $0x64] ss:$12 sps:$4 sm:$0xff]  }
  0x17   : > { %v1749_v35 = vld [vmem:[%s1895_s15 + $0x16c] ss:$12 sps:$4 sm:$0xff]   ;;  %v1752_v38 = vld [vmem:[%s1895_s15 + $0x168] ss:$12 sps:$4 sm:$0xff]   ;;  %v1764_v47 = vld [vmem:[%s1895_s15 + $0x50] ss:$12 sps:$4 sm:$0xff]  }
  0x18   : > { %1491 = vmatpush3.bf16.msra.mxu0 %v1716_v9  ;;  %1678 = vmatpush3.bf16.msra.mxu1 %v1716_v9  ;;  %v1757_v41 = vld [vmem:[%s1895_s15 + $0x8] ss:$12 sps:$4 sm:$0xff]   ;;  %v1758_v42 = vld [vmem:[%s1895_s15 + $0x60] ss:$12 sps:$4 sm:$0xff]   ;;  %v1762_v45 = vld [vmem:[%s1895_s15 + $0x38] ss:$12 sps:$4 sm:$0xff]  }
  0x19   : > { %1492 = vmatprep.subr.bf16.mxu0 %v1717_v10  ;;  %1671 = vmatprep.subr.bf16.mxu1 %v1717_v10  ;;  %v1759_v43 = vld [vmem:[%s1895_s15 + $0x20] ss:$12 sps:$4 sm:$0xff]   ;;  %v1760_v44 = vld [vmem:[%s1895_s15 + $0x7c] ss:$12 sps:$4 sm:$0xff]   ;;  %v1763_v46 = vld [vmem:[%s1895_s15 + $0x78] ss:$12 sps:$4 sm:$0xff]  }
  0x1a   : > { %v1765_v48 = vld [vmem:[%s1895_s15 + $0x94] ss:$12 sps:$4 sm:$0xff]   ;;  %v1768_v50 = vld [vmem:[%s1895_s15 + $0x90] ss:$12 sps:$4 sm:$0xff]   ;;  %v1770_v52 = vld [vmem:[%s1895_s15 + $0xac] ss:$12 sps:$4 sm:$0xff]  }
  0x1b   : > { %v1767_v49 = vld [vmem:[%s1895_s15 + $0x68] ss:$12 sps:$4 sm:$0xff]   ;;  %v1769_v51 = vld [vmem:[%s1895_s15 + $0x80] ss:$12 sps:$4 sm:$0xff]   ;;  %v1772_v53 = vld [vmem:[%s1895_s15 + $0x98] ss:$12 sps:$4 sm:$0xff]  }
  0x1c   : > { %1493 = vmatpush3.bf16.msra.mxu0 %v1718_v13  ;;  %1679 = vmatpush3.bf16.msra.mxu1 %v1718_v13  ;;  %v1773_v54 = vld [vmem:[%s1895_s15 + $0xa8] ss:$12 sps:$4 sm:$0xff]   ;;  %v1774_v55 = vld [vmem:[%s1895_s15 + $0xb0] ss:$12 sps:$4 sm:$0xff]   ;;  %v1778_v58 = vld [vmem:[%s1895_s15 + $0xc0] ss:$12 sps:$4 sm:$0xff]  }
  0x1d   : > { %1494 = vmatprep.subr.bf16.mxu0 %v1719_v14  ;;  %1672 = vmatprep.subr.bf16.mxu1 %v1719_v14  ;;  %v1775_v56 = vld [vmem:[%s1895_s15 + $0xc4] ss:$12 sps:$4 sm:$0xff]   ;;  %v1777_v57 = vld [vmem:[%s1895_s15 + $0xc8] ss:$12 sps:$4 sm:$0xff]   ;;  %v1779_v59 = vld [vmem:[%s1895_s15 + $0xe0] ss:$12 sps:$4 sm:$0xff]  }
  0x1e   : > { %v1780_v60 = vld [vmem:[%s1895_s15 + $0xdc] ss:$12 sps:$4 sm:$0xff]   ;;  %v1782_v61 = vld [vmem:[%s1895_s15 + $0xf8] ss:$12 sps:$4 sm:$0xff]   ;;  %v1785_v0 = vld [vmem:[%s1895_s15 + $0xf4] ss:$12 sps:$4 sm:$0xff]  }
  0x1f   : > { %v1783_v62 = vld [vmem:[%s1895_s15 + $0xd8] ss:$12 sps:$4 sm:$0xff]   ;;  %v1784_v63 = vld [vmem:[%s1895_s15 + $0x110] ss:$12 sps:$4 sm:$0xff]   ;;  %v1787_v1 = vld [vmem:[%s1895_s15 + $0x128] ss:$12 sps:$4 sm:$0xff]  }
  0x20   : > { %1495 = vmatpush3.bf16.msra.mxu0 %v1720_v15  ;;  %1680 = vmatpush3.bf16.msra.mxu1 %v1720_v15  ;;  %v1788_v2 = vld [vmem:[%s1895_s15 + $0xf0] ss:$12 sps:$4 sm:$0xff]   ;;  %v1789_v3 = vld [vmem:[%s1895_s15 + $0x140] ss:$12 sps:$4 sm:$0xff]   ;;  %v1792_v5 = vld [vmem:[%s1895_s15 + $0x158] ss:$12 sps:$4 sm:$0xff]  }
  0x21   : > { %1496 = vmatprep.subr.bf16.mxu0 %v1721_v16  ;;  %1673 = vmatprep.subr.bf16.mxu1 %v1721_v16  ;;  %v1790_v4 = vld [vmem:[%s1895_s15 + $0x10c] ss:$12 sps:$4 sm:$0xff]   ;;  %v1793_v6 = vld [vmem:[%s1895_s15 + $0x108] ss:$12 sps:$4 sm:$0xff]   ;;  %v1794_v7 = vld [vmem:[%s1895_s15 + $0x170] ss:$12 sps:$4 sm:$0xff]  }
  0x24   : > { %1497 = vmatpush3.bf16.msra.mxu0 %v1722_v17  ;;  %1681 = vmatpush3.bf16.msra.mxu1 %v1722_v17 }
  0x25   : > { %1618 = vmatprep.subr.bf16.mxu1 %v1729_v18 }
  0x27   : > { %834 = vmatmul.mubr.bf16.vlgmr.msra.gmra.mrb[0].mxu0 %v1723_v19  ;;  %930 = vmatmul.mubr.bf16.vlgmr.msra.gmra.mrb[0].mxu1 %v1726_v20 }
  0x28   : > { %1619 = vmatpush3.bf16.msra.mxu1 %v1729_v18  ;;  %841 = vmatprep.mubr.bf16.mxu0 %v1731_v21 }
  0x29   : > { %1620 = vmatprep.subr.bf16.mxu1 %v1730_v22  ;;  %937 = vmatprep.mubr.bf16.mxu1 %v1733_v23 }
  0x2c   : > { %1621 = vmatpush3.bf16.msra.mxu1 %v1730_v22 }
  0x2d   : > { %1622 = vmatprep.subr.bf16.mxu1 %v1737_v25 }
  0x2f   : > { %842 = vmatmul.mubr.bf16.gmra.mrb[4].mxu0 %v1735_v24  ;;  %938 = vmatmul.mubr.bf16.gmra.mrb[4].mxu1 %v1736_v26 }
  0x30   : > { %1623 = vmatpush3.bf16.msra.mxu1 %v1737_v25  ;;  %849 = vmatprep.mubr.bf16.mxu0 %v1739_v28 }
  0x31   : > { %1624 = vmatprep.subr.bf16.mxu1 %v1738_v27  ;;  %945 = vmatprep.mubr.bf16.mxu1 %v1741_v29 }
  0x34   : > { %1625 = vmatpush3.bf16.msra.mxu1 %v1738_v27 }
  0x35   : > { %1626 = vmatprep.subr.bf16.mxu1 %v1745_v30 }
  0x37   : > { %850 = vmatmul.mubr.bf16.gmra.mrb[8].mxu0 %v1743_v31  ;;  %946 = vmatmul.mubr.bf16.gmra.mrb[8].mxu1 %v1744_v32 }
  0x38   : > { %1627 = vmatpush3.bf16.msra.mxu1 %v1745_v30  ;;  %857 = vmatprep.mubr.bf16.mxu0 %v1747_v34 }
  0x39   : > { %1628 = vmatprep.subr.bf16.mxu1 %v1746_v33  ;;  %953 = vmatprep.mubr.bf16.mxu1 %v1749_v35 }
  0x3c   : > { %1629 = vmatpush3.bf16.msra.mxu1 %v1746_v33 }
  0x3d   : > { %1630 = vmatprep.subr.bf16.mxu1 %v1753_v36 }
  0x3f   : > { %858 = vmatmul.mubr.bf16.gmra.mrb[12].mxu0 %v1751_v37  ;;  %954 = vmatmul.mubr.bf16.gmra.mrb[12].mxu1 %v1752_v38 }
  0x40   : > { %1631 = vmatpush3.bf16.msra.mxu1 %v1753_v36  ;;  %865 = vmatprep.mubr.bf16.mxu0 %v1755_v39 }
  0x41   : > { %1632 = vmatprep.subr.bf16.mxu1 %v1754_v40  ;;  %1634 = vmatprep.mubr.bf16.mxu1 %v1757_v41 }
  0x44   : > { %1633 = vmatpush3.bf16.msra.mxu1 %v1754_v40 }
  0x47   : > { %866 = vmatmul.mubr.bf16.gmra.mrb[16].mxu0 %v1758_v42  ;;  %1635 = vmatmul.mubr.bf16.vlgmr.msra.gmra.mrb[16].mxu1 %v1759_v43 }
  0x48   : > { %873 = vmatprep.mubr.bf16.mxu0 %v1760_v44  ;;  %1638 = vmatprep.mubr.bf16.mxu1 %v1762_v45 }
  0x4f   : > { %874 = vmatmul.mubr.bf16.gmra.mrb[20].mxu0 %v1763_v46  ;;  %1639 = vmatmul.mubr.bf16.gmra.mrb[20].mxu1 %v1764_v47 }
  0x50   : > { %881 = vmatprep.mubr.bf16.mxu0 %v1765_v48  ;;  %1642 = vmatprep.mubr.bf16.mxu1 %v1767_v49 }
  0x57   : > { %882 = vmatmul.mubr.bf16.gmra.mrb[24].mxu0 %v1768_v50  ;;  %1643 = vmatmul.mubr.bf16.gmra.mrb[24].mxu1 %v1769_v51 }
  0x58   : > { %889 = vmatprep.mubr.bf16.mxu0 %v1770_v52  ;;  %1646 = vmatprep.mubr.bf16.mxu1 %v1772_v53 }
  0x5f   : > { %890 = vmatmul.mubr.bf16.gmra.mrb[28].mxu0 %v1773_v54  ;;  %1647 = vmatmul.mubr.bf16.gmra.mrb[28].mxu1 %v1774_v55 }
  0x60   : > { %897 = vmatprep.mubr.bf16.mxu0 %v1775_v56  ;;  %1650 = vmatprep.mubr.bf16.mxu1 %v1777_v57 }
  0x67   : > { %898 = vmatmul.mubr.bf16.gmra.mrb[32].mxu0 %v1778_v58  ;;  %1651 = vmatmul.mubr.bf16.gmra.mrb[32].mxu1 %v1779_v59  ;;  %v2011_v58 = vld [vmem:[%s2146_s2] ss:$0 sm:$0xff] }
  0x68   : > { %905 = vmatprep.mubr.bf16.mxu0 %v1780_v60  ;;  %1654 = vmatprep.mubr.bf16.mxu1 %v1782_v61 }
  0x6f   : > { %906 = vmatmul.mubr.bf16.gmra.mrb[36].mxu0 %v1783_v62  ;;  %1655 = vmatmul.mubr.bf16.gmra.mrb[36].mxu1 %v1784_v63  ;;  %v2016_v62 = vld [vmem:[%s2147_s3] ss:$0 sm:$0xff] }
  0x70   : > { %913 = vmatprep.mubr.bf16.mxu0 %v1785_v0  ;;  %1658 = vmatprep.mubr.bf16.mxu1 %v1787_v1 }
  0x77   : > { %914 = vmatmul.mubr.bf16.gmra.mrb[40].mxu0 %v1788_v2  ;;  %1659 = vmatmul.mubr.bf16.gmra.mrb[40].mxu1 %v1789_v3 }
  0x78   : > { %921 = vmatprep.mubr.bf16.mxu0 %v1790_v4  ;;  %1662 = vmatprep.mubr.bf16.mxu1 %v1792_v5 }
  0x7f   : > { %922 = vmatmul.mubr.bf16.gmra.mrb[44].mxu0 %v1793_v6  ;;  %1663 = vmatmul.mubr.bf16.gmra.mrb[44].mxu1 %v1794_v7 }
  0xfa   : > { %v1498_v8 = vpop.f32.mrb[0].mxu0  ;;  %v1570_v9 = vpop.f32.mrb[0].mxu1 }
  0xfb   : > { %v1499_v10 = vpop.f32.mrb[1].mxu0  ;;  %v1571_v11 = vpop.f32.mrb[1].mxu1 }
  0xfc   : > { %v1500_v12 = vadd.f32 %v1499_v10, %v1498_v8  ;;  %v1990_v13 = vadd.f32 %v1571_v11, %v1570_v9  ;;  %v1501_v14 = vpop.f32.mrb[2].mxu0  ;;  %v1573_v15 = vpop.f32.mrb[2].mxu1 }
  0xfd   : > { %v1502_v16 = vpop.f32.mrb[3].mxu0  ;;  %v1574_v17 = vpop.f32.mrb[3].mxu1 }
  0xfe   : > { %v1503_v18 = vadd.f32 %v1502_v16, %v1501_v14  ;;  %v1992_v19 = vadd.f32 %v1574_v17, %v1573_v15 }
 0x102   : > { %v1504_v20 = vpop.f32.mrb[4].mxu0  ;;  %v1576_v21 = vpop.f32.mrb[4].mxu1 }
 0x103   : > { %v1505_v22 = vpop.f32.mrb[5].mxu0  ;;  %v1577_v23 = vpop.f32.mrb[5].mxu1 }
 0x104   : > { %v1506_v24 = vadd.f32 %v1505_v22, %v1504_v20  ;;  %v1994_v25 = vadd.f32 %v1577_v23, %v1576_v21  ;;  %v1507_v26 = vpop.f32.mrb[6].mxu0  ;;  %v1579_v27 = vpop.f32.mrb[6].mxu1 }
 0x105   : > { %v1508_v28 = vpop.f32.mrb[7].mxu0  ;;  %v1580_v29 = vpop.f32.mrb[7].mxu1 }
 0x106   : > { %v1509_v30 = vadd.f32 %v1508_v28, %v1507_v26  ;;  %v1996_v31 = vadd.f32 %v1580_v29, %v1579_v27 }
 0x10a   : > { %v1510_v32 = vpop.f32.mrb[8].mxu0  ;;  %v1582_v33 = vpop.f32.mrb[8].mxu1 }
 0x10b   : > { %v1511_v34 = vpop.f32.mrb[9].mxu0  ;;  %v1583_v35 = vpop.f32.mrb[9].mxu1 }
 0x10c   : > { %v1512_v36 = vadd.f32 %v1511_v34, %v1510_v32  ;;  %v1998_v37 = vadd.f32 %v1583_v35, %v1582_v33  ;;  %v1513_v38 = vpop.f32.mrb[10].mxu0  ;;  %v1585_v39 = vpop.f32.mrb[10].mxu1 }
 0x10d   : > { %v1514_v40 = vpop.f32.mrb[11].mxu0  ;;  %v1586_v41 = vpop.f32.mrb[11].mxu1 }
 0x10e   : > { %v2000_v42 = vadd.f32 %v1514_v40, %v1513_v38  ;;  %v2002_v43 = vadd.f32 %v1586_v41, %v1585_v39 }
 0x112   : > { %v1516_v44 = vpop.f32.mrb[12].mxu0  ;;  %v1588_v45 = vpop.f32.mrb[12].mxu1 }
 0x113   : > { %v1517_v46 = vpop.f32.mrb[13].mxu0  ;;  %v1589_v47 = vpop.f32.mrb[13].mxu1 }
 0x114   : > { %v1518_v48 = vadd.f32 %v1517_v46, %v1516_v44  ;;  %v2004_v49 = vadd.f32 %v1589_v47, %v1588_v45  ;;  %v1519_v50 = vpop.f32.mrb[14].mxu0  ;;  %v1591_v51 = vpop.f32.mrb[14].mxu1 }
 0x115   : > { %v1520_v52 = vpop.f32.mrb[15].mxu0  ;;  %v1592_v53 = vpop.f32.mrb[15].mxu1 }
 0x116   : > { %v1521_v54 = vadd.f32 %v1520_v52, %v1519_v50  ;;  %v2006_v55 = vadd.f32 %v1592_v53, %v1591_v51 }
 0x11a   : > { %v1522_v56 = vpop.f32.mrb[16].mxu0  ;;  %v1636_v57 = vpop.f32.mrb[16].mxu1 }
 0x11b   : > { %v1005_v59 = vadd.f32 %v1636_v57, %v1506_v24  ;;  %v1523_v60 = vpop.f32.mrb[17].mxu0  ;;  %v996_v61 = vpop.f32.mrb[17].mxu1 }
 0x11c   : > { %v1524_v63 = vadd.f32 %v1523_v60, %v1522_v56  ;;  %v997_v0 = vadd.f32 %v1500_v12, %v996_v61  ;;  %v1525_v1 = vpop.f32.mrb[18].mxu0  ;;  %v1637_v2 = vpop.f32.mrb[18].mxu1 }
 0x11d   : > { %v1132_v3 = vmul.f32 %v2011_v58, %v1005_v59  ;;  %v1008_v4 = vadd.f32 %v1637_v2, %v1509_v30  ;;  %v1526_v5 = vpop.f32.mrb[19].mxu0  ;;  %v999_v6 = vpop.f32.mrb[19].mxu1 }
 0x11e   : > { %v1130_v7 = vmul.f32 %v2011_v58, %v997_v0  ;;  %v1527_v8 = vadd.f32 %v1526_v5, %v1525_v1  ;;  %v1000_v9 = vadd.f32 %v1503_v18, %v999_v6 }
 0x11f   : > { %v1171_v10 = vadd.f32 %v2016_v62, %v1132_v3  ;;  %v1133_v11 = vmul.f32 %v2011_v58, %v1008_v4 }
 0x120   : > { %v1169_v12 = vadd.f32 %v2016_v62, %v1130_v7  ;;  %v1131_v14 = vmul.f32 %v2011_v58, %v1000_v9 }
 0x121   : > { %v1203_v15 = vmax.f32 %v1171_v10, 0.0  ;;  %v1172_v16 = vadd.f32 %v2016_v62, %v1133_v11 }
 0x122   : > { %v1201_v17 = vmax.f32 %v1169_v12, 0.0  ;;  %v1170_v18 = vadd.f32 %v2016_v62, %v1131_v14  ;;  %v1528_v20 = vpop.f32.mrb[20].mxu0  ;;  %v1640_v21 = vpop.f32.mrb[20].mxu1 }
 0x123   : > { %1235 = vst [vmem:[%s2026_s9 + $0x10] sm:$0xff] %v1203_v15  ;;  %v1204_v22 = vmax.f32 %v1172_v16, 0.0  ;;  %v1021_v23 = vadd.f32 %v1640_v21, %v1518_v48  ;;  %v1529_v24 = vpop.f32.mrb[21].mxu0  ;;  %v1012_v26 = vpop.f32.mrb[21].mxu1 }
 0x124   : > { %1233 = vst [vmem:[%s2026_s9] sm:$0xff] %v1201_v17  ;;  %v1202_v27 = vmax.f32 %v1170_v18, 0.0  ;;  %v1530_v28 = vadd.f32 %v1529_v24, %v1528_v20  ;;  %v1013_v29 = vadd.f32 %v1512_v36, %v1012_v26  ;;  %v1531_v30 = vpop.f32.mrb[22].mxu0  ;;  %v1641_v32 = vpop.f32.mrb[22].mxu1 }
 0x125   : > { %1236 = vst [vmem:[%s2026_s9 + $0x18] sm:$0xff] %v1204_v22  ;;  %v1136_v33 = vmul.f32 %v2011_v58, %v1021_v23  ;;  %v1024_v34 = vadd.f32 %v1641_v32, %v1521_v54  ;;  %v1532_v35 = vpop.f32.mrb[23].mxu0  ;;  %v1015_v38 = vpop.f32.mrb[23].mxu1 }
 0x126   : > { %1234 = vst [vmem:[%s2026_s9 + $0x8] sm:$0xff] %v1202_v27  ;;  %v1134_v39 = vmul.f32 %v2011_v58, %v1013_v29  ;;  %v1533_v40 = vadd.f32 %v1532_v35, %v1531_v30  ;;  %v1016_v41 = vadd.f32 %v2000_v42, %v1015_v38 }
 0x127   : > { %v1175_v44 = vadd.f32 %v2016_v62, %v1136_v33  ;;  %v1137_v36 = vmul.f32 %v2011_v58, %v1024_v34 }
 0x128   : > { %v1173_v45 = vadd.f32 %v2016_v62, %v1134_v39  ;;  %v1135_v46 = vmul.f32 %v2011_v58, %v1016_v41 }
 0x129   : > { %v1207_v47 = vmax.f32 %v1175_v44, 0.0  ;;  %v1176_v48 = vadd.f32 %v2016_v62, %v1137_v36 }
 0x12a   : > { %v1205_v50 = vmax.f32 %v1173_v45, 0.0  ;;  %v1174_v51 = vadd.f32 %v2016_v62, %v1135_v46  ;;  %v1534_v52 = vpop.f32.mrb[24].mxu0  ;;  %v1644_v53 = vpop.f32.mrb[24].mxu1 }
 0x12b   : > { %1239 = vst [vmem:[%s2026_s9 + $0x30] sm:$0xff] %v1207_v47  ;;  %v1208_v42 = vmax.f32 %v1176_v48, 0.0  ;;  %v1037_v54 = vadd.f32 %v1644_v53, %v1530_v28  ;;  %v1535_v56 = vpop.f32.mrb[25].mxu0  ;;  %v1028_v57 = vpop.f32.mrb[25].mxu1 }
 0x12c   : > { %1237 = vst [vmem:[%s2026_s9 + $0x20] sm:$0xff] %v1205_v50  ;;  %v1206_v59 = vmax.f32 %v1174_v51, 0.0  ;;  %v1536_v60 = vadd.f32 %v1535_v56, %v1534_v52  ;;  %v1029_v61 = vadd.f32 %v1524_v63, %v1028_v57  ;;  %v1537_v0 = vpop.f32.mrb[26].mxu0  ;;  %v1645_v1 = vpop.f32.mrb[26].mxu1 }
 0x12d   : > { %1240 = vst [vmem:[%s2026_s9 + $0x38] sm:$0xff] %v1208_v42  ;;  %v1140_v2 = vmul.f32 %v2011_v58, %v1037_v54  ;;  %v1040_v3 = vadd.f32 %v1645_v1, %v1533_v40  ;;  %v1538_v4 = vpop.f32.mrb[27].mxu0  ;;  %v1031_v5 = vpop.f32.mrb[27].mxu1 }
 0x12e   : > { %1238 = vst [vmem:[%s2026_s9 + $0x28] sm:$0xff] %v1206_v59  ;;  %v1138_v6 = vmul.f32 %v2011_v58, %v1029_v61  ;;  %v1539_v7 = vadd.f32 %v1538_v4, %v1537_v0  ;;  %v1032_v9 = vadd.f32 %v1527_v8, %v1031_v5 }
 0x12f   : > { %v1179_v10 = vadd.f32 %v2016_v62, %v1140_v2  ;;  %v1141_v11 = vmul.f32 %v2011_v58, %v1040_v3 }
 0x130   : > { %v1177_v63 = vadd.f32 %v2016_v62, %v1138_v6  ;;  %v1139_v12 = vmul.f32 %v2011_v58, %v1032_v9 }
 0x131   : > { %v1211_v14 = vmax.f32 %v1179_v10, 0.0  ;;  %v1180_v15 = vadd.f32 %v2016_v62, %v1141_v11 }
 0x132   : > { %v1209_v16 = vmax.f32 %v1177_v63, 0.0  ;;  %v1178_v17 = vadd.f32 %v2016_v62, %v1139_v12  ;;  %v1540_v18 = vpop.f32.mrb[28].mxu0  ;;  %v1648_v20 = vpop.f32.mrb[28].mxu1 }
 0x133   : > { %1243 = vst [vmem:[%s2026_s9 + $0x50] sm:$0xff] %v1211_v14  ;;  %v1212_v8 = vmax.f32 %v1180_v15, 0.0  ;;  %v1541_v21 = vpop.f32.mrb[29].mxu0  ;;  %v1044_v22 = vpop.f32.mrb[29].mxu1 }
 0x134   : > { %1241 = vst [vmem:[%s2026_s9 + $0x40] sm:$0xff] %v1209_v16  ;;  %v1210_v23 = vmax.f32 %v1178_v17, 0.0  ;;  %v1542_v24 = vadd.f32 %v1541_v21, %v1540_v18  ;;  %v1045_v26 = vadd.f32 %v1536_v60, %v1044_v22  ;;  %v1543_v27 = vpop.f32.mrb[30].mxu0  ;;  %v1649_v28 = vpop.f32.mrb[30].mxu1 }
 0x135   : > { %1244 = vst [vmem:[%s2026_s9 + $0x58] sm:$0xff] %v1212_v8  ;;  %v1544_v29 = vpop.f32.mrb[31].mxu0  ;;  %v1047_v30 = vpop.f32.mrb[31].mxu1 }
 0x136   : > { %1242 = vst [vmem:[%s2026_s9 + $0x48] sm:$0xff] %v1210_v23  ;;  %v1053_v32 = vadd.f32 %v1648_v20, %v1542_v24  ;;  %v1142_v33 = vmul.f32 %v2011_v58, %v1045_v26  ;;  %v1545_v34 = vadd.f32 %v1544_v29, %v1543_v27  ;;  %v1048_v35 = vadd.f32 %v1539_v7, %v1047_v30 }
 0x138   : > { %v1144_v38 = vmul.f32 %v2011_v58, %v1053_v32  ;;  %v1181_v39 = vadd.f32 %v2016_v62, %v1142_v33  ;;  %v1056_v40 = vadd.f32 %v1649_v28, %v1545_v34  ;;  %v1143_v41 = vmul.f32 %v2011_v58, %v1048_v35 }
 0x13a   : > { %v1183_v44 = vadd.f32 %v2016_v62, %v1144_v38  ;;  %v1213_v36 = vmax.f32 %v1181_v39, 0.0  ;;  %v1145_v45 = vmul.f32 %v2011_v58, %v1056_v40  ;;  %v1182_v46 = vadd.f32 %v2016_v62, %v1143_v41  ;;  %v1546_v47 = vpop.f32.mrb[32].mxu0  ;;  %v1652_v48 = vpop.f32.mrb[32].mxu1 }
 0x13b   : > { %v1547_v50 = vpop.f32.mrb[33].mxu0  ;;  %v1060_v51 = vpop.f32.mrb[33].mxu1 }
 0x13c   : > { %v1215_v52 = vmax.f32 %v1183_v44, 0.0  ;;  %1245 = vst [vmem:[%s2026_s9 + $0x60] sm:$0xff] %v1213_v36  ;;  %v1184_v53 = vadd.f32 %v2016_v62, %v1145_v45  ;;  %v1214_v42 = vmax.f32 %v1182_v46, 0.0  ;;  %v1548_v54 = vadd.f32 %v1547_v50, %v1546_v47  ;;  %v1549_v56 = vpop.f32.mrb[34].mxu0  ;;  %v1653_v57 = vpop.f32.mrb[34].mxu1 }
 0x13d   : > { %v1550_v59 = vpop.f32.mrb[35].mxu0  ;;  %v1063_v60 = vpop.f32.mrb[35].mxu1 }
 0x13e   : > { %1247 = vst [vmem:[%s2026_s9 + $0x70] sm:$0xff] %v1215_v52  ;;  %v1216_v61 = vmax.f32 %v1184_v53, 0.0  ;;  %1246 = vst [vmem:[%s2026_s9 + $0x68] sm:$0xff] %v1214_v42  ;;  %v1061_v0 = vadd.f32 %v1548_v54, %v1060_v51  ;;  %v1551_v1 = vadd.f32 %v1550_v59, %v1549_v56 }
 0x140   : > { %1248 = vst [vmem:[%s2026_s9 + $0x78] sm:$0xff] %v1216_v61  ;;  %v1146_v2 = vmul.f32 %v2011_v58, %v1061_v0  ;;  %v1064_v3 = vadd.f32 %v1551_v1, %v1063_v60 }
 0x142   : > { %v1185_v4 = vadd.f32 %v2016_v62, %v1146_v2  ;;  %v1147_v5 = vmul.f32 %v2011_v58, %v1064_v3  ;;  %v1552_v6 = vpop.f32.mrb[36].mxu0  ;;  %v2076_v7 = vpop.f32.mrb[36].mxu1 }
 0x143   : > { %v1553_v9 = vpop.f32.mrb[37].mxu0  ;;  %v1076_v10 = vpop.f32.mrb[37].mxu1 }
 0x144   : > { %v1217_v11 = vmax.f32 %v1185_v4, 0.0  ;;  %v1186_v63 = vadd.f32 %v2016_v62, %v1147_v5  ;;  %v1554_v12 = vadd.f32 %v1553_v9, %v1552_v6  ;;  %v1555_v14 = vpop.f32.mrb[38].mxu0  ;;  %v2079_v15 = vpop.f32.mrb[38].mxu1 }
 0x145   : > { %v1556_v16 = vpop.f32.mrb[39].mxu0  ;;  %v1079_v17 = vpop.f32.mrb[39].mxu1 }
 0x146   : > { %1249 = vst [vmem:[%s2026_s9 + $0x80] sm:$0xff] %v1217_v11  ;;  %v1218_v18 = vmax.f32 %v1186_v63, 0.0  ;;  %v1069_v20 = vadd.f32 %v1652_v48, %v1554_v12  ;;  %v1557_v8 = vadd.f32 %v1556_v16, %v1555_v14 }
 0x148   : > { %1250 = vst [vmem:[%s2026_s9 + $0x88] sm:$0xff] %v1218_v18  ;;  %v1148_v21 = vmul.f32 %v2011_v58, %v1069_v20  ;;  %v1072_v22 = vadd.f32 %v1653_v57, %v1557_v8 }
 0x14a   : > { %v1187_v23 = vadd.f32 %v2016_v62, %v1148_v21  ;;  %v1149_v24 = vmul.f32 %v2011_v58, %v1072_v22  ;;  %v1558_v26 = vpop.f32.mrb[40].mxu0  ;;  %v1660_v27 = vpop.f32.mrb[40].mxu1 }
 0x14b   : > { %v1101_v28 = vadd.f32 %v1660_v27, %v1994_v25  ;;  %v1559_v29 = vpop.f32.mrb[41].mxu0  ;;  %v1092_v30 = vpop.f32.mrb[41].mxu1 }
 0x14c   : > { %v1219_v32 = vmax.f32 %v1187_v23, 0.0  ;;  %v1188_v33 = vadd.f32 %v2016_v62, %v1149_v24  ;;  %v1560_v34 = vadd.f32 %v1559_v29, %v1558_v26  ;;  %v1093_v35 = vadd.f32 %v1990_v13, %v1092_v30  ;;  %v1561_v38 = vpop.f32.mrb[42].mxu0  ;;  %v1661_v39 = vpop.f32.mrb[42].mxu1 }
 0x14d   : > { %v1156_v40 = vmul.f32 %v2011_v58, %v1101_v28  ;;  %v1104_v41 = vadd.f32 %v1661_v39, %v1996_v31  ;;  %v1562_v44 = vpop.f32.mrb[43].mxu0  ;;  %v1095_v36 = vpop.f32.mrb[43].mxu1 }
 0x14e   : > { %1251 = vst [vmem:[%s2026_s9 + $0x90] sm:$0xff] %v1219_v32  ;;  %v1220_v45 = vmax.f32 %v1188_v33, 0.0  ;;  %v1077_v25 = vadd.f32 %v1560_v34, %v1076_v10  ;;  %v1154_v46 = vmul.f32 %v2011_v58, %v1093_v35  ;;  %v1563_v47 = vadd.f32 %v1562_v44, %v1561_v38 }
 0x14f   : > { %v1195_v48 = vadd.f32 %v2016_v62, %v1156_v40  ;;  %v1157_v50 = vmul.f32 %v2011_v58, %v1104_v41  ;;  %v1096_v13 = vadd.f32 %v1992_v19, %v1095_v36 }
 0x150   : > { %1252 = vst [vmem:[%s2026_s9 + $0x98] sm:$0xff] %v1220_v45  ;;  %v1150_v51 = vmul.f32 %v2011_v58, %v1077_v25  ;;  %v1193_v31 = vadd.f32 %v2016_v62, %v1154_v46  ;;  %v1080_v52 = vadd.f32 %v1563_v47, %v1079_v17 }
 0x151   : > { %v1227_v53 = vmax.f32 %v1195_v48, 0.0  ;;  %v1196_v42 = vadd.f32 %v2016_v62, %v1157_v50  ;;  %v1155_v54 = vmul.f32 %v2011_v58, %v1096_v13 }
 0x152   : > { %v1189_v56 = vadd.f32 %v2016_v62, %v1150_v51  ;;  %v1225_v57 = vmax.f32 %v1193_v31, 0.0  ;;  %v1151_v59 = vmul.f32 %v2011_v58, %v1080_v52  ;;  %v1564_v60 = vpop.f32.mrb[44].mxu0  ;;  %v1664_v19 = vpop.f32.mrb[44].mxu1 }
 0x153   : > { %1259 = vst [vmem:[%s2026_s9 + $0xd0] sm:$0xff] %v1227_v53  ;;  %v1228_v61 = vmax.f32 %v1196_v42, 0.0  ;;  %v1194_v0 = vadd.f32 %v2016_v62, %v1155_v54  ;;  %v1117_v1 = vadd.f32 %v1664_v19, %v2004_v49  ;;  %v1565_v2 = vpop.f32.mrb[45].mxu0  ;;  %v1108_v3 = vpop.f32.mrb[45].mxu1 }
 0x154   : > { %v1221_v4 = vmax.f32 %v1189_v56, 0.0  ;;  %1257 = vst [vmem:[%s2026_s9 + $0xc0] sm:$0xff] %v1225_v57  ;;  %v1190_v5 = vadd.f32 %v2016_v62, %v1151_v59  ;;  %v1566_v6 = vadd.f32 %v1565_v2, %v1564_v60  ;;  %v1109_v9 = vadd.f32 %v1998_v37, %v1108_v3  ;;  %v1567_v10 = vpop.f32.mrb[46].mxu0  ;;  %v1665_v11 = vpop.f32.mrb[46].mxu1 }
 0x155   : > { %1260 = vst [vmem:[%s2026_s9 + $0xd8] sm:$0xff] %v1228_v61  ;;  %v1226_v63 = vmax.f32 %v1194_v0, 0.0  ;;  %v1160_v12 = vmul.f32 %v2011_v58, %v1117_v1  ;;  %v1120_v49 = vadd.f32 %v1665_v11, %v2006_v55  ;;  %v1568_v14 = vpop.f32.mrb[47].mxu0  ;;  %v1111_v16 = vpop.f32.mrb[47].mxu1 }
 0x156   : > { %1253 = vst [vmem:[%s2026_s9 + $0xa0] sm:$0xff] %v1221_v4  ;;  %v1222_v17 = vmax.f32 %v1190_v5, 0.0  ;;  %v1085_v18 = vadd.f32 %v2076_v7, %v1566_v6  ;;  %v1158_v20 = vmul.f32 %v2011_v58, %v1109_v9  ;;  %v1569_v8 = vadd.f32 %v1568_v14, %v1567_v10 }
 0x157   : > { %1258 = vst [vmem:[%s2026_s9 + $0xc8] sm:$0xff] %v1226_v63  ;;  %v1199_v37 = vadd.f32 %v2016_v62, %v1160_v12  ;;  %v1161_v21 = vmul.f32 %v2011_v58, %v1120_v49  ;;  %v1112_v22 = vadd.f32 %v2002_v43, %v1111_v16 }
 0x158   : > { %1254 = vst [vmem:[%s2026_s9 + $0xa8] sm:$0xff] %v1222_v17  ;;  %v1152_v55 = vmul.f32 %v2011_v58, %v1085_v18  ;;  %v1197_v23 = vadd.f32 %v2016_v62, %v1158_v20  ;;  %v1088_v7 = vadd.f32 %v2079_v15, %v1569_v8 }
 0x159   : > { %v1231_v24 = vmax.f32 %v1199_v37, 0.0  ;;  %v1200_v26 = vadd.f32 %v2016_v62, %v1161_v21  ;;  %v1159_v27 = vmul.f32 %v2011_v58, %v1112_v22 }
 0x15a   : > { %v1191_v28 = vadd.f32 %v2016_v62, %v1152_v55  ;;  %v1229_v29 = vmax.f32 %v1197_v23, 0.0  ;;  %v1153_v43 = vmul.f32 %v2011_v58, %v1088_v7 }
 0x15b   : > { %1263 = vst [vmem:[%s2026_s9 + $0xf0] sm:$0xff] %v1231_v24  ;;  %v1232_v30 = vmax.f32 %v1200_v26, 0.0  ;;  %v1198_v32 = vadd.f32 %v2016_v62, %v1159_v27 }
 0x15c   : > { %v1223_v33 = vmax.f32 %v1191_v28, 0.0  ;;  %1261 = vst [vmem:[%s2026_s9 + $0xe0] sm:$0xff] %v1229_v29  ;;  %v1192_v15 = vadd.f32 %v2016_v62, %v1153_v43 }
 0x15d   : > { %1264 = vst [vmem:[%s2026_s9 + $0xf8] sm:$0xff] %v1232_v30  ;;  %v1230_v34 = vmax.f32 %v1198_v32, 0.0 }
 0x15e   : > { %1255 = vst [vmem:[%s2026_s9 + $0xb0] sm:$0xff] %v1223_v33  ;;  %v1224_v35 = vmax.f32 %v1192_v15, 0.0 }
 0x15f   : > { %1262 = vst [vmem:[%s2026_s9 + $0xe8] sm:$0xff] %v1230_v34 }
 0x160   : > { %1256 = vst [vmem:[%s2026_s9 + $0xb8] sm:$0xff] %v1224_v35 }
 0x161 PF: > { %s14_s17 = sadd.s32 1, %s1817_s17   ;;  %s2149_s15 = smov %s1813_s16 }
 0x162   : > { %p11_p5 = scmp.ge.s32.totalorder %s14_s17, 17   ;;  %s2150_s16 = smov %s2152_s18 }
 0x164   :  { %13 = sbr.rel (!%p11_p5) target bundleno = 2 (0x2), region = 75 }

// kernel: alexnet_like_forward.8
= control target key start
LH: loop header
LB: loop body
LE: loop exit
PB: predicated region body
PF: predicated region fallthrough
CT: control target
= control target key end

     0   :  { %s538_s6 = smov 0   ;;  %s839_s0 = inlined_call_operand.vmem [shape: bf16[2,9,21,1008], index: 0, kind: input, shape index: {}]   ;;  %s840_s1 = inlined_call_operand.vmem [shape: bf16[2,21,1008], index: 1, kind: output, shape index: {}]  }
   0x1 LB: > { %s501_s7 = sadd.s32 4294967295, %s526_s6   ;;  %p505_p0 = scmp.ge.s32.totalorder %s526_s6, 1  ;;  %s526_s6 = sphi %s538_s6, %s11_s6  }
   0x2   : > { %p87_p1 = scmp.lt.s32.totalorder %s526_s6, 3 }
   0x4   : > { %p88_p2 = pnand %p505_p0, %p87_p1 }
   0x5   : > { %p107_p3 = scmp.lt.s32.totalorder (!%p88_p2), %s501_s7, 1  ;;  %vm250_vm0 = vcmask (!%p88_p2), 1043456   ;;  %vm251_vm1 = vcmask (!%p88_p2), 916484   ;;  %vm349_vm3 = vsmask.f32 (!%p88_p2), 2304  ;;  %vm348_vm4 = vcmask (!%p88_p2), 1042432  }
   0x6   : > { %91 = sbr.rel (%p88_p2) target bundleno = 81 (0x51), region = 24  ;;  %vm568_vm2 = vmor (!%p88_p2), %vm251_vm1, %vm250_vm0  ;;  %vm351_vm6 = vcmask (!%p88_p2), 1046532   ;;  %vm352_vm7 = vsmask.f32 (!%p88_p2), 6400  ;;  %vm406_vm10 = vcmask (!%p88_p2), 915460  }
   0x7   : > { %vm603_vm5 = vmand (!%p88_p2), %vm348_vm4, %vm349_vm3 }
   0x8   : > { %vm626_vm8 = vmand (!%p88_p2), %vm351_vm6, %vm352_vm7 }
   0x9   : > { %vm669_vm9 = vmor (!%p88_p2), %vm626_vm8, %vm603_vm5 }
   0xa   : > { %vm407_vm11 = vmand (!%p88_p2), %vm406_vm10, %vm352_vm7 }
   0xb   : > { %vm772_vm12 = vmor (!%p88_p2), %vm407_vm11, %vm603_vm5 }
   0xd   : > { %s852_s7 = smov (!%p107_p3, %s501_s7), 1 }
   0xe   : > { %s510_s8 = smul.u32 864, %s852_s7 }
   0xf   : > { %s511_s12 = smul.u32 96, %s852_s7 }
  0x10   : > { %s552_s11 = scalar_lea.vmem %s839_s0, %s510_s8 }
  0x11   : > { %v118_v0 = vld [vmem:[%s552_s11] sm:$0xff]  ;;  %v119_v6 = vld [vmem:[%s552_s11 + $0x8] sm:$0xff]  ;;  %v120_v15 = vld [vmem:[%s552_s11 + $0x10] sm:$0xff]  ;;  %s615_s15 = scalar_lea.vmem %s840_s1, %s511_s12 }
  0x12   : > { %v130_v1 = vld [vmem:[%s552_s11 + $0x60] sm:$0xff]  ;;  %v131_v7 = vld [vmem:[%s552_s11 + $0x68] sm:$0xff]  ;;  %v132_v16 = vld [vmem:[%s552_s11 + $0x70] sm:$0xff] }
  0x13   : > { %v142_v2 = vld [vmem:[%s552_s11 + $0xc0] sm:$0xff]  ;;  %v226_v3 = vmax.bf16 %v130_v1, %v118_v0  ;;  %v143_v8 = vld [vmem:[%s552_s11 + $0xc8] sm:$0xff]  ;;  %v234_v10 = vmax.bf16 %v131_v7, %v119_v6  ;;  %v144_v17 = vld [vmem:[%s552_s11 + $0xd0] sm:$0xff]  ;;  %v242_v20 = vmax.bf16 %v132_v16, %v120_v15 }
  0x14   : > { %v154_v4 = vld [vmem:[%s552_s11 + $0x120] sm:$0xff]  ;;  %v155_v13 = vld [vmem:[%s552_s11 + $0x128] sm:$0xff]  ;;  %v156_v25 = vld [vmem:[%s552_s11 + $0x130] sm:$0xff] }
  0x15   : > { %v227_v5 = vmax.bf16 %v226_v3, %v142_v2  ;;  %v166_v9 = vld [vmem:[%s552_s11 + $0x180] sm:$0xff]  ;;  %v235_v14 = vmax.bf16 %v234_v10, %v143_v8  ;;  %v167_v19 = vld [vmem:[%s552_s11 + $0x188] sm:$0xff]  ;;  %v243_v27 = vmax.bf16 %v242_v20, %v144_v17  ;;  %v121_v28 = vld [vmem:[%s552_s11 + $0x18] sm:$0xff] }
  0x16   : > { %v178_v11 = vld [vmem:[%s552_s11 + $0x1e0] sm:$0xff]  ;;  %v179_v23 = vld [vmem:[%s552_s11 + $0x1e8] sm:$0xff]  ;;  %v133_v29 = vld [vmem:[%s552_s11 + $0x78] sm:$0xff]  ;;  %v255_v35 = vsel %vm568_vm2, %v121_v28, 4286644096 }
  0x17   : > { %v228_v12 = vmax.bf16 %v227_v5, %v154_v4  ;;  %v190_v22 = vld [vmem:[%s552_s11 + $0x240] sm:$0xff]  ;;  %v236_v24 = vmax.bf16 %v235_v14, %v155_v13  ;;  %v145_v30 = vld [vmem:[%s552_s11 + $0xd8] sm:$0xff]  ;;  %v168_v33 = vld [vmem:[%s552_s11 + $0x190] sm:$0xff]  ;;  %v244_v40 = vmax.bf16 %v243_v27, %v156_v25  ;;  %v258_v41 = vsel %vm568_vm2, %v133_v29, 4286644096 }
  0x18   : > { %v202_v31 = vld [vmem:[%s552_s11 + $0x2a0] sm:$0xff]  ;;  %v157_v34 = vld [vmem:[%s552_s11 + $0x138] sm:$0xff]  ;;  %v191_v38 = vld [vmem:[%s552_s11 + $0x248] sm:$0xff]  ;;  %v260_v44 = vmax.bf16 %v258_v41, %v255_v35  ;;  %v262_v45 = vsel %vm568_vm2, %v145_v30, 4286644096 }
  0x19   : > { %v229_v18 = vmax.bf16 %v228_v12, %v166_v9  ;;  %v237_v32 = vmax.bf16 %v236_v24, %v167_v19  ;;  %v214_v36 = vld [vmem:[%s552_s11 + $0x300] sm:$0xff]  ;;  %v180_v39 = vld [vmem:[%s552_s11 + $0x1f0] sm:$0xff]  ;;  %v169_v43 = vld [vmem:[%s552_s11 + $0x198] sm:$0xff]  ;;  %v245_v51 = vmax.bf16 %v244_v40, %v168_v33  ;;  %v266_v52 = vsel %vm568_vm2, %v157_v34, 4286644096 }
  0x1a   : > { %v122_v46 = vld [vmem:[%s552_s11 + $0x20] sm:$0xff]  ;;  %v203_v49 = vld [vmem:[%s552_s11 + $0x2a8] sm:$0xff]  ;;  %v192_v54 = vld [vmem:[%s552_s11 + $0x250] sm:$0xff]  ;;  %v264_v56 = vmax.bf16 %v262_v45, %v260_v44  ;;  %v270_v63 = vsel %vm568_vm2, %v169_v43, 4286644096 }
  0x1b   : > { %v230_v26 = vmax.bf16 %v229_v18, %v178_v11  ;;  %v238_v42 = vmax.bf16 %v237_v32, %v179_v23  ;;  %v134_v47 = vld [vmem:[%s552_s11 + $0x80] sm:$0xff]  ;;  %v215_v50 = vld [vmem:[%s552_s11 + $0x308] sm:$0xff]  ;;  %v181_v55 = vld [vmem:[%s552_s11 + $0x1f8] sm:$0xff]  ;;  %v246_v61 = vmax.bf16 %v245_v51, %v180_v39 }
  0x1c   : > { %v146_v57 = vld [vmem:[%s552_s11 + $0xe0] sm:$0xff]  ;;  %v204_v60 = vld [vmem:[%s552_s11 + $0x2b0] sm:$0xff]  ;;  %v193_v62 = vld [vmem:[%s552_s11 + $0x258] sm:$0xff]  ;;  %v289_v1 = vmax.bf16 %v134_v47, %v122_v46  ;;  %v268_v3 = vmax.bf16 %v266_v52, %v264_v56  ;;  %v274_v9 = vsel %vm568_vm2, %v181_v55, 4286644096 }
  0x1d   : > { %v231_v37 = vmax.bf16 %v230_v26, %v190_v22  ;;  %v239_v53 = vmax.bf16 %v238_v42, %v191_v38  ;;  %v158_v0 = vld [vmem:[%s552_s11 + $0x140] sm:$0xff]  ;;  %v123_v4 = vld [vmem:[%s552_s11 + $0x28] sm:$0xff]  ;;  %v216_v7 = vld [vmem:[%s552_s11 + $0x310] sm:$0xff]  ;;  %v247_v8 = vmax.bf16 %v246_v61, %v192_v54  ;;  %v278_v19 = vsel %vm568_vm2, %v193_v62, 4286644096 }
  0x1e   : > { %v135_v5 = vld [vmem:[%s552_s11 + $0x88] sm:$0xff]  ;;  %v290_v10 = vmax.bf16 %v289_v1, %v146_v57  ;;  %v205_v14 = vld [vmem:[%s552_s11 + $0x2b8] sm:$0xff]  ;;  %v272_v15 = vmax.bf16 %v270_v63, %v268_v3  ;;  %v170_v16 = vld [vmem:[%s552_s11 + $0x1a0] sm:$0xff] }
  0x1f   : > { %v232_v48 = vmax.bf16 %v231_v37, %v202_v31  ;;  %v240_v2 = vmax.bf16 %v239_v53, %v203_v49  ;;  %v147_v6 = vld [vmem:[%s552_s11 + $0xe8] sm:$0xff]  ;;  %v297_v11 = vmax.bf16 %v135_v5, %v123_v4  ;;  %v248_v18 = vmax.bf16 %v247_v8, %v204_v60  ;;  %v124_v23 = vld [vmem:[%s552_s11 + $0x30] sm:$0xff]  ;;  %v217_v26 = vld [vmem:[%s552_s11 + $0x318] sm:$0xff] }
  0x20   : > { %v159_v17 = vld [vmem:[%s552_s11 + $0x148] sm:$0xff]  ;;  %v291_v20 = vmax.bf16 %v290_v10, %v158_v0  ;;  %v136_v24 = vld [vmem:[%s552_s11 + $0x90] sm:$0xff]  ;;  %v276_v27 = vmax.bf16 %v274_v9, %v272_v15  ;;  %v182_v28 = vld [vmem:[%s552_s11 + $0x200] sm:$0xff]  ;;  %v282_v32 = vsel %vm568_vm2, %v205_v14, 4286644096 }
  0x21   : > { %v233_v59 = vmax.bf16 %v232_v48, %v214_v36  ;;  %v241_v13 = vmax.bf16 %v240_v2, %v215_v50  ;;  %v298_v22 = vmax.bf16 %v297_v11, %v147_v6  ;;  %v148_v25 = vld [vmem:[%s552_s11 + $0xf0] sm:$0xff]  ;;  %v171_v29 = vld [vmem:[%s552_s11 + $0x1a8] sm:$0xff]  ;;  %v305_v30 = vmax.bf16 %v136_v24, %v124_v23  ;;  %v194_v33 = vld [vmem:[%s552_s11 + $0x260] sm:$0xff] }
  0x22   : > { %v249_v31 = vmax.bf16 %v248_v18, %v216_v7  ;;  %v292_v34 = vmax.bf16 %v291_v20, %v170_v16  ;;  %v183_v35 = vld [vmem:[%s552_s11 + $0x208] sm:$0xff]  ;;  %v160_v37 = vld [vmem:[%s552_s11 + $0x150] sm:$0xff]  ;;  %v280_v38 = vmax.bf16 %v278_v19, %v276_v27  ;;  %v125_v40 = vld [vmem:[%s552_s11 + $0x38] sm:$0xff]  ;;  %v286_v43 = vsel %vm568_vm2, %v217_v26, 4286644096 }
  0x23   : > { %426 = vst [vmem:[%s615_s15] sm:$0xff] %v233_v59  ;;  %427 = vst [vmem:[%s615_s15 + $0x8] sm:$0xff] %v241_v13  ;;  %v299_v36 = vmax.bf16 %v298_v22, %v159_v17  ;;  %v306_v39 = vmax.bf16 %v305_v30, %v148_v25  ;;  %v137_v41 = vld [vmem:[%s552_s11 + $0x98] sm:$0xff]  ;;  %v172_v46 = vld [vmem:[%s552_s11 + $0x1b0] sm:$0xff]  ;;  %v314_v48 = vsel %vm568_vm2, %v125_v40, 4286644096 }
  0x24   : > { %v149_v42 = vld [vmem:[%s552_s11 + $0xf8] sm:$0xff]  ;;  %428 = vst [vmem:[%s615_s15 + $0x10] sm:$0xff] %v249_v31  ;;  %v293_v44 = vmax.bf16 %v292_v34, %v182_v28  ;;  %v284_v49 = vmax.bf16 %v282_v32, %v280_v38  ;;  %v206_v50 = vld [vmem:[%s552_s11 + $0x2c0] sm:$0xff]  ;;  %v195_v51 = vld [vmem:[%s552_s11 + $0x268] sm:$0xff]  ;;  %v317_v53 = vsel %vm568_vm2, %v137_v41, 4286644096 }
  0x25   : > { %v300_v45 = vmax.bf16 %v299_v36, %v171_v29  ;;  %v161_v47 = vld [vmem:[%s552_s11 + $0x158] sm:$0xff]  ;;  %v307_v52 = vmax.bf16 %v306_v39, %v160_v37  ;;  %v184_v56 = vld [vmem:[%s552_s11 + $0x210] sm:$0xff]  ;;  %v319_v59 = vmax.bf16 %v317_v53, %v314_v48  ;;  %v321_v60 = vsel %vm568_vm2, %v149_v42, 4286644096  ;;  %v218_v63 = vld [vmem:[%s552_s11 + $0x320] sm:$0xff] }
  0x26   : > { %v294_v54 = vmax.bf16 %v293_v44, %v194_v33  ;;  %v173_v57 = vld [vmem:[%s552_s11 + $0x1b8] sm:$0xff]  ;;  %v288_v62 = vmax.bf16 %v286_v43, %v284_v49  ;;  %v207_v0 = vld [vmem:[%s552_s11 + $0x2c8] sm:$0xff]  ;;  %v196_v1 = vld [vmem:[%s552_s11 + $0x270] sm:$0xff]  ;;  %v325_v3 = vsel %vm568_vm2, %v161_v47, 4286644096 }
  0x27   : > { %v301_v55 = vmax.bf16 %v300_v45, %v183_v35  ;;  %v308_v2 = vmax.bf16 %v307_v52, %v172_v46  ;;  %v185_v6 = vld [vmem:[%s552_s11 + $0x218] sm:$0xff]  ;;  %v323_v7 = vmax.bf16 %v321_v60, %v319_v59  ;;  %v126_v8 = vld [vmem:[%s552_s11 + $0x40] sm:$0x77]  ;;  %v219_v10 = vld [vmem:[%s552_s11 + $0x328] sm:$0xff]  ;;  %v329_v13 = vsel %vm568_vm2, %v173_v57, 4286644096 }
  0x28   : > { %v295_v4 = vmax.bf16 %v294_v54, %v206_v50  ;;  %v138_v9 = vld [vmem:[%s552_s11 + $0xa0] sm:$0x77]  ;;  %429 = vst.msk [vmem:[%s615_s15 + $0x18] sm:$0xff] %vm568_vm2, %v288_v62  ;;  %v208_v11 = vld [vmem:[%s552_s11 + $0x2d0] sm:$0xff]  ;;  %v197_v17 = vld [vmem:[%s552_s11 + $0x278] sm:$0xff] }
  0x29   : > { %v302_v5 = vmax.bf16 %v301_v55, %v195_v51  ;;  %v309_v12 = vmax.bf16 %v308_v2, %v184_v56  ;;  %v150_v14 = vld [vmem:[%s552_s11 + $0x100] sm:$0x77]  ;;  %v209_v18 = vld [vmem:[%s552_s11 + $0x2d8] sm:$0xff]  ;;  %v327_v19 = vmax.bf16 %v325_v3, %v323_v7  ;;  %v333_v23 = vsel %vm568_vm2, %v185_v6, 4286644096  ;;  %v220_v27 = vld [vmem:[%s552_s11 + $0x330] sm:$0xff] }
  0x2a   : > { %v296_v15 = vmax.bf16 %v295_v4, %v218_v63  ;;  %v162_v20 = vld [vmem:[%s552_s11 + $0x160] sm:$0x77]  ;;  %v355_v24 = vsel %vm669_vm9, %v126_v8, 4286644096  ;;  %v356_v25 = vsel %vm669_vm9, %v138_v9, 4286644096 }
  0x2b   : > { %v303_v16 = vmax.bf16 %v302_v5, %v207_v0  ;;  %v310_v22 = vmax.bf16 %v309_v12, %v196_v1  ;;  %v331_v28 = vmax.bf16 %v329_v13, %v327_v19  ;;  %v174_v29 = vld [vmem:[%s552_s11 + $0x1c0] sm:$0x77]  ;;  %v357_v30 = vmax.bf16 %v356_v25, %v355_v24  ;;  %v221_v33 = vld [vmem:[%s552_s11 + $0x338] sm:$0xff]  ;;  %v127_v40 = vld [vmem:[%s552_s11 + $0x48] sm:$0x77] }
  0x2c   : > { %430 = vst [vmem:[%s615_s15 + $0x20] sm:$0xff] %v296_v15  ;;  %v358_v31 = vsel %vm669_vm9, %v150_v14, 4286644096  ;;  %v337_v34 = vsel %vm568_vm2, %v197_v17, 4286644096 }
  0x2d   : > { %v304_v26 = vmax.bf16 %v303_v16, %v219_v10  ;;  %v311_v32 = vmax.bf16 %v310_v22, %v208_v11  ;;  %v360_v35 = vsel %vm669_vm9, %v162_v20, 4286644096  ;;  %v335_v36 = vmax.bf16 %v333_v23, %v331_v28  ;;  %v186_v38 = vld [vmem:[%s552_s11 + $0x220] sm:$0x77]  ;;  %v139_v43 = vld [vmem:[%s552_s11 + $0xa8] sm:$0x77] }
  0x2e   : > { %v341_v37 = vsel %vm568_vm2, %v209_v18, 4286644096  ;;  %v359_v39 = vmax.bf16 %v358_v31, %v357_v30  ;;  %v362_v42 = vsel %vm669_vm9, %v174_v29, 4286644096  ;;  %v151_v44 = vld [vmem:[%s552_s11 + $0x108] sm:$0x77] }
  0x2f   : > { %431 = vst [vmem:[%s615_s15 + $0x28] sm:$0xff] %v304_v26  ;;  %v312_v41 = vmax.bf16 %v311_v32, %v220_v27  ;;  %v339_v45 = vmax.bf16 %v337_v34, %v335_v36  ;;  %v345_v46 = vsel %vm568_vm2, %v221_v33, 4286644096  ;;  %v198_v47 = vld [vmem:[%s552_s11 + $0x280] sm:$0x77] }
  0x30   : > { %v210_v48 = vld [vmem:[%s552_s11 + $0x2e0] sm:$0x77]  ;;  %v361_v49 = vmax.bf16 %v360_v35, %v359_v39  ;;  %v364_v50 = vsel %vm669_vm9, %v186_v38, 4286644096  ;;  %v163_v51 = vld [vmem:[%s552_s11 + $0x168] sm:$0x77] }
  0x31   : > { %432 = vst [vmem:[%s615_s15 + $0x30] sm:$0xff] %v312_v41  ;;  %v372_v52 = vsel %vm669_vm9, %v127_v40, 4286644096  ;;  %v343_v53 = vmax.bf16 %v341_v37, %v339_v45  ;;  %v373_v55 = vsel %vm669_vm9, %v139_v43, 4286644096 }
  0x32   : > { %v363_v54 = vmax.bf16 %v362_v42, %v361_v49  ;;  %v375_v56 = vsel %vm669_vm9, %v151_v44, 4286644096  ;;  %v222_v57 = vld [vmem:[%s552_s11 + $0x340] sm:$0x77]  ;;  %v366_v59 = vsel %vm669_vm9, %v198_v47, 4286644096  ;;  %v374_v62 = vmax.bf16 %v373_v55, %v372_v52 }
  0x33   : > { %v175_v60 = vld [vmem:[%s552_s11 + $0x1c8] sm:$0x77]  ;;  %v347_v63 = vmax.bf16 %v345_v46, %v343_v53  ;;  %v368_v1 = vsel %vm669_vm9, %v210_v48, 4286644096  ;;  %v377_v3 = vsel %vm669_vm9, %v163_v51, 4286644096 }
  0x34   : > { %v365_v0 = vmax.bf16 %v364_v50, %v363_v54  ;;  %v187_v2 = vld [vmem:[%s552_s11 + $0x228] sm:$0x77]  ;;  %v376_v4 = vmax.bf16 %v375_v56, %v374_v62  ;;  %v128_v5 = vld [vmem:[%s552_s11 + $0x50] sm:$0x77]  ;;  %v370_v9 = vsel %vm669_vm9, %v222_v57, 4286644096 }
  0x35   : > { %v140_v6 = vld [vmem:[%s552_s11 + $0xb0] sm:$0x77]  ;;  %433 = vst.msk [vmem:[%s615_s15 + $0x38] sm:$0xff] %vm568_vm2, %v347_v63  ;;  %v379_v10 = vsel %vm669_vm9, %v175_v60, 4286644096 }
  0x36   : > { %v152_v7 = vld [vmem:[%s552_s11 + $0x110] sm:$0x77]  ;;  %v367_v8 = vmax.bf16 %v366_v59, %v365_v0  ;;  %v199_v11 = vld [vmem:[%s552_s11 + $0x288] sm:$0x77]  ;;  %v378_v12 = vmax.bf16 %v377_v3, %v376_v4  ;;  %v381_v13 = vsel %vm669_vm9, %v187_v2, 4286644096 }
  0x37   : > { %v164_v14 = vld [vmem:[%s552_s11 + $0x170] sm:$0x77]  ;;  %v389_v15 = vsel %vm669_vm9, %v128_v5, 4286644096  ;;  %v390_v16 = vsel %vm669_vm9, %v140_v6, 4286644096 }
  0x38   : > { %v369_v21 = vmax.bf16 %v368_v1, %v367_v8  ;;  %v392_v17 = vsel %vm669_vm9, %v152_v7, 4286644096  ;;  %v434_v18 = vld [vmem:[%s615_s15 + $0x40] sm:$0x77]  ;;  %v211_v19 = vld [vmem:[%s552_s11 + $0x2e8] sm:$0x77]  ;;  %v380_v20 = vmax.bf16 %v379_v10, %v378_v12  ;;  %v391_v23 = vmax.bf16 %v390_v16, %v389_v15 }
  0x39   : > { %v176_v22 = vld [vmem:[%s552_s11 + $0x1d0] sm:$0x77]  ;;  %v223_v25 = vld [vmem:[%s552_s11 + $0x348] sm:$0x77]  ;;  %v383_v26 = vsel %vm669_vm9, %v199_v11, 4286644096 }
  0x3a   : > { %v371_v24 = vmax.bf16 %v370_v9, %v369_v21  ;;  %v394_v27 = vsel %vm669_vm9, %v164_v14, 4286644096  ;;  %v382_v29 = vmax.bf16 %v381_v13, %v380_v20  ;;  %v188_v30 = vld [vmem:[%s552_s11 + $0x230] sm:$0x77]  ;;  %v393_v31 = vmax.bf16 %v392_v17, %v391_v23  ;;  %v129_v32 = vld [vmem:[%s552_s11 + $0x58] sm:$0x77] }
  0x3b   : > { %v141_v33 = vld [vmem:[%s552_s11 + $0xb8] sm:$0x77]  ;;  %v385_v35 = vsel %vm669_vm9, %v211_v19, 4286644096  ;;  %v396_v58 = vsel %vm669_vm9, %v176_v22, 4286644096 }
  0x3c   : > { %v435_v34 = vsel %vm669_vm9, %v371_v24, %v434_v18  ;;  %v153_v36 = vld [vmem:[%s552_s11 + $0x118] sm:$0x77]  ;;  %v384_v37 = vmax.bf16 %v383_v26, %v382_v29  ;;  %v387_v38 = vsel %vm669_vm9, %v223_v25, 4286644096  ;;  %v200_v39 = vld [vmem:[%s552_s11 + $0x290] sm:$0x77]  ;;  %v395_v40 = vmax.bf16 %v394_v27, %v393_v31 }
  0x3d   : > { %436 = vst [vmem:[%s615_s15 + $0x40] sm:$0x77] %v435_v34  ;;  %v165_v41 = vld [vmem:[%s552_s11 + $0x178] sm:$0x77]  ;;  %v398_v42 = vsel %vm669_vm9, %v188_v30, 4286644096 }
  0x3e   : > { %v409_v43 = vsel %vm772_vm12, %v129_v32, 4286644096  ;;  %v410_v44 = vsel %vm772_vm12, %v141_v33, 4286644096  ;;  %v386_v45 = vmax.bf16 %v385_v35, %v384_v37  ;;  %v212_v46 = vld [vmem:[%s552_s11 + $0x2f0] sm:$0x77]  ;;  %v397_v47 = vmax.bf16 %v396_v58, %v395_v40 }
  0x3f   : > { %v177_v48 = vld [vmem:[%s552_s11 + $0x1d8] sm:$0x77]  ;;  %v411_v49 = vmax.bf16 %v410_v44, %v409_v43  ;;  %v412_v50 = vsel %vm772_vm12, %v153_v36, 4286644096  ;;  %v437_v51 = vld [vmem:[%s615_s15 + $0x48] sm:$0x77] }
  0x40   : > { %v400_v52 = vsel %vm669_vm9, %v200_v39, 4286644096  ;;  %v414_v53 = vsel %vm772_vm12, %v165_v41, 4286644096  ;;  %v388_v54 = vmax.bf16 %v387_v38, %v386_v45  ;;  %v224_v55 = vld [vmem:[%s552_s11 + $0x350] sm:$0x77]  ;;  %v399_v56 = vmax.bf16 %v398_v42, %v397_v47 }
  0x41   : > { %v189_v57 = vld [vmem:[%s552_s11 + $0x238] sm:$0x77]  ;;  %v413_v59 = vmax.bf16 %v412_v50, %v411_v49  ;;  %v402_v60 = vsel %vm669_vm9, %v212_v46, 4286644096  ;;  %v416_v62 = vsel %vm772_vm12, %v177_v48, 4286644096 }
  0x42   : > { %v438_v63 = vsel %vm669_vm9, %v388_v54, %v437_v51  ;;  %v401_v0 = vmax.bf16 %v400_v52, %v399_v56  ;;  %v201_v1 = vld [vmem:[%s552_s11 + $0x298] sm:$0x77]  ;;  %v404_v3 = vsel %vm669_vm9, %v224_v55, 4286644096  ;;  %v418_v4 = vsel %vm772_vm12, %v189_v57, 4286644096 }
  0x43   : > { %v415_v2 = vmax.bf16 %v414_v53, %v413_v59  ;;  %439 = vst [vmem:[%s615_s15 + $0x48] sm:$0x77] %v438_v63  ;;  %v213_v6 = vld [vmem:[%s552_s11 + $0x2f8] sm:$0x77]  ;;  %v440_v8 = vld [vmem:[%s615_s15 + $0x50] sm:$0x77] }
  0x44   : > { %v403_v5 = vmax.bf16 %v402_v60, %v401_v0  ;;  %v420_v9 = vsel %vm772_vm12, %v201_v1, 4286644096  ;;  %v225_v11 = vld [vmem:[%s552_s11 + $0x358] sm:$0x77]  ;;  %v422_v13 = vsel %vm772_vm12, %v213_v6, 4286644096 }
  0x45   : > { %v417_v7 = vmax.bf16 %v416_v62, %v415_v2  ;;  %v424_v15 = vsel %vm772_vm12, %v225_v11, 4286644096  ;;  %v443_v17 = vld [vmem:[%s615_s15 + $0x58] sm:$0x77] }
  0x46   : > { %v405_v10 = vmax.bf16 %v404_v3, %v403_v5 }
  0x47   : > { %v419_v12 = vmax.bf16 %v418_v4, %v417_v7 }
  0x48   : > { %v441_v14 = vsel %vm669_vm9, %v405_v10, %v440_v8 }
  0x49   : > { %v421_v21 = vmax.bf16 %v420_v9, %v419_v12  ;;  %442 = vst [vmem:[%s615_s15 + $0x50] sm:$0x77] %v441_v14 }
  0x4b   : > { %v423_v16 = vmax.bf16 %v422_v13, %v421_v21 }
  0x4d   : > { %v425_v18 = vmax.bf16 %v424_v15, %v423_v16 }
  0x4f   : > { %v444_v19 = vsel %vm772_vm12, %v425_v18, %v443_v17 }
  0x50   : > { %445 = vst [vmem:[%s615_s15 + $0x58] sm:$0x77] %v444_v19 }
  0x51 PF: > { %s11_s6 = sadd.s32 1, %s526_s6  }
  0x52   : > { %p8_p4 = scmp.ge.s32.totalorder %s11_s6, 4  }
  0x54   :  { %10 = sbr.rel (!%p8_p4) target bundleno = 1 (0x1), region = 54 }

// kernel: alexnet_like_forward.9
= control target key start
LH: loop header
LB: loop body
LE: loop exit
PB: predicated region body
PF: predicated region fallthrough
CT: control target
= control target key end

     0   :  { %s4293_s15 = smov 0   ;;  %s4295_s16 = smov 0   ;;  %s5119_s0 = inlined_call_operand.vmem [shape: bf16[2,592,640], index: 0, kind: input, shape index: {}]   ;;  %s5120_s1 = inlined_call_operand.vmem [shape: bf16[2,640,128], index: 1, kind: input, shape index: {}]   ;;  %s5121_s2 = inlined_call_operand.vmem [shape: f32[2,1,128], index: 2, kind: input, shape index: {}]   ;;  %s5122_s3 = inlined_call_operand.vmem [shape: f32[2,1,128], index: 3, kind: input, shape index: {}]   ;;  %s5123_s4 = inlined_call_operand.vmem [shape: f32[2,592,128], index: 4, kind: output, shape index: {}]  }
   0x1   :  { %s4297_s17 = smov 0  }
   0x2 LB: > { %s26_s18 = sadd.s32 1, %s4259_s16  ;;  %p3214_p0 = scmp.ge.s32.totalorder %s4263_s17, 1  ;;  %s4263_s17 = sphi %s4297_s17, %s14_s17   ;;  %s4259_s16 = sphi %s4295_s16, %s5125_s16   ;;  %s4255_s15 = sphi %s4293_s15, %s5124_s15  }
   0x3   : > { %p28_p1 = scmp.ge.s32.totalorder %s26_s18, 2  ;;  %p210_p2 = scmp.lt.s32.totalorder %s4263_s17, 3 }
   0x5   : > { %s5127_s18 = smov (%p28_p1, %s26_s18), 0  ;;  %p211_p3 = pnand %p3214_p0, %p210_p2 }
   0x6   : > { %p257_p4 = scmp.lt.s32.totalorder (!%p211_p3), %s4255_s15, 1  ;;  %v4265_v0 = vmov (!%p211_p3), 0   ;;  %v4266_v40 = vmov (!%p211_p3), 0.0   ;;  %vm4267_vm0 = vmmov (!%p211_p3), 0  }
   0x7   : > { %214 = sbr.rel (%p211_p3) target bundleno = 746 (0x2ea), region = 36  ;;  %1793 = vmatprep.subr.bf16.mxu1 (!%p211_p3), %v4265_v0  ;;  %2122 = vmatprep.subr.bf16.mxu0 (!%p211_p3), %v4265_v0 }
   0xe   : > { %s5129_s15 = smov (!%p257_p4, %s4255_s15), 1 }
   0xf   : > { %s3911_s19 = smul.u32 320, %s5129_s15  ;;  %s4777_s29 = scalar_lea.vmem %s5121_s2, %s5129_s15 }
  0x10   : > { %s3910_s23 = smul.u32 1480, %s5129_s15  ;;  %s4785_s6 = scalar_lea.vmem %s5122_s3, %s5129_s15 }
  0x11   : > { %s4319_s22 = scalar_lea.vmem %s5120_s1, %s3911_s19  ;;  %s3912_s7 = smul.u32 592, %s5129_s15 }
  0x12   : > { %v3940_v1 = vld [vmem:[%s4319_s22] sm:$0xff]   ;;  %v3942_v3 = vld [vmem:[%s4319_s22 + $0x8] sm:$0xff]   ;;  %v3944_v5 = vld [vmem:[%s4319_s22 + $0x10] sm:$0xff]   ;;  %s4379_s26 = scalar_lea.vmem %s5119_s0, %s3910_s23 }
  0x13   : > { %v4323_v2 = vld [vmem:[%s4319_s22 + $0x80] sm:$0xff]   ;;  %1794 = vmatpush1.bf16.msra.mxu1 %v3940_v1  ;;  %v4329_v4 = vld [vmem:[%s4319_s22 + $0x88] sm:$0xff]   ;;  %v4336_v6 = vld [vmem:[%s4319_s22 + $0x90] sm:$0xff]   ;;  %s4805_s10 = scalar_lea.vmem %s5123_s4, %s3912_s7 }
  0x14   : > { %2123 = vmatpush1.bf16.msra.mxu0 %v4323_v2  ;;  %1795 = vmatprep.subr.bf16.mxu1 %v4265_v0  ;;  %v3946_v7 = vld [vmem:[%s4319_s22 + $0x18] sm:$0xff]   ;;  %v3948_v9 = vld [vmem:[%s4319_s22 + $0x20] sm:$0xff]   ;;  %v3950_v11 = vld [vmem:[%s4319_s22 + $0x28] sm:$0xff]  }
  0x15   : > { %2124 = vmatprep.subr.bf16.mxu0 %v4265_v0  ;;  %v4343_v8 = vld [vmem:[%s4319_s22 + $0x98] sm:$0xff]   ;;  %v4350_v10 = vld [vmem:[%s4319_s22 + $0xa0] sm:$0xff]   ;;  %v4357_v12 = vld [vmem:[%s4319_s22 + $0xa8] sm:$0xff]  }
  0x16   : > { %v3952_v13 = vld [vmem:[%s4319_s22 + $0x30] sm:$0xff]   ;;  %v3954_v15 = vld [vmem:[%s4319_s22 + $0x38] sm:$0xff]   ;;  %v3956_v17 = vld [vmem:[%s4319_s22 + $0x40] sm:$0xff]  }
  0x17   : > { %1796 = vmatpush1.bf16.msra.mxu1 %v3942_v3  ;;  %v4364_v14 = vld [vmem:[%s4319_s22 + $0xb0] sm:$0xff]   ;;  %v4372_v16 = vld [vmem:[%s4319_s22 + $0xb8] sm:$0xff]   ;;  %v4384_v18 = vld [vmem:[%s4319_s22 + $0xc0] sm:$0xff]  }
  0x18   : > { %2125 = vmatpush1.bf16.msra.mxu0 %v4329_v4  ;;  %1797 = vmatprep.subr.bf16.mxu1 %v4265_v0  ;;  %v3974_v19 = vld [vmem:[%s4379_s26 + $0x4] ss:$20 sps:$4 sm:$0xff]   ;;  %v3958_v20 = vld [vmem:[%s4319_s22 + $0x48] sm:$0xff]   ;;  %v3960_v23 = vld [vmem:[%s4319_s22 + $0x50] sm:$0xff]  }
  0x19   : > { %2126 = vmatprep.subr.bf16.mxu0 %v4265_v0  ;;  %v3977_v21 = vld [vmem:[%s4379_s26 + $0xc] ss:$20 sps:$4 sm:$0xff]   ;;  %1825 = vmatprep.mubr.bf16.mxu1 %v3974_v19  ;;  %v4400_v24 = vld [vmem:[%s4319_s22 + $0xd0] sm:$0xff]   ;;  %v3962_v25 = vld [vmem:[%s4319_s22 + $0x58] sm:$0xff]  }
  0x1a   : > { %v4393_v22 = vld [vmem:[%s4319_s22 + $0xc8] sm:$0xff]   ;;  %2154 = vmatprep.mubr.bf16.mxu0 %v3977_v21  ;;  %v4407_v26 = vld [vmem:[%s4319_s22 + $0xd8] sm:$0xff]   ;;  %v3964_v27 = vld [vmem:[%s4319_s22 + $0x60] sm:$0xff]  }
  0x1b   : > { %1798 = vmatpush1.bf16.msra.mxu1 %v3944_v5  ;;  %v4414_v28 = vld [vmem:[%s4319_s22 + $0xe0] sm:$0xff]   ;;  %v3966_v29 = vld [vmem:[%s4319_s22 + $0x68] sm:$0xff]   ;;  %v3968_v31 = vld [vmem:[%s4319_s22 + $0x70] sm:$0xff]  }
  0x1c   : > { %2127 = vmatpush1.bf16.msra.mxu0 %v4336_v6  ;;  %1799 = vmatprep.subr.bf16.mxu1 %v4265_v0  ;;  %v4421_v30 = vld [vmem:[%s4319_s22 + $0xe8] sm:$0xff]   ;;  %v4428_v32 = vld [vmem:[%s4319_s22 + $0xf0] sm:$0xff]   ;;  %v3970_v33 = vld [vmem:[%s4319_s22 + $0x78] sm:$0xff]  }
  0x1d   : > { %2128 = vmatprep.subr.bf16.mxu0 %v4265_v0  ;;  %v4435_v34 = vld [vmem:[%s4319_s22 + $0xf8] sm:$0xff]   ;;  %v3972_v35 = vld [vmem:[%s4379_s26] ss:$20 sps:$4 sm:$0xff]   ;;  %v3991_v41 = vld [vmem:[%s4319_s22 + $0x108] sm:$0xff]  }
  0x1e   : > { %v3975_v36 = vld [vmem:[%s4379_s26 + $0x8] ss:$20 sps:$4 sm:$0xff]   ;;  %v3978_v37 = vld [vmem:[%s4319_s22 + $0x100] sm:$0xff]   ;;  %v4008_v46 = vld [vmem:[%s4319_s22 + $0x110] sm:$0xff]  }
  0x1f   : > { %1800 = vmatpush1.bf16.msra.mxu1 %v3946_v7  ;;  %v3979_v38 = vld [vmem:[%s4379_s26 + $0x2c] ss:$20 sps:$4 sm:$0xff]   ;;  %v3981_v39 = vld [vmem:[%s4379_s26 + $0x34] ss:$20 sps:$4 sm:$0xff]   ;;  %v3984_v43 = vld [vmem:[%s4379_s26 + $0x30] ss:$20 sps:$4 sm:$0xff]  }
  0x20   : > { %2129 = vmatpush1.bf16.msra.mxu0 %v4343_v8  ;;  %1801 = vmatprep.subr.bf16.mxu1 %v4265_v0  ;;  %v3983_v42 = vld [vmem:[%s4379_s26 + $0x28] ss:$20 sps:$4 sm:$0xff]   ;;  %v3989_v48 = vld [vmem:[%s4379_s26 + $0x50] ss:$20 sps:$4 sm:$0xff]   ;;  %v3990_v49 = vld [vmem:[%s4379_s26 + $0x58] ss:$20 sps:$4 sm:$0xff]  }
  0x21   : > { %2130 = vmatprep.subr.bf16.mxu0 %v4265_v0  ;;  %v3985_v44 = vld [vmem:[%s4379_s26 + $0x54] ss:$20 sps:$4 sm:$0xff]   ;;  %v3987_v45 = vld [vmem:[%s4379_s26 + $0x5c] ss:$20 sps:$4 sm:$0xff]   ;;  %v3994_v51 = vld [vmem:[%s4379_s26 + $0x84] ss:$20 sps:$4 sm:$0xff]  }
  0x22   : > { %v4023_v47 = vld [vmem:[%s4319_s22 + $0x118] sm:$0xff]   ;;  %v4036_v52 = vld [vmem:[%s4319_s22 + $0x120] sm:$0xff]   ;;  %v4055_v53 = vld [vmem:[%s4319_s22 + $0x128] sm:$0xff]  }
  0x23   : > { %1802 = vmatpush1.bf16.msra.mxu1 %v3948_v9  ;;  %v3992_v50 = vld [vmem:[%s4379_s26 + $0x7c] ss:$20 sps:$4 sm:$0xff]   ;;  %v3996_v54 = vld [vmem:[%s4379_s26 + $0x78] ss:$20 sps:$4 sm:$0xff]   ;;  %v3997_v55 = vld [vmem:[%s4379_s26 + $0x80] ss:$20 sps:$4 sm:$0xff]  }
  0x24   : > { %2131 = vmatpush1.bf16.msra.mxu0 %v4350_v10  ;;  %1803 = vmatprep.subr.bf16.mxu1 %v4265_v0  ;;  %v3998_v56 = vld [vmem:[%s4379_s26 + $0xa4] ss:$20 sps:$4 sm:$0xff]   ;;  %v4000_v57 = vld [vmem:[%s4379_s26 + $0xac] ss:$20 sps:$4 sm:$0xff]   ;;  %v4068_v58 = vld [vmem:[%s4319_s22 + $0x130] sm:$0xff]  }
  0x25   : > { %2132 = vmatprep.subr.bf16.mxu0 %v4265_v0  ;;  %v4002_v59 = vld [vmem:[%s4379_s26 + $0xa0] ss:$20 sps:$4 sm:$0xff]   ;;  %v4081_v60 = vld [vmem:[%s4319_s22 + $0x138] sm:$0xff]   ;;  %v4015_v5 = vld [vmem:[%s4379_s26 + $0xf0] ss:$20 sps:$4 sm:$0xff]  }
  0x26   : > { %v4003_v61 = vld [vmem:[%s4379_s26 + $0xa8] ss:$20 sps:$4 sm:$0xff]   ;;  %v4004_v62 = vld [vmem:[%s4379_s26 + $0xcc] ss:$20 sps:$4 sm:$0xff]  }
  0x27   : > { %1804 = vmatpush1.bf16.msra.mxu1 %v3950_v11  ;;  %v4006_v63 = vld [vmem:[%s4379_s26 + $0xd4] ss:$20 sps:$4 sm:$0xff]   ;;  %v4017_v7 = vld [vmem:[%s4379_s26 + $0x11c] ss:$20 sps:$4 sm:$0xff]   ;;  %v4021_v9 = vld [vmem:[%s4379_s26 + $0x118] ss:$20 sps:$4 sm:$0xff]  }
  0x28   : > { %2133 = vmatpush1.bf16.msra.mxu0 %v4357_v12  ;;  %1805 = vmatprep.subr.bf16.mxu1 %v4265_v0  ;;  %v4009_v1 = vld [vmem:[%s4379_s26 + $0xc8] ss:$20 sps:$4 sm:$0xff]   ;;  %v4024_v11 = vld [vmem:[%s4379_s26 + $0x144] ss:$20 sps:$4 sm:$0xff]  }
  0x29   : > { %2134 = vmatprep.subr.bf16.mxu0 %v4265_v0  ;;  %v4011_v3 = vld [vmem:[%s4379_s26 + $0xf4] ss:$20 sps:$4 sm:$0xff]   ;;  %v4042_v21 = vld [vmem:[%s4379_s26 + $0x198] ss:$20 sps:$4 sm:$0xff]  }
  0x2a   : > { %v4037_v19 = vld [vmem:[%s4379_s26 + $0x194] ss:$20 sps:$4 sm:$0xff]  }
  0x2b   : > { %1806 = vmatpush1.bf16.msra.mxu1 %v3952_v13  ;;  %v4028_v13 = vld [vmem:[%s4379_s26 + $0x140] ss:$20 sps:$4 sm:$0xff]  }
  0x2c   : > { %2135 = vmatpush1.bf16.msra.mxu0 %v4364_v14  ;;  %1807 = vmatprep.subr.bf16.mxu1 %v4265_v0 }
  0x2d   : > { %2136 = vmatprep.subr.bf16.mxu0 %v4265_v0 }
  0x2f   : > { %1808 = vmatpush1.bf16.msra.mxu1 %v3954_v15  ;;  %v4030_v15 = vld [vmem:[%s4379_s26 + $0x16c] ss:$20 sps:$4 sm:$0xff]  }
  0x30   : > { %2137 = vmatpush1.bf16.msra.mxu0 %v4372_v16  ;;  %1809 = vmatprep.subr.bf16.mxu1 %v4265_v0 }
  0x31   : > { %2138 = vmatprep.subr.bf16.mxu0 %v4265_v0 }
  0x33   : > { %1810 = vmatpush1.bf16.msra.mxu1 %v3956_v17  ;;  %v4034_v17 = vld [vmem:[%s4379_s26 + $0x168] ss:$20 sps:$4 sm:$0xff]  }
  0x34   : > { %2139 = vmatpush1.bf16.msra.mxu0 %v4384_v18  ;;  %1811 = vmatprep.subr.bf16.mxu1 %v4265_v0 }
  0x35   : > { %2140 = vmatprep.subr.bf16.mxu0 %v4265_v0 }
  0x37   : > { %1812 = vmatpush1.bf16.msra.mxu1 %v3958_v20  ;;  %v4039_v20 = vld [vmem:[%s4379_s26 + $0x19c] ss:$20 sps:$4 sm:$0xff]  }
  0x38   : > { %2141 = vmatpush1.bf16.msra.mxu0 %v4393_v22  ;;  %1813 = vmatprep.subr.bf16.mxu1 %v4265_v0 }
  0x39   : > { %2142 = vmatprep.subr.bf16.mxu0 %v4265_v0 }
  0x3b   : > { %1814 = vmatpush1.bf16.msra.mxu1 %v3960_v23  ;;  %v4045_v23 = vld [vmem:[%s4379_s26 + $0x1c4] ss:$20 sps:$4 sm:$0xff]  }
  0x3c   : > { %2143 = vmatpush1.bf16.msra.mxu0 %v4400_v24  ;;  %1815 = vmatprep.subr.bf16.mxu1 %v4265_v0 }
  0x3d   : > { %2144 = vmatprep.subr.bf16.mxu0 %v4265_v0 }
  0x3f   : > { %1816 = vmatpush1.bf16.msra.mxu1 %v3962_v25  ;;  %v4048_v25 = vld [vmem:[%s4379_s26 + $0x1c0] ss:$20 sps:$4 sm:$0xff]  }
  0x40   : > { %2145 = vmatpush1.bf16.msra.mxu0 %v4407_v26  ;;  %1817 = vmatprep.subr.bf16.mxu1 %v4265_v0 }
  0x41   : > { %2146 = vmatprep.subr.bf16.mxu0 %v4265_v0 }
  0x43   : > { %1818 = vmatpush1.bf16.msra.mxu1 %v3964_v27  ;;  %v4051_v27 = vld [vmem:[%s4379_s26 + $0x1ec] ss:$20 sps:$4 sm:$0xff]  }
  0x44   : > { %2147 = vmatpush1.bf16.msra.mxu0 %v4414_v28  ;;  %1819 = vmatprep.subr.bf16.mxu1 %v4265_v0 }
  0x45   : > { %2148 = vmatprep.subr.bf16.mxu0 %v4265_v0 }
  0x47   : > { %1820 = vmatpush1.bf16.msra.mxu1 %v3966_v29  ;;  %v4054_v29 = vld [vmem:[%s4379_s26 + $0x1e8] ss:$20 sps:$4 sm:$0xff]  }
  0x48   : > { %2149 = vmatpush1.bf16.msra.mxu0 %v4421_v30  ;;  %1821 = vmatprep.subr.bf16.mxu1 %v4265_v0 }
  0x49   : > { %2150 = vmatprep.subr.bf16.mxu0 %v4265_v0 }
  0x4b   : > { %1822 = vmatpush1.bf16.msra.mxu1 %v3968_v31  ;;  %v4058_v31 = vld [vmem:[%s4379_s26 + $0x214] ss:$20 sps:$4 sm:$0xff]  }
  0x4c   : > { %2151 = vmatpush1.bf16.msra.mxu0 %v4428_v32  ;;  %1823 = vmatprep.subr.bf16.mxu1 %v4265_v0 }
  0x4d   : > { %2152 = vmatprep.subr.bf16.mxu0 %v4265_v0 }
  0x4f   : > { %1824 = vmatpush1.bf16.msra.mxu1 %v3970_v33  ;;  %v4061_v33 = vld [vmem:[%s4379_s26 + $0x210] ss:$20 sps:$4 sm:$0xff]  }
  0x50   : > { %2153 = vmatpush1.bf16.msra.mxu0 %v4435_v34  ;;  %3656 = vmatprep.subr.bf16.mxu1 %v4265_v0 }
  0x51   : > { %3492 = vmatprep.subr.bf16.mxu0 %v4266_v40 }
  0x52   : > { %1826 = vmatmul.mubr.bf16.vlgmr.msra.gmra.mrb[0].mxu1 %v3972_v35  ;;  %v4064_v35 = vld [vmem:[%s4379_s26 + $0x23c] ss:$20 sps:$4 sm:$0xff]  }
  0x53   : > { %2155 = vmatmul.mubr.bf16.vlgmr.msra.gmra.mrb[0].mxu0 %v3975_v36  ;;  %1833 = vmatprep.mubr.bf16.mxu1 %v3979_v38  ;;  %v4066_v36 = vld [vmem:[%s4379_s26 + $0x230] ss:$20 sps:$4 sm:$0xff]  }
  0x54   : > { %3493 = vmatpush3.bf16.msra.mxu0 %v3978_v37  ;;  %2162 = vmatprep.mubr.bf16.mxu0 %v3981_v39  ;;  %v4067_v37 = vld [vmem:[%s4379_s26 + $0x238] ss:$20 sps:$4 sm:$0xff]   ;;  %v4069_v38 = vld [vmem:[%s4379_s26 + $0x25c] ss:$20 sps:$4 sm:$0xff]  }
  0x55   : > { %3672 = vmatpush1.bf16.msra.mxu1 %v4323_v2  ;;  %3494 = vmatprep.subr.bf16.mxu0 %v4266_v40  ;;  %v4010_v2 = vld [vmem:[%s4379_s26 + $0xd0] ss:$20 sps:$4 sm:$0xff]  }
  0x56   : > { %3657 = vmatprep.subr.bf16.mxu1 %v4265_v0  ;;  %v4071_v39 = vld [vmem:[%s4379_s26 + $0x264] ss:$20 sps:$4 sm:$0xff]  }
  0x58   : > { %3495 = vmatpush3.bf16.msra.mxu0 %v3991_v41  ;;  %v4073_v41 = vld [vmem:[%s4379_s26 + $0x258] ss:$20 sps:$4 sm:$0xff]  }
  0x59   : > { %3673 = vmatpush1.bf16.msra.mxu1 %v4329_v4  ;;  %3496 = vmatprep.subr.bf16.mxu0 %v4266_v40  ;;  %v4013_v4 = vld [vmem:[%s4379_s26 + $0xfc] ss:$20 sps:$4 sm:$0xff]  }
  0x5a   : > { %1834 = vmatmul.mubr.bf16.gmra.mrb[4].mxu1 %v3983_v42  ;;  %3658 = vmatprep.subr.bf16.mxu1 %v4265_v0  ;;  %v4074_v42 = vld [vmem:[%s4379_s26 + $0x260] ss:$20 sps:$4 sm:$0xff]  }
  0x5b   : > { %2163 = vmatmul.mubr.bf16.gmra.mrb[4].mxu0 %v3984_v43  ;;  %1841 = vmatprep.mubr.bf16.mxu1 %v3985_v44  ;;  %v4075_v43 = vld [vmem:[%s4379_s26 + $0x284] ss:$20 sps:$4 sm:$0xff]   ;;  %v4077_v44 = vld [vmem:[%s4379_s26 + $0x28c] ss:$20 sps:$4 sm:$0xff]  }
  0x5c   : > { %2170 = vmatprep.mubr.bf16.mxu0 %v3987_v45  ;;  %3497 = vmatpush3.bf16.msra.mxu0 %v4008_v46  ;;  %v4079_v45 = vld [vmem:[%s4379_s26 + $0x280] ss:$20 sps:$4 sm:$0xff]   ;;  %v4080_v46 = vld [vmem:[%s4379_s26 + $0x288] ss:$20 sps:$4 sm:$0xff]  }
  0x5d   : > { %3674 = vmatpush1.bf16.msra.mxu1 %v4336_v6  ;;  %3498 = vmatprep.subr.bf16.mxu0 %v4266_v40  ;;  %v4016_v6 = vld [vmem:[%s4379_s26 + $0xf8] ss:$20 sps:$4 sm:$0xff]  }
  0x5e   : > { %3659 = vmatprep.subr.bf16.mxu1 %v4265_v0 }
  0x60   : > { %3499 = vmatpush3.bf16.msra.mxu0 %v4023_v47  ;;  %v4082_v47 = vld [vmem:[%s4379_s26 + $0x2ac] ss:$20 sps:$4 sm:$0xff]  }
  0x61   : > { %3675 = vmatpush1.bf16.msra.mxu1 %v4343_v8  ;;  %3500 = vmatprep.subr.bf16.mxu0 %v4266_v40  ;;  %v4019_v8 = vld [vmem:[%s4379_s26 + $0x124] ss:$20 sps:$4 sm:$0xff]  }
  0x62   : > { %1842 = vmatmul.mubr.bf16.gmra.mrb[8].mxu1 %v3989_v48  ;;  %3660 = vmatprep.subr.bf16.mxu1 %v4265_v0  ;;  %v4084_v48 = vld [vmem:[%s4379_s26 + $0x2b4] ss:$20 sps:$4 sm:$0xff]  }
  0x63   : > { %2171 = vmatmul.mubr.bf16.gmra.mrb[8].mxu0 %v3990_v49  ;;  %1849 = vmatprep.mubr.bf16.mxu1 %v3992_v50  ;;  %v4086_v49 = vld [vmem:[%s4379_s26 + $0x2a8] ss:$20 sps:$4 sm:$0xff]   ;;  %v4087_v50 = vld [vmem:[%s4379_s26 + $0x2b0] ss:$20 sps:$4 sm:$0xff]  }
  0x64   : > { %2178 = vmatprep.mubr.bf16.mxu0 %v3994_v51  ;;  %3501 = vmatpush3.bf16.msra.mxu0 %v4036_v52  ;;  %v4088_v51 = vld [vmem:[%s4379_s26 + $0x2d4] ss:$20 sps:$4 sm:$0xff]   ;;  %v4090_v52 = vld [vmem:[%s4379_s26 + $0x2dc] ss:$20 sps:$4 sm:$0xff]  }
  0x65   : > { %3676 = vmatpush1.bf16.msra.mxu1 %v4350_v10  ;;  %3502 = vmatprep.subr.bf16.mxu0 %v4266_v40  ;;  %v4022_v10 = vld [vmem:[%s4379_s26 + $0x120] ss:$20 sps:$4 sm:$0xff]  }
  0x66   : > { %3661 = vmatprep.subr.bf16.mxu1 %v4265_v0 }
  0x68   : > { %3503 = vmatpush3.bf16.msra.mxu0 %v4055_v53  ;;  %v4092_v53 = vld [vmem:[%s4379_s26 + $0x2d0] ss:$20 sps:$4 sm:$0xff]  }
  0x69   : > { %3677 = vmatpush1.bf16.msra.mxu1 %v4357_v12  ;;  %3504 = vmatprep.subr.bf16.mxu0 %v4266_v40  ;;  %v4026_v12 = vld [vmem:[%s4379_s26 + $0x14c] ss:$20 sps:$4 sm:$0xff]  }
  0x6a   : > { %1850 = vmatmul.mubr.bf16.gmra.mrb[12].mxu1 %v3996_v54  ;;  %3662 = vmatprep.subr.bf16.mxu1 %v4265_v0  ;;  %v4093_v54 = vld [vmem:[%s4379_s26 + $0x2d8] ss:$20 sps:$4 sm:$0xff]  }
  0x6b   : > { %2179 = vmatmul.mubr.bf16.gmra.mrb[12].mxu0 %v3997_v55  ;;  %1857 = vmatprep.mubr.bf16.mxu1 %v3998_v56  ;;  %v4094_v55 = vld [vmem:[%s4379_s26 + $0x2fc] ss:$20 sps:$4 sm:$0xff]   ;;  %v4096_v56 = vld [vmem:[%s4379_s26 + $0x2f8] ss:$20 sps:$4 sm:$0xff]  }
  0x6c   : > { %2186 = vmatprep.mubr.bf16.mxu0 %v4000_v57  ;;  %3505 = vmatpush3.bf16.msra.mxu0 %v4068_v58  ;;  %v4097_v57 = vld [vmem:[%s4379_s26 + $0x10] ss:$20 sps:$4 sm:$0xff]  }
  0x6d   : > { %3678 = vmatpush1.bf16.msra.mxu1 %v4364_v14  ;;  %3506 = vmatprep.subr.bf16.mxu0 %v4266_v40  ;;  %v4029_v14 = vld [vmem:[%s4379_s26 + $0x148] ss:$20 sps:$4 sm:$0xff]   ;;  %v4098_v58 = vld [vmem:[%s4379_s26 + $0x324] ss:$20 sps:$4 sm:$0xff]  }
  0x6e   : > { %3663 = vmatprep.subr.bf16.mxu1 %v4265_v0 }
  0x70   : > { %3507 = vmatpush3.bf16.msra.mxu0 %v4081_v60  ;;  %v4101_v60 = vld [vmem:[%s4379_s26 + $0x38] ss:$20 sps:$4 sm:$0xff]  }
  0x71   : > { %3679 = vmatpush1.bf16.msra.mxu1 %v4372_v16  ;;  %v4032_v16 = vld [vmem:[%s4379_s26 + $0x174] ss:$20 sps:$4 sm:$0xff]  }
  0x72   : > { %1858 = vmatmul.mubr.bf16.gmra.mrb[16].mxu1 %v4002_v59  ;;  %3664 = vmatprep.subr.bf16.mxu1 %v4265_v0  ;;  %v4100_v59 = vld [vmem:[%s4379_s26 + $0x320] ss:$20 sps:$4 sm:$0xff]  }
  0x73   : > { %2187 = vmatmul.mubr.bf16.gmra.mrb[16].mxu0 %v4003_v61  ;;  %1865 = vmatprep.mubr.bf16.mxu1 %v4004_v62  ;;  %v4102_v61 = vld [vmem:[%s4379_s26 + $0x34c] ss:$20 sps:$4 sm:$0xff]   ;;  %v4104_v62 = vld [vmem:[%s4379_s26 + $0x348] ss:$20 sps:$4 sm:$0xff]  }
  0x74   : > { %2194 = vmatprep.mubr.bf16.mxu0 %v4006_v63  ;;  %v4105_v63 = vld [vmem:[%s4379_s26 + $0x60] ss:$20 sps:$4 sm:$0xff]  }
  0x75   : > { %3680 = vmatpush1.bf16.msra.mxu1 %v4384_v18  ;;  %v4035_v18 = vld [vmem:[%s4379_s26 + $0x170] ss:$20 sps:$4 sm:$0xff]  }
  0x76   : > { %3665 = vmatprep.subr.bf16.mxu1 %v4265_v0 }
  0x79   : > { %3681 = vmatpush1.bf16.msra.mxu1 %v4393_v22  ;;  %v4043_v22 = vld [vmem:[%s4379_s26 + $0x1bc] ss:$20 sps:$4 sm:$0xff]  }
  0x7a   : > { %1866 = vmatmul.mubr.bf16.gmra.mrb[20].mxu1 %v4009_v1  ;;  %3666 = vmatprep.subr.bf16.mxu1 %v4265_v0  ;;  %v4106_v1 = vld [vmem:[%s4379_s26 + $0x374] ss:$20 sps:$4 sm:$0xff]  }
  0x7b   : > { %2195 = vmatmul.mubr.bf16.gmra.mrb[20].mxu0 %v4010_v2  ;;  %1873 = vmatprep.mubr.bf16.mxu1 %v4011_v3  ;;  %v4108_v2 = vld [vmem:[%s4379_s26 + $0x370] ss:$20 sps:$4 sm:$0xff]   ;;  %v4109_v3 = vld [vmem:[%s4379_s26 + $0x88] ss:$20 sps:$4 sm:$0xff]  }
  0x7c   : > { %2202 = vmatprep.mubr.bf16.mxu0 %v4013_v4  ;;  %v4110_v4 = vld [vmem:[%s4379_s26 + $0x39c] ss:$20 sps:$4 sm:$0xff]  }
  0x7d   : > { %3682 = vmatpush1.bf16.msra.mxu1 %v4400_v24  ;;  %v4047_v24 = vld [vmem:[%s4379_s26 + $0x1b8] ss:$20 sps:$4 sm:$0xff]  }
  0x7e   : > { %3667 = vmatprep.subr.bf16.mxu1 %v4265_v0 }
  0x81   : > { %3683 = vmatpush1.bf16.msra.mxu1 %v4407_v26  ;;  %v4049_v26 = vld [vmem:[%s4379_s26 + $0x1e4] ss:$20 sps:$4 sm:$0xff]  }
  0x82   : > { %1874 = vmatmul.mubr.bf16.gmra.mrb[24].mxu1 %v4015_v5  ;;  %3668 = vmatprep.subr.bf16.mxu1 %v4265_v0  ;;  %v4112_v5 = vld [vmem:[%s4379_s26 + $0x398] ss:$20 sps:$4 sm:$0xff]  }
  0x83   : > { %2203 = vmatmul.mubr.bf16.gmra.mrb[24].mxu0 %v4016_v6  ;;  %1881 = vmatprep.mubr.bf16.mxu1 %v4017_v7  ;;  %v4113_v6 = vld [vmem:[%s4379_s26 + $0xb0] ss:$20 sps:$4 sm:$0xff]  }
  0x84   : > { %2210 = vmatprep.mubr.bf16.mxu0 %v4019_v8  ;;  %v4114_v7 = vld [vmem:[%s4379_s26 + $0x3c4] ss:$20 sps:$4 sm:$0xff]   ;;  %v4116_v8 = vld [vmem:[%s4379_s26 + $0x3c0] ss:$20 sps:$4 sm:$0xff]  }
  0x85   : > { %3684 = vmatpush1.bf16.msra.mxu1 %v4414_v28  ;;  %v4053_v28 = vld [vmem:[%s4379_s26 + $0x1e0] ss:$20 sps:$4 sm:$0xff]  }
  0x86   : > { %3669 = vmatprep.subr.bf16.mxu1 %v4265_v0 }
  0x89   : > { %3685 = vmatpush1.bf16.msra.mxu1 %v4421_v30  ;;  %v4056_v30 = vld [vmem:[%s4379_s26 + $0x20c] ss:$20 sps:$4 sm:$0xff]  }
  0x8a   : > { %1882 = vmatmul.mubr.bf16.gmra.mrb[28].mxu1 %v4021_v9  ;;  %3670 = vmatprep.subr.bf16.mxu1 %v4265_v0  ;;  %v4117_v9 = vld [vmem:[%s4379_s26 + $0xd8] ss:$20 sps:$4 sm:$0xff]  }
  0x8b   : > { %2211 = vmatmul.mubr.bf16.gmra.mrb[28].mxu0 %v4022_v10  ;;  %1889 = vmatprep.mubr.bf16.mxu1 %v4024_v11  ;;  %v4118_v10 = vld [vmem:[%s4379_s26 + $0x3ec] ss:$20 sps:$4 sm:$0xff]   ;;  %v4120_v11 = vld [vmem:[%s4379_s26 + $0x3e8] ss:$20 sps:$4 sm:$0xff]  }
  0x8c   : > { %2218 = vmatprep.mubr.bf16.mxu0 %v4026_v12  ;;  %v4121_v12 = vld [vmem:[%s4379_s26 + $0x100] ss:$20 sps:$4 sm:$0xff]  }
  0x8d   : > { %3686 = vmatpush1.bf16.msra.mxu1 %v4428_v32  ;;  %v4060_v32 = vld [vmem:[%s4379_s26 + $0x208] ss:$20 sps:$4 sm:$0xff]  }
  0x8e   : > { %3671 = vmatprep.subr.bf16.mxu1 %v4265_v0  ;;  %v4041_v0 = vld [vmem:[%s4379_s26 + $0x190] ss:$20 sps:$4 sm:$0xff]  }
  0x91   : > { %3687 = vmatpush1.bf16.msra.mxu1 %v4435_v34  ;;  %v4062_v34 = vld [vmem:[%s4379_s26 + $0x234] ss:$20 sps:$4 sm:$0xff]  }
  0x92   : > { %1890 = vmatmul.mubr.bf16.gmra.mrb[32].mxu1 %v4028_v13  ;;  %v4122_v13 = vld [vmem:[%s4379_s26 + $0x414] ss:$20 sps:$4 sm:$0xff]  }
  0x93   : > { %2219 = vmatmul.mubr.bf16.gmra.mrb[32].mxu0 %v4029_v14  ;;  %1897 = vmatprep.mubr.bf16.mxu1 %v4030_v15  ;;  %v4124_v14 = vld [vmem:[%s4379_s26 + $0x410] ss:$20 sps:$4 sm:$0xff]   ;;  %v4125_v15 = vld [vmem:[%s4379_s26 + $0x128] ss:$20 sps:$4 sm:$0xff]  }
  0x94   : > { %2226 = vmatprep.mubr.bf16.mxu0 %v4032_v16  ;;  %v4126_v16 = vld [vmem:[%s4379_s26 + $0x43c] ss:$20 sps:$4 sm:$0xff]  }
  0x9a   : > { %1898 = vmatmul.mubr.bf16.gmra.mrb[36].mxu1 %v4034_v17 }
  0x9b   : > { %2227 = vmatmul.mubr.bf16.gmra.mrb[36].mxu0 %v4035_v18  ;;  %1905 = vmatprep.mubr.bf16.mxu1 %v4037_v19  ;;  %v4128_v18 = vld [vmem:[%s4379_s26 + $0x438] ss:$20 sps:$4 sm:$0xff]  }
  0x9c   : > { %2234 = vmatprep.mubr.bf16.mxu0 %v4039_v20  ;;  %v4129_v20 = vld [vmem:[%s4379_s26 + $0x150] ss:$20 sps:$4 sm:$0xff]  }
  0xa2   : > { %1906 = vmatmul.mubr.bf16.gmra.mrb[40].mxu1 %v4041_v0 }
  0xa3   : > { %2235 = vmatmul.mubr.bf16.gmra.mrb[40].mxu0 %v4042_v21  ;;  %1913 = vmatprep.mubr.bf16.mxu1 %v4043_v22  ;;  %v4130_v21 = vld [vmem:[%s4379_s26 + $0x464] ss:$20 sps:$4 sm:$0xff]  }
  0xa4   : > { %2242 = vmatprep.mubr.bf16.mxu0 %v4045_v23 }
  0xaa   : > { %1914 = vmatmul.mubr.bf16.gmra.mrb[44].mxu1 %v4047_v24  ;;  %v4132_v24 = vld [vmem:[%s4379_s26 + $0x460] ss:$20 sps:$4 sm:$0xff]  }
  0xab   : > { %2243 = vmatmul.mubr.bf16.gmra.mrb[44].mxu0 %v4048_v25  ;;  %1921 = vmatprep.mubr.bf16.mxu1 %v4049_v26  ;;  %v4133_v26 = vld [vmem:[%s4379_s26 + $0x178] ss:$20 sps:$4 sm:$0xff]  }
  0xac   : > { %2250 = vmatprep.mubr.bf16.mxu0 %v4051_v27 }
  0xb2   : > { %1922 = vmatmul.mubr.bf16.gmra.mrb[48].mxu1 %v4053_v28  ;;  %v4134_v28 = vld [vmem:[%s4379_s26 + $0x48c] ss:$20 sps:$4 sm:$0xff]  }
  0xb3   : > { %2251 = vmatmul.mubr.bf16.gmra.mrb[48].mxu0 %v4054_v29  ;;  %1929 = vmatprep.mubr.bf16.mxu1 %v4056_v30 }
  0xb4   : > { %2258 = vmatprep.mubr.bf16.mxu0 %v4058_v31  ;;  %v4136_v31 = vld [vmem:[%s4379_s26 + $0x488] ss:$20 sps:$4 sm:$0xff]  }
  0xba   : > { %1930 = vmatmul.mubr.bf16.gmra.mrb[52].mxu1 %v4060_v32 }
  0xbb   : > { %2259 = vmatmul.mubr.bf16.gmra.mrb[52].mxu0 %v4061_v33  ;;  %1937 = vmatprep.mubr.bf16.mxu1 %v4062_v34  ;;  %v4137_v33 = vld [vmem:[%s4379_s26 + $0x1a0] ss:$20 sps:$4 sm:$0xff]  }
  0xbc   : > { %2266 = vmatprep.mubr.bf16.mxu0 %v4064_v35  ;;  %v4138_v35 = vld [vmem:[%s4379_s26 + $0x4b4] ss:$20 sps:$4 sm:$0xff]  }
  0xc2   : > { %1938 = vmatmul.mubr.bf16.gmra.mrb[56].mxu1 %v4066_v36 }
  0xc3   : > { %2267 = vmatmul.mubr.bf16.gmra.mrb[56].mxu0 %v4067_v37  ;;  %1945 = vmatprep.mubr.bf16.mxu1 %v4069_v38  ;;  %v4140_v38 = vld [vmem:[%s4379_s26 + $0x4b0] ss:$20 sps:$4 sm:$0xff]  }
  0xc4   : > { %2274 = vmatprep.mubr.bf16.mxu0 %v4071_v39 }
  0xca   : > { %1946 = vmatmul.mubr.bf16.gmra.mrb[60].mxu1 %v4073_v41  ;;  %v4141_v41 = vld [vmem:[%s4379_s26 + $0x1c8] ss:$20 sps:$4 sm:$0xff]  }
  0xcb   : > { %2275 = vmatmul.mubr.bf16.gmra.mrb[60].mxu0 %v4074_v42  ;;  %1953 = vmatprep.mubr.bf16.mxu1 %v4075_v43  ;;  %v4142_v43 = vld [vmem:[%s4379_s26 + $0x4dc] ss:$20 sps:$4 sm:$0xff]  }
  0xcc   : > { %2282 = vmatprep.mubr.bf16.mxu0 %v4077_v44 }
  0xd2   : > { %1954 = vmatmul.mubr.bf16.gmra.mrb[64].mxu1 %v4079_v45 }
  0xd3   : > { %2283 = vmatmul.mubr.bf16.gmra.mrb[64].mxu0 %v4080_v46  ;;  %1961 = vmatprep.mubr.bf16.mxu1 %v4082_v47  ;;  %v4144_v46 = vld [vmem:[%s4379_s26 + $0x4d8] ss:$20 sps:$4 sm:$0xff]  }
  0xd4   : > { %2290 = vmatprep.mubr.bf16.mxu0 %v4084_v48  ;;  %v4145_v48 = vld [vmem:[%s4379_s26 + $0x1f0] ss:$20 sps:$4 sm:$0xff]  }
  0xda   : > { %1962 = vmatmul.mubr.bf16.gmra.mrb[68].mxu1 %v4086_v49 }
  0xdb   : > { %2291 = vmatmul.mubr.bf16.gmra.mrb[68].mxu0 %v4087_v50  ;;  %1969 = vmatprep.mubr.bf16.mxu1 %v4088_v51  ;;  %v4146_v50 = vld [vmem:[%s4379_s26 + $0x504] ss:$20 sps:$4 sm:$0xff]  }
  0xdc   : > { %2298 = vmatprep.mubr.bf16.mxu0 %v4090_v52 }
  0xe2   : > { %1970 = vmatmul.mubr.bf16.gmra.mrb[72].mxu1 %v4092_v53  ;;  %v4148_v53 = vld [vmem:[%s4379_s26 + $0x500] ss:$20 sps:$4 sm:$0xff]  }
  0xe3   : > { %2299 = vmatmul.mubr.bf16.gmra.mrb[72].mxu0 %v4093_v54  ;;  %1977 = vmatprep.mubr.bf16.mxu1 %v4094_v55  ;;  %v4149_v55 = vld [vmem:[%s4379_s26 + $0x218] ss:$20 sps:$4 sm:$0xff]  }
  0xe4   : > { %3508 = vmatprep.mubr.msk.bf16.mxu0 %vm4267_vm0, %v4266_v40 }
  0xea   : > { %1978 = vmatmul.mubr.bf16.gmra.mrb[76].mxu1 %v4096_v56 }
  0xeb   : > { %3509 = vmatmul.mubr.bf16.vlgmr.msra.gmra.mrb[0].mxu0 %v4097_v57  ;;  %1985 = vmatprep.mubr.bf16.mxu1 %v4098_v58  ;;  %v4150_v57 = vld [vmem:[%s4379_s26 + $0x52c] ss:$20 sps:$4 sm:$0xff]  }
  0xec   : > { %3512 = vmatprep.mubr.msk.bf16.mxu0 %vm4267_vm0, %v4266_v40 }
  0xf2   : > { %1986 = vmatmul.mubr.bf16.gmra.mrb[80].mxu1 %v4100_v59 }
  0xf3   : > { %3513 = vmatmul.mubr.bf16.gmra.mrb[4].mxu0 %v4101_v60  ;;  %1993 = vmatprep.mubr.bf16.mxu1 %v4102_v61  ;;  %v4152_v60 = vld [vmem:[%s4379_s26 + $0x528] ss:$20 sps:$4 sm:$0xff]  }
  0xf4   : > { %3516 = vmatprep.mubr.msk.bf16.mxu0 %vm4267_vm0, %v4266_v40 }
  0xfa   : > { %1994 = vmatmul.mubr.bf16.gmra.mrb[84].mxu1 %v4104_v62  ;;  %v4153_v62 = vld [vmem:[%s4379_s26 + $0x240] ss:$20 sps:$4 sm:$0xff]  }
  0xfb   : > { %3517 = vmatmul.mubr.bf16.gmra.mrb[8].mxu0 %v4105_v63  ;;  %2001 = vmatprep.mubr.bf16.mxu1 %v4106_v1  ;;  %v4154_v1 = vld [vmem:[%s4379_s26 + $0x554] ss:$20 sps:$4 sm:$0xff]  }
  0xfc   : > { %3520 = vmatprep.mubr.msk.bf16.mxu0 %vm4267_vm0, %v4266_v40 }
 0x102   : > { %2002 = vmatmul.mubr.bf16.gmra.mrb[88].mxu1 %v4108_v2 }
 0x103   : > { %3521 = vmatmul.mubr.bf16.gmra.mrb[12].mxu0 %v4109_v3  ;;  %2009 = vmatprep.mubr.bf16.mxu1 %v4110_v4  ;;  %v4156_v4 = vld [vmem:[%s4379_s26 + $0x550] ss:$20 sps:$4 sm:$0xff]  }
 0x104   : > { %3524 = vmatprep.mubr.msk.bf16.mxu0 %vm4267_vm0, %v4266_v40 }
 0x10a   : > { %2010 = vmatmul.mubr.bf16.gmra.mrb[92].mxu1 %v4112_v5 }
 0x10b   : > { %3525 = vmatmul.mubr.bf16.gmra.mrb[16].mxu0 %v4113_v6  ;;  %2017 = vmatprep.mubr.bf16.mxu1 %v4114_v7  ;;  %v4157_v6 = vld [vmem:[%s4379_s26 + $0x268] ss:$20 sps:$4 sm:$0xff]  }
 0x10c   : > { %3528 = vmatprep.mubr.msk.bf16.mxu0 %vm4267_vm0, %v4266_v40 }
 0x112   : > { %2018 = vmatmul.mubr.bf16.gmra.mrb[96].mxu1 %v4116_v8  ;;  %v4158_v8 = vld [vmem:[%s4379_s26 + $0x57c] ss:$20 sps:$4 sm:$0xff]  }
 0x113   : > { %3529 = vmatmul.mubr.bf16.gmra.mrb[20].mxu0 %v4117_v9  ;;  %2025 = vmatprep.mubr.bf16.mxu1 %v4118_v10 }
 0x114   : > { %3532 = vmatprep.mubr.msk.bf16.mxu0 %vm4267_vm0, %v4266_v40 }
 0x11a   : > { %2026 = vmatmul.mubr.bf16.gmra.mrb[100].mxu1 %v4120_v11  ;;  %v4160_v11 = vld [vmem:[%s4379_s26 + $0x578] ss:$20 sps:$4 sm:$0xff]  }
 0x11b   : > { %3533 = vmatmul.mubr.bf16.gmra.mrb[24].mxu0 %v4121_v12  ;;  %2033 = vmatprep.mubr.bf16.mxu1 %v4122_v13  ;;  %v4161_v13 = vld [vmem:[%s4379_s26 + $0x290] ss:$20 sps:$4 sm:$0xff]  }
 0x11c   : > { %3536 = vmatprep.mubr.msk.bf16.mxu0 %vm4267_vm0, %v4266_v40 }
 0x122   : > { %2034 = vmatmul.mubr.bf16.gmra.mrb[104].mxu1 %v4124_v14 }
 0x123   : > { %3537 = vmatmul.mubr.bf16.gmra.mrb[28].mxu0 %v4125_v15  ;;  %2041 = vmatprep.mubr.bf16.mxu1 %v4126_v16  ;;  %v4162_v15 = vld [vmem:[%s4379_s26 + $0x5a4] ss:$20 sps:$4 sm:$0xff]  }
 0x124   : > { %3540 = vmatprep.mubr.msk.bf16.mxu0 %vm4267_vm0, %v4266_v40 }
 0x125   : > { %v4604_v17 = vpop.f32.mrb[0].mxu1 }
 0x126   : > { %v1829_v19 = vpop.f32.mrb[1].mxu1 }
 0x127   : > { %v4608_v0 = vpop.f32.mrb[2].mxu1  ;;  %v4164_v19 = vld [vmem:[%s4379_s26 + $0x5a0] ss:$20 sps:$4 sm:$0xff]  }
 0x128   : > { %v1832_v22 = vpop.f32.mrb[3].mxu1 }
 0x12a   : > { %2042 = vmatmul.mubr.bf16.gmra.mrb[108].mxu1 %v4128_v18 }
 0x12b   : > { %3541 = vmatmul.mubr.bf16.gmra.mrb[32].mxu0 %v4129_v20  ;;  %2049 = vmatprep.mubr.bf16.mxu1 %v4130_v21  ;;  %v4165_v21 = vld [vmem:[%s4379_s26 + $0x2b8] ss:$20 sps:$4 sm:$0xff]  }
 0x12c   : > { %3544 = vmatprep.mubr.msk.bf16.mxu0 %vm4267_vm0, %v4266_v40 }
 0x12d   : > { %v4613_v23 = vpop.f32.mrb[4].mxu1 }
 0x12e   : > { %v1837_v25 = vpop.f32.mrb[5].mxu1 }
 0x12f   : > { %v4617_v27 = vpop.f32.mrb[6].mxu1 }
 0x130   : > { %v1840_v29 = vpop.f32.mrb[7].mxu1 }
 0x132   : > { %2050 = vmatmul.mubr.bf16.gmra.mrb[112].mxu1 %v4132_v24  ;;  %v4168_v24 = vld [vmem:[%s4379_s26 + $0x304] ss:$20 sps:$4 sm:$0xff]  }
 0x133   : > { %3545 = vmatmul.mubr.bf16.gmra.mrb[36].mxu0 %v4133_v26  ;;  %2057 = vmatprep.mubr.bf16.mxu1 %v4134_v28  ;;  %v4166_v28 = vld [vmem:[%s4379_s26 + $0x300] ss:$20 sps:$4 sm:$0xff]  }
 0x134   : > { %3548 = vmatprep.mubr.msk.bf16.mxu0 %vm4267_vm0, %v4266_v40 }
 0x135   : > { %v4622_v30 = vpop.f32.mrb[8].mxu1 }
 0x136   : > { %v1845_v32 = vpop.f32.mrb[9].mxu1 }
 0x137   : > { %v4626_v34 = vpop.f32.mrb[10].mxu1 }
 0x138   : > { %v1848_v36 = vpop.f32.mrb[11].mxu1 }
 0x13a   : > { %2058 = vmatmul.mubr.bf16.gmra.mrb[116].mxu1 %v4136_v31  ;;  %v4169_v31 = vld [vmem:[%s4379_s26 + $0x2e0] ss:$20 sps:$4 sm:$0xff]  }
 0x13b   : > { %3549 = vmatmul.mubr.bf16.gmra.mrb[40].mxu0 %v4137_v33  ;;  %2065 = vmatprep.mubr.bf16.mxu1 %v4138_v35  ;;  %v4170_v33 = vld [vmem:[%s4379_s26 + $0x32c] ss:$20 sps:$4 sm:$0xff]  }
 0x13c   : > { %3552 = vmatprep.mubr.msk.bf16.mxu0 %vm4267_vm0, %v4266_v40 }
 0x13d   : > { %v4631_v37 = vpop.f32.mrb[12].mxu1 }
 0x13e   : > { %v1853_v39 = vpop.f32.mrb[13].mxu1 }
 0x13f   : > { %v4635_v42 = vpop.f32.mrb[14].mxu1 }
 0x140   : > { %v1856_v44 = vpop.f32.mrb[15].mxu1 }
 0x141   : > { %v4174_v44 = vld [vmem:[%s4379_s26 + $0x354] ss:$20 sps:$4 sm:$0xff]  }
 0x142   : > { %2066 = vmatmul.mubr.bf16.gmra.mrb[120].mxu1 %v4140_v38  ;;  %v4172_v38 = vld [vmem:[%s4379_s26 + $0x328] ss:$20 sps:$4 sm:$0xff]  }
 0x143   : > { %3553 = vmatmul.mubr.bf16.gmra.mrb[44].mxu0 %v4141_v41  ;;  %2073 = vmatprep.mubr.bf16.mxu1 %v4142_v43  ;;  %v4173_v41 = vld [vmem:[%s4379_s26 + $0x308] ss:$20 sps:$4 sm:$0xff]  }
 0x144   : > { %3556 = vmatprep.mubr.msk.bf16.mxu0 %vm4267_vm0, %v4266_v40 }
 0x145   : > { %v4640_v45 = vpop.f32.mrb[16].mxu1 }
 0x146   : > { %v1861_v47 = vpop.f32.mrb[17].mxu1 }
 0x147   : > { %v4644_v49 = vpop.f32.mrb[18].mxu1 }
 0x148   : > { %v1864_v51 = vpop.f32.mrb[19].mxu1 }
 0x149   : > { %v4177_v51 = vld [vmem:[%s4379_s26 + $0x330] ss:$20 sps:$4 sm:$0xff]  }
 0x14a   : > { %2074 = vmatmul.mubr.bf16.gmra.mrb[124].mxu1 %v4144_v46 }
 0x14b   : > { %3557 = vmatmul.mubr.bf16.gmra.mrb[48].mxu0 %v4145_v48  ;;  %2081 = vmatprep.mubr.bf16.mxu1 %v4146_v50  ;;  %v4176_v48 = vld [vmem:[%s4379_s26 + $0x350] ss:$20 sps:$4 sm:$0xff]  }
 0x14c   : > { %3560 = vmatprep.mubr.msk.bf16.mxu0 %vm4267_vm0, %v4266_v40 }
 0x14d   : > { %v4649_v52 = vpop.f32.mrb[20].mxu1 }
 0x14e   : > { %v1869_v54 = vpop.f32.mrb[21].mxu1 }
 0x14f   : > { %v4653_v56 = vpop.f32.mrb[22].mxu1  ;;  %v4178_v54 = vld [vmem:[%s4379_s26 + $0x37c] ss:$20 sps:$4 sm:$0xff]  }
 0x150   : > { %v1872_v58 = vpop.f32.mrb[23].mxu1 }
 0x151   : > { %v4180_v58 = vld [vmem:[%s4379_s26 + $0x378] ss:$20 sps:$4 sm:$0xff]  }
 0x152   : > { %2082 = vmatmul.mubr.bf16.gmra.mrb[128].mxu1 %v4148_v53 }
 0x153   : > { %3561 = vmatmul.mubr.bf16.gmra.mrb[52].mxu0 %v4149_v55  ;;  %2089 = vmatprep.mubr.bf16.mxu1 %v4150_v57 }
 0x154   : > { %3564 = vmatprep.mubr.msk.bf16.mxu0 %vm4267_vm0, %v4266_v40 }
 0x155   : > { %v4658_v59 = vpop.f32.mrb[24].mxu1 }
 0x156   : > { %v1877_v61 = vpop.f32.mrb[25].mxu1 }
 0x157   : > { %v4662_v63 = vpop.f32.mrb[26].mxu1  ;;  %v4181_v61 = vld [vmem:[%s4379_s26 + $0x358] ss:$20 sps:$4 sm:$0xff]  }
 0x158   : > { %v1880_v2 = vpop.f32.mrb[27].mxu1 }
 0x15a   : > { %2090 = vmatmul.mubr.bf16.gmra.mrb[132].mxu1 %v4152_v60 }
 0x15b   : > { %3565 = vmatmul.mubr.bf16.gmra.mrb[56].mxu0 %v4153_v62  ;;  %2097 = vmatprep.mubr.bf16.mxu1 %v4154_v1  ;;  %v4182_v1 = vld [vmem:[%s4379_s26 + $0x3a4] ss:$20 sps:$4 sm:$0xff]  }
 0x15c   : > { %3568 = vmatprep.mubr.msk.bf16.mxu0 %vm4267_vm0, %v4266_v40 }
 0x15d   : > { %v4667_v3 = vpop.f32.mrb[28].mxu1 }
 0x15e   : > { %v1885_v5 = vpop.f32.mrb[29].mxu1 }
 0x15f   : > { %v4671_v7 = vpop.f32.mrb[30].mxu1  ;;  %v4184_v5 = vld [vmem:[%s4379_s26 + $0x3a0] ss:$20 sps:$4 sm:$0xff]  }
 0x160   : > { %v1888_v9 = vpop.f32.mrb[31].mxu1 }
 0x162   : > { %2098 = vmatmul.mubr.bf16.gmra.mrb[136].mxu1 %v4156_v4 }
 0x163   : > { %3569 = vmatmul.mubr.bf16.gmra.mrb[60].mxu0 %v4157_v6  ;;  %2105 = vmatprep.mubr.bf16.mxu1 %v4158_v8  ;;  %v4185_v8 = vld [vmem:[%s4379_s26 + $0x380] ss:$20 sps:$4 sm:$0xff]  }
 0x164   : > { %3572 = vmatprep.mubr.msk.bf16.mxu0 %vm4267_vm0, %v4266_v40 }
 0x165   : > { %v4676_v10 = vpop.f32.mrb[32].mxu1 }
 0x166   : > { %v1893_v12 = vpop.f32.mrb[33].mxu1 }
 0x167   : > { %v4680_v14 = vpop.f32.mrb[34].mxu1 }
 0x168   : > { %v1896_v16 = vpop.f32.mrb[35].mxu1 }
 0x16a   : > { %2106 = vmatmul.mubr.bf16.gmra.mrb[140].mxu1 %v4160_v11  ;;  %v4186_v11 = vld [vmem:[%s4379_s26 + $0x3cc] ss:$20 sps:$4 sm:$0xff]  }
 0x16b   : > { %3573 = vmatmul.mubr.bf16.gmra.mrb[64].mxu0 %v4161_v13  ;;  %2113 = vmatprep.mubr.bf16.mxu1 %v4162_v15  ;;  %v4188_v15 = vld [vmem:[%s4379_s26 + $0x3c8] ss:$20 sps:$4 sm:$0xff]  }
 0x16c   : > { %3576 = vmatprep.mubr.msk.bf16.mxu0 %vm4267_vm0, %v4266_v40 }
 0x16d   : > { %v4685_v18 = vpop.f32.mrb[36].mxu1 }
 0x16e   : > { %v1901_v20 = vpop.f32.mrb[37].mxu1 }
 0x16f   : > { %v4689_v22 = vpop.f32.mrb[38].mxu1 }
 0x170   : > { %v1904_v25 = vpop.f32.mrb[39].mxu1 }
 0x172   : > { %2114 = vmatmul.mubr.bf16.gmra.mrb[144].mxu1 %v4164_v19  ;;  %v4189_v19 = vld [vmem:[%s4379_s26 + $0x3a8] ss:$20 sps:$4 sm:$0xff]  }
 0x173   : > { %3577 = vmatmul.mubr.bf16.gmra.mrb[68].mxu0 %v4165_v21  ;;  %2306 = vmatprep.mubr.bf16.mxu1 %v4168_v24  ;;  %v4190_v21 = vld [vmem:[%s4379_s26 + $0x3f4] ss:$20 sps:$4 sm:$0xff]  }
 0x174   : > { %3580 = vmatprep.mubr.msk.bf16.mxu0 %vm4267_vm0, %v4266_v40 }
 0x175   : > { %v4694_v26 = vpop.f32.mrb[40].mxu1 }
 0x176   : > { %v1909_v29 = vpop.f32.mrb[41].mxu1 }
 0x177   : > { %v4698_v32 = vpop.f32.mrb[42].mxu1 }
 0x178   : > { %v1912_v35 = vpop.f32.mrb[43].mxu1 }
 0x179   : > { %v4194_v35 = vld [vmem:[%s4379_s26 + $0x41c] ss:$20 sps:$4 sm:$0xff]  }
 0x17a   : > { %2307 = vmatmul.mubr.bf16.vlgmr.msra.gmra.mrb[76].mxu1 %v4166_v28  ;;  %v4192_v28 = vld [vmem:[%s4379_s26 + $0x3f0] ss:$20 sps:$4 sm:$0xff]  }
 0x17b   : > { %3581 = vmatmul.mubr.bf16.gmra.mrb[72].mxu0 %v4169_v31  ;;  %2314 = vmatprep.mubr.bf16.mxu1 %v4170_v33  ;;  %v4193_v31 = vld [vmem:[%s4379_s26 + $0x3d0] ss:$20 sps:$4 sm:$0xff]  }
 0x17c   : > { %3584 = vmatprep.mubr.msk.bf16.mxu0 %vm4267_vm0, %v4266_v40 }
 0x17d   : > { %v4703_v36 = vpop.f32.mrb[44].mxu1 }
 0x17e   : > { %v1917_v39 = vpop.f32.mrb[45].mxu1 }
 0x17f   : > { %v4707_v43 = vpop.f32.mrb[46].mxu1 }
 0x180   : > { %v1920_v46 = vpop.f32.mrb[47].mxu1 }
 0x181   : > { %v4197_v46 = vld [vmem:[%s4379_s26 + $0x3f8] ss:$20 sps:$4 sm:$0xff]  }
 0x182   : > { %2315 = vmatmul.mubr.bf16.gmra.mrb[80].mxu1 %v4172_v38 }
 0x183   : > { %3585 = vmatmul.mubr.bf16.gmra.mrb[76].mxu0 %v4173_v41  ;;  %2322 = vmatprep.mubr.bf16.mxu1 %v4174_v44  ;;  %v4196_v41 = vld [vmem:[%s4379_s26 + $0x418] ss:$20 sps:$4 sm:$0xff]  }
 0x184   : > { %3588 = vmatprep.mubr.msk.bf16.mxu0 %vm4267_vm0, %v4266_v40 }
 0x185   : > { %v4712_v47 = vpop.f32.mrb[48].mxu1 }
 0x186   : > { %v1925_v50 = vpop.f32.mrb[49].mxu1 }
 0x187   : > { %v4716_v53 = vpop.f32.mrb[50].mxu1  ;;  %v4198_v50 = vld [vmem:[%s4379_s26 + $0x444] ss:$20 sps:$4 sm:$0xff]  }
 0x188   : > { %v1928_v55 = vpop.f32.mrb[51].mxu1 }
 0x189   : > { %v4200_v55 = vld [vmem:[%s4379_s26 + $0x440] ss:$20 sps:$4 sm:$0xff]  }
 0x18a   : > { %2323 = vmatmul.mubr.bf16.gmra.mrb[84].mxu1 %v4176_v48 }
 0x18b   : > { %3589 = vmatmul.mubr.bf16.gmra.mrb[80].mxu0 %v4177_v51  ;;  %2330 = vmatprep.mubr.bf16.mxu1 %v4178_v54 }
 0x18c   : > { %3592 = vmatprep.mubr.msk.bf16.mxu0 %vm4267_vm0, %v4266_v40 }
 0x18d   : > { %v4721_v57 = vpop.f32.mrb[52].mxu1 }
 0x18e   : > { %v1933_v60 = vpop.f32.mrb[53].mxu1 }
 0x18f   : > { %v4725_v62 = vpop.f32.mrb[54].mxu1  ;;  %v4201_v60 = vld [vmem:[%s4379_s26 + $0x420] ss:$20 sps:$4 sm:$0xff]  }
 0x190   : > { %v1936_v2 = vpop.f32.mrb[55].mxu1 }
 0x192   : > { %2331 = vmatmul.mubr.bf16.gmra.mrb[88].mxu1 %v4180_v58 }
 0x193   : > { %3593 = vmatmul.mubr.bf16.gmra.mrb[84].mxu0 %v4181_v61  ;;  %2338 = vmatprep.mubr.bf16.mxu1 %v4182_v1  ;;  %v4202_v1 = vld [vmem:[%s4379_s26 + $0x46c] ss:$20 sps:$4 sm:$0xff]  }
 0x194   : > { %3596 = vmatprep.mubr.msk.bf16.mxu0 %vm4267_vm0, %v4266_v40 }
 0x195   : > { %v4730_v4 = vpop.f32.mrb[56].mxu1 }
 0x196   : > { %v1941_v6 = vpop.f32.mrb[57].mxu1 }
 0x197   : > { %v4734_v9 = vpop.f32.mrb[58].mxu1  ;;  %v4788_v6 = vld [vmem:[%s4777_s29] ss:$0 sm:$0xff] }
 0x198   : > { %v1944_v12 = vpop.f32.mrb[59].mxu1 }
 0x19a   : > { %2339 = vmatmul.mubr.bf16.gmra.mrb[92].mxu1 %v4184_v5 }
 0x19b   : > { %3597 = vmatmul.mubr.bf16.gmra.mrb[88].mxu0 %v4185_v8  ;;  %2346 = vmatprep.mubr.bf16.mxu1 %v4186_v11  ;;  %v4204_v8 = vld [vmem:[%s4379_s26 + $0x468] ss:$20 sps:$4 sm:$0xff]  }
 0x19c   : > { %3600 = vmatprep.mubr.msk.bf16.mxu0 %vm4267_vm0, %v4266_v40 }
 0x19d   : > { %v4739_v13 = vpop.f32.mrb[60].mxu1 }
 0x19e   : > { %v1949_v16 = vpop.f32.mrb[61].mxu1 }
 0x19f   : > { %v4743_v20 = vpop.f32.mrb[62].mxu1  ;;  %v4206_v16 = vld [vmem:[%s4379_s26 + $0x494] ss:$20 sps:$4 sm:$0xff]  }
 0x1a0   : > { %v1952_v24 = vpop.f32.mrb[63].mxu1 }
 0x1a2   : > { %2347 = vmatmul.mubr.bf16.gmra.mrb[96].mxu1 %v4188_v15  ;;  %v4205_v15 = vld [vmem:[%s4379_s26 + $0x448] ss:$20 sps:$4 sm:$0xff]  }
 0x1a3   : > { %3601 = vmatmul.mubr.bf16.gmra.mrb[92].mxu0 %v4189_v19  ;;  %2354 = vmatprep.mubr.bf16.mxu1 %v4190_v21  ;;  %v4796_v19 = vld [vmem:[%s4785_s6] ss:$0 sm:$0xff] }
 0x1a4   : > { %3604 = vmatprep.mubr.msk.bf16.mxu0 %vm4267_vm0, %v4266_v40 }
 0x1a5   : > { %v4748_v25 = vpop.f32.mrb[64].mxu1 }
 0x1a6   : > { %v1957_v29 = vpop.f32.mrb[65].mxu1 }
 0x1a7   : > { %v4752_v33 = vpop.f32.mrb[66].mxu1 }
 0x1a8   : > { %v1960_v38 = vpop.f32.mrb[67].mxu1 }
 0x1aa   : > { %2355 = vmatmul.mubr.bf16.gmra.mrb[100].mxu1 %v4192_v28 }
 0x1ab   : > { %3605 = vmatmul.mubr.bf16.gmra.mrb[96].mxu0 %v4193_v31  ;;  %2362 = vmatprep.mubr.bf16.mxu1 %v4194_v35 }
 0x1ac   : > { %3608 = vmatprep.mubr.msk.bf16.mxu0 %vm4267_vm0, %v4266_v40 }
 0x1ad   : > { %v4757_v39 = vpop.f32.mrb[68].mxu1 }
 0x1ae   : > { %v1965_v44 = vpop.f32.mrb[69].mxu1 }
 0x1af   : > { %v4761_v48 = vpop.f32.mrb[70].mxu1 }
 0x1b0   : > { %v1968_v51 = vpop.f32.mrb[71].mxu1 }
 0x1b1   : > { %v4209_v51 = vld [vmem:[%s4379_s26 + $0x470] ss:$20 sps:$4 sm:$0xff]  }
 0x1b2   : > { %2363 = vmatmul.mubr.bf16.gmra.mrb[104].mxu1 %v4196_v41  ;;  %v4208_v41 = vld [vmem:[%s4379_s26 + $0x490] ss:$20 sps:$4 sm:$0xff]  }
 0x1b3   : > { %3609 = vmatmul.mubr.bf16.gmra.mrb[100].mxu0 %v4197_v46  ;;  %2370 = vmatprep.mubr.bf16.mxu1 %v4198_v50 }
 0x1b4   : > { %3612 = vmatprep.mubr.msk.bf16.mxu0 %vm4267_vm0, %v4266_v40 }
 0x1b5   : > { %v4766_v54 = vpop.f32.mrb[72].mxu1 }
 0x1b6   : > { %v1973_v58 = vpop.f32.mrb[73].mxu1 }
 0x1b7   : > { %v4770_v61 = vpop.f32.mrb[74].mxu1 }
 0x1b8   : > { %v1976_v2 = vpop.f32.mrb[75].mxu1 }
 0x1ba   : > { %2371 = vmatmul.mubr.bf16.gmra.mrb[108].mxu1 %v4200_v55  ;;  %v4210_v55 = vld [vmem:[%s4379_s26 + $0x4bc] ss:$20 sps:$4 sm:$0xff]  }
 0x1bb   : > { %3613 = vmatmul.mubr.bf16.gmra.mrb[104].mxu0 %v4201_v60  ;;  %2378 = vmatprep.mubr.bf16.mxu1 %v4202_v1 }
 0x1bc   : > { %3616 = vmatprep.mubr.msk.bf16.mxu0 %vm4267_vm0, %v4266_v40 }
 0x1be   : > { %v2485_v5 = vpop.f32.mrb[0].mxu0 }
 0x1bf   : > { %v3688_v11 = vadd.f32 %v2485_v5, %v4604_v17  ;;  %v3510_v12 = vpop.f32.mrb[1].mxu0 }
 0x1c0   : > { %v2488_v21 = vpop.f32.mrb[2].mxu0 }
 0x1c1   : > { %v2787_v24 = vmul.f32 %v3688_v11, %v4788_v6  ;;  %v3689_v28 = vadd.f32 %v2488_v21, %v4608_v0  ;;  %v3511_v29 = vpop.f32.mrb[3].mxu0 }
 0x1c2   : > { %2379 = vmatmul.mubr.bf16.gmra.mrb[112].mxu1 %v4204_v8 }
 0x1c3   : > { %v2868_v31 = vadd.f32 %v4796_v19, %v2787_v24  ;;  %v2788_v17 = vmul.f32 %v3689_v28, %v4788_v6  ;;  %3617 = vmatmul.mubr.bf16.gmra.mrb[108].mxu0 %v4205_v15  ;;  %2386 = vmatprep.mubr.bf16.mxu1 %v4206_v16  ;;  %v4212_v15 = vld [vmem:[%s4379_s26 + $0x4b8] ss:$20 sps:$4 sm:$0xff]  }
 0x1c4   : > { %3620 = vmatprep.mubr.msk.bf16.mxu0 %vm4267_vm0, %v4266_v40  ;;  %v4213_v24 = vld [vmem:[%s4379_s26 + $0x498] ss:$20 sps:$4 sm:$0xff]  }
 0x1c5   : > { %v2942_v0 = vmax.f32 %v2868_v31, 0.0  ;;  %v2869_v35 = vadd.f32 %v4796_v19, %v2788_v17  ;;  %v4214_v28 = vld [vmem:[%s4379_s26 + $0x4e4] ss:$20 sps:$4 sm:$0xff]  }
 0x1c6   : > { %v2493_v38 = vpop.f32.mrb[4].mxu0 }
 0x1c7   : > { %3016 = vst [vmem:[%s4805_s10] sm:$0xff] %v2942_v0  ;;  %v2943_v44 = vmax.f32 %v2869_v35, 0.0  ;;  %v3690_v46 = vadd.f32 %v2493_v38, %v4613_v23  ;;  %v3514_v50 = vpop.f32.mrb[5].mxu0 }
 0x1c8   : > { %v2496_v58 = vpop.f32.mrb[6].mxu0 }
 0x1c9   : > { %3017 = vst [vmem:[%s4805_s10 + $0x8] sm:$0xff] %v2943_v44  ;;  %v2789_v60 = vmul.f32 %v3690_v46, %v4788_v6  ;;  %v3691_v1 = vadd.f32 %v2496_v58, %v4617_v27  ;;  %v3515_v2 = vpop.f32.mrb[7].mxu0  ;;  %v4216_v46 = vld [vmem:[%s4379_s26 + $0x4e0] ss:$20 sps:$4 sm:$0xff]  }
 0x1ca   : > { %2387 = vmatmul.mubr.bf16.gmra.mrb[116].mxu1 %v4208_v41  ;;  %v4218_v58 = vld [vmem:[%s4379_s26 + $0x50c] ss:$20 sps:$4 sm:$0xff]  }
 0x1cb   : > { %v2870_v5 = vadd.f32 %v4796_v19, %v2789_v60  ;;  %v2790_v23 = vmul.f32 %v3691_v1, %v4788_v6  ;;  %3621 = vmatmul.mubr.bf16.gmra.mrb[112].mxu0 %v4209_v51  ;;  %2394 = vmatprep.mubr.bf16.mxu1 %v4210_v55  ;;  %v4217_v55 = vld [vmem:[%s4379_s26 + $0x4c0] ss:$20 sps:$4 sm:$0xff]  }
 0x1cc   : > { %3624 = vmatprep.mubr.msk.bf16.mxu0 %vm4267_vm0, %v4266_v40 }
 0x1cd   : > { %v2944_v8 = vmax.f32 %v2870_v5, 0.0  ;;  %v2871_v11 = vadd.f32 %v4796_v19, %v2790_v23 }
 0x1ce   : > { %v2501_v12 = vpop.f32.mrb[8].mxu0 }
 0x1cf   : > { %3018 = vst [vmem:[%s4805_s10 + $0x10] sm:$0xff] %v2944_v8  ;;  %v2945_v27 = vmax.f32 %v2871_v11, 0.0  ;;  %v3692_v16 = vadd.f32 %v2501_v12, %v4622_v30  ;;  %v3518_v21 = vpop.f32.mrb[9].mxu0 }
 0x1d0   : > { %v2504_v29 = vpop.f32.mrb[10].mxu0  ;;  %v4221_v21 = vld [vmem:[%s4379_s26 + $0x4e8] ss:$20 sps:$4 sm:$0xff]  }
 0x1d1   : > { %3019 = vst [vmem:[%s4805_s10 + $0x18] sm:$0xff] %v2945_v27  ;;  %v2791_v31 = vmul.f32 %v3692_v16, %v4788_v6  ;;  %v3693_v17 = vadd.f32 %v2504_v29, %v4626_v34  ;;  %v3519_v0 = vpop.f32.mrb[11].mxu0 }
 0x1d2   : > { %2395 = vmatmul.mubr.bf16.gmra.mrb[120].mxu1 %v4212_v15  ;;  %v4220_v15 = vld [vmem:[%s4379_s26 + $0x508] ss:$20 sps:$4 sm:$0xff]  }
 0x1d3   : > { %v2872_v35 = vadd.f32 %v4796_v19, %v2791_v31  ;;  %v2792_v30 = vmul.f32 %v3693_v17, %v4788_v6  ;;  %3625 = vmatmul.mubr.bf16.gmra.mrb[116].mxu0 %v4213_v24  ;;  %2402 = vmatprep.mubr.bf16.mxu1 %v4214_v28  ;;  %v4222_v24 = vld [vmem:[%s4379_s26 + $0x534] ss:$20 sps:$4 sm:$0xff]  }
 0x1d4   : > { %3628 = vmatprep.mubr.msk.bf16.mxu0 %vm4267_vm0, %v4266_v40 }
 0x1d5   : > { %v2946_v38 = vmax.f32 %v2872_v35, 0.0  ;;  %v2873_v41 = vadd.f32 %v4796_v19, %v2792_v30 }
 0x1d6   : > { %v2509_v44 = vpop.f32.mrb[12].mxu0 }
 0x1d7   : > { %3020 = vst [vmem:[%s4805_s10 + $0x20] sm:$0xff] %v2946_v38  ;;  %v2947_v34 = vmax.f32 %v2873_v41, 0.0  ;;  %v3694_v50 = vadd.f32 %v2509_v44, %v4631_v37  ;;  %v3522_v51 = vpop.f32.mrb[13].mxu0  ;;  %v4224_v41 = vld [vmem:[%s4379_s26 + $0x530] ss:$20 sps:$4 sm:$0xff]  }
 0x1d8   : > { %v2512_v60 = vpop.f32.mrb[14].mxu0 }
 0x1d9   : > { %3021 = vst [vmem:[%s4805_s10 + $0x28] sm:$0xff] %v2947_v34  ;;  %v2793_v1 = vmul.f32 %v3694_v50, %v4788_v6  ;;  %v3695_v2 = vadd.f32 %v2512_v60, %v4635_v42  ;;  %v3523_v5 = vpop.f32.mrb[15].mxu0  ;;  %v4225_v34 = vld [vmem:[%s4379_s26 + $0x510] ss:$20 sps:$4 sm:$0xff]  }
 0x1da   : > { %2403 = vmatmul.mubr.bf16.gmra.mrb[124].mxu1 %v4216_v46  ;;  %v4226_v50 = vld [vmem:[%s4379_s26 + $0x55c] ss:$20 sps:$4 sm:$0xff]  }
 0x1db   : > { %v2874_v23 = vadd.f32 %v4796_v19, %v2793_v1  ;;  %v2794_v37 = vmul.f32 %v3695_v2, %v4788_v6  ;;  %3629 = vmatmul.mubr.bf16.gmra.mrb[120].mxu0 %v4217_v55  ;;  %2410 = vmatprep.mubr.bf16.mxu1 %v4218_v58 }
 0x1dc   : > { %3632 = vmatprep.mubr.msk.bf16.mxu0 %vm4267_vm0, %v4266_v40 }
 0x1dd   : > { %v2948_v8 = vmax.f32 %v2874_v23, 0.0  ;;  %v2875_v11 = vadd.f32 %v4796_v19, %v2794_v37  ;;  %v4228_v37 = vld [vmem:[%s4379_s26 + $0x558] ss:$20 sps:$4 sm:$0xff]  }
 0x1de   : > { %v2517_v12 = vpop.f32.mrb[16].mxu0 }
 0x1df   : > { %3022 = vst [vmem:[%s4805_s10 + $0x30] sm:$0xff] %v2948_v8  ;;  %v2949_v42 = vmax.f32 %v2875_v11, 0.0  ;;  %v3696_v27 = vadd.f32 %v2517_v12, %v4640_v45  ;;  %v3526_v16 = vpop.f32.mrb[17].mxu0  ;;  %v4229_v12 = vld [vmem:[%s4379_s26 + $0x538] ss:$20 sps:$4 sm:$0xff]  }
 0x1e0   : > { %v2520_v28 = vpop.f32.mrb[18].mxu0 }
 0x1e1   : > { %3023 = vst [vmem:[%s4805_s10 + $0x38] sm:$0xff] %v2949_v42  ;;  %v2795_v29 = vmul.f32 %v3696_v27, %v4788_v6  ;;  %v3697_v31 = vadd.f32 %v2520_v28, %v4644_v49  ;;  %v3527_v17 = vpop.f32.mrb[19].mxu0 }
 0x1e2   : > { %2411 = vmatmul.mubr.bf16.gmra.mrb[128].mxu1 %v4220_v15  ;;  %v4230_v15 = vld [vmem:[%s4379_s26 + $0x584] ss:$20 sps:$4 sm:$0xff]   ;;  %v4232_v17 = vld [vmem:[%s4379_s26 + $0x580] ss:$20 sps:$4 sm:$0xff]  }
 0x1e3   : > { %v2876_v0 = vadd.f32 %v4796_v19, %v2795_v29  ;;  %v2796_v45 = vmul.f32 %v3697_v31, %v4788_v6  ;;  %3633 = vmatmul.mubr.bf16.gmra.mrb[124].mxu0 %v4221_v21  ;;  %2418 = vmatprep.mubr.bf16.mxu1 %v4222_v24 }
 0x1e4   : > { %3636 = vmatprep.mubr.msk.bf16.mxu0 %vm4267_vm0, %v4266_v40 }
 0x1e5   : > { %v2950_v35 = vmax.f32 %v2876_v0, 0.0  ;;  %v2877_v30 = vadd.f32 %v4796_v19, %v2796_v45 }
 0x1e6   : > { %v2525_v38 = vpop.f32.mrb[20].mxu0 }
 0x1e7   : > { %3024 = vst [vmem:[%s4805_s10 + $0x40] sm:$0xff] %v2950_v35  ;;  %v2951_v49 = vmax.f32 %v2877_v30, 0.0  ;;  %v3698_v44 = vadd.f32 %v2525_v38, %v4649_v52  ;;  %v3530_v46 = vpop.f32.mrb[21].mxu0  ;;  %v4233_v35 = vld [vmem:[%s4379_s26 + $0x560] ss:$20 sps:$4 sm:$0xff]  }
 0x1e8   : > { %v2528_v51 = vpop.f32.mrb[22].mxu0  ;;  %v4234_v30 = vld [vmem:[%s4379_s26 + $0x5ac] ss:$20 sps:$4 sm:$0xff]  }
 0x1e9   : > { %3025 = vst [vmem:[%s4805_s10 + $0x48] sm:$0xff] %v2951_v49  ;;  %v2797_v55 = vmul.f32 %v3698_v44, %v4788_v6  ;;  %v3699_v58 = vadd.f32 %v2528_v51, %v4653_v56  ;;  %v3531_v60 = vpop.f32.mrb[23].mxu0 }
 0x1ea   : > { %2419 = vmatmul.mubr.bf16.gmra.mrb[132].mxu1 %v4224_v41 }
 0x1eb   : > { %v2878_v1 = vadd.f32 %v4796_v19, %v2797_v55  ;;  %v2798_v52 = vmul.f32 %v3699_v58, %v4788_v6  ;;  %3637 = vmatmul.mubr.bf16.gmra.mrb[128].mxu0 %v4225_v34  ;;  %2426 = vmatprep.mubr.bf16.mxu1 %v4226_v50  ;;  %v4236_v55 = vld [vmem:[%s4379_s26 + $0x5a8] ss:$20 sps:$4 sm:$0xff]  }
 0x1ec   : > { %3640 = vmatprep.mubr.msk.bf16.mxu0 %vm4267_vm0, %v4266_v40 }
 0x1ed   : > { %v2952_v2 = vmax.f32 %v2878_v1, 0.0  ;;  %v2879_v5 = vadd.f32 %v4796_v19, %v2798_v52  ;;  %v4237_v1 = vld [vmem:[%s4379_s26 + $0x588] ss:$20 sps:$4 sm:$0xff]  }
 0x1ee   : > { %v2533_v23 = vpop.f32.mrb[24].mxu0 }
 0x1ef   : > { %3026 = vst [vmem:[%s4805_s10 + $0x50] sm:$0xff] %v2952_v2  ;;  %v2953_v56 = vmax.f32 %v2879_v5, 0.0  ;;  %v3700_v8 = vadd.f32 %v2533_v23, %v4658_v59  ;;  %v3534_v11 = vpop.f32.mrb[25].mxu0 }
 0x1f0   : > { %v2536_v42 = vpop.f32.mrb[26].mxu0 }
 0x1f1   : > { %3027 = vst [vmem:[%s4805_s10 + $0x58] sm:$0xff] %v2953_v56  ;;  %v2799_v27 = vmul.f32 %v3700_v8, %v4788_v6  ;;  %v3701_v16 = vadd.f32 %v2536_v42, %v4662_v63  ;;  %v3535_v21 = vpop.f32.mrb[27].mxu0  ;;  %v4238_v42 = vld [vmem:[%s4379_s26 + $0x5b0] ss:$20 sps:$4 sm:$0xff]  }
 0x1f2   : > { %2427 = vmatmul.mubr.bf16.gmra.mrb[136].mxu1 %v4228_v37 }
 0x1f3   : > { %v2880_v24 = vadd.f32 %v4796_v19, %v2799_v27  ;;  %v2800_v59 = vmul.f32 %v3701_v16, %v4788_v6  ;;  %3641 = vmatmul.mubr.bf16.gmra.mrb[132].mxu0 %v4229_v12  ;;  %2434 = vmatprep.mubr.bf16.mxu1 %v4230_v15 }
 0x1f4   : > { %3644 = vmatprep.mubr.msk.bf16.mxu0 %vm4267_vm0, %v4266_v40 }
 0x1f5   : > { %v2954_v28 = vmax.f32 %v2880_v24, 0.0  ;;  %v2881_v29 = vadd.f32 %v4796_v19, %v2800_v59 }
 0x1f6   : > { %v2541_v31 = vpop.f32.mrb[28].mxu0 }
 0x1f7   : > { %3028 = vst [vmem:[%s4805_s10 + $0x60] sm:$0xff] %v2954_v28  ;;  %v2955_v63 = vmax.f32 %v2881_v29, 0.0  ;;  %v3702_v0 = vadd.f32 %v2541_v31, %v4667_v3  ;;  %v3538_v45 = vpop.f32.mrb[29].mxu0 }
 0x1f8   : > { %v2544_v38 = vpop.f32.mrb[30].mxu0 }
 0x1f9   : > { %3029 = vst [vmem:[%s4805_s10 + $0x68] sm:$0xff] %v2955_v63  ;;  %v2801_v41 = vmul.f32 %v3702_v0, %v4788_v6  ;;  %v3703_v49 = vadd.f32 %v2544_v38, %v4671_v7  ;;  %v3539_v44 = vpop.f32.mrb[31].mxu0 }
 0x1fa   : > { %2435 = vmatmul.mubr.bf16.gmra.mrb[140].mxu1 %v4232_v17 }
 0x1fb   : > { %v2882_v46 = vadd.f32 %v4796_v19, %v2801_v41  ;;  %v2802_v34 = vmul.f32 %v3703_v49, %v4788_v6  ;;  %3645 = vmatmul.mubr.bf16.gmra.mrb[136].mxu0 %v4233_v35  ;;  %2442 = vmatprep.mubr.bf16.mxu1 %v4234_v30 }
 0x1fc   : > { %3648 = vmatprep.mubr.msk.bf16.mxu0 %vm4267_vm0, %v4266_v40 }
 0x1fd   : > { %v2956_v3 = vmax.f32 %v2882_v46, 0.0  ;;  %v2883_v50 = vadd.f32 %v4796_v19, %v2802_v34 }
 0x1fe   : > { %v2549_v51 = vpop.f32.mrb[32].mxu0 }
 0x1ff   : > { %3030 = vst [vmem:[%s4805_s10 + $0x70] sm:$0xff] %v2956_v3  ;;  %v2957_v7 = vmax.f32 %v2883_v50, 0.0  ;;  %v3704_v58 = vadd.f32 %v2549_v51, %v4676_v10  ;;  %v3542_v60 = vpop.f32.mrb[33].mxu0 }
 0x200   : > { %v2552_v52 = vpop.f32.mrb[34].mxu0 }
 0x201   : > { %3031 = vst [vmem:[%s4805_s10 + $0x78] sm:$0xff] %v2957_v7  ;;  %v2803_v2 = vmul.f32 %v3704_v58, %v4788_v6  ;;  %v3705_v5 = vadd.f32 %v2552_v52, %v4680_v14  ;;  %v3543_v23 = vpop.f32.mrb[35].mxu0 }
 0x202   : > { %2443 = vmatmul.mubr.bf16.gmra.mrb[144].mxu1 %v4236_v55 }
 0x203   : > { %v2884_v37 = vadd.f32 %v4796_v19, %v2803_v2  ;;  %v2804_v56 = vmul.f32 %v3705_v5, %v4788_v6  ;;  %3649 = vmatmul.mubr.bf16.gmra.mrb[140].mxu0 %v4237_v1 }
 0x204   : > { %3652 = vmatprep.mubr.msk.bf16.mxu0 %vm4267_vm0, %v4266_v40 }
 0x205   : > { %v2958_v10 = vmax.f32 %v2884_v37, 0.0  ;;  %v2885_v8 = vadd.f32 %v4796_v19, %v2804_v56 }
 0x206   : > { %v2557_v11 = vpop.f32.mrb[36].mxu0 }
 0x207   : > { %3032 = vst [vmem:[%s4805_s10 + $0x80] sm:$0xff] %v2958_v10  ;;  %v2959_v12 = vmax.f32 %v2885_v8, 0.0  ;;  %v3706_v14 = vadd.f32 %v2557_v11, %v4685_v18  ;;  %v3546_v15 = vpop.f32.mrb[37].mxu0 }
 0x208   : > { %v2560_v27 = vpop.f32.mrb[38].mxu0 }
 0x209   : > { %3033 = vst [vmem:[%s4805_s10 + $0x88] sm:$0xff] %v2959_v12  ;;  %v2805_v16 = vmul.f32 %v3706_v14, %v4788_v6  ;;  %v3707_v21 = vadd.f32 %v2560_v27, %v4689_v22  ;;  %v3547_v24 = vpop.f32.mrb[39].mxu0 }
 0x20b   : > { %v2886_v40 = vadd.f32 %v4796_v19, %v2805_v16  ;;  %v2806_v59 = vmul.f32 %v3707_v21, %v4788_v6  ;;  %3653 = vmatmul.mubr.bf16.gmra.mrb[144].mxu0 %v4238_v42 }
 0x20d   : > { %v2960_v28 = vmax.f32 %v2886_v40, 0.0  ;;  %v2887_v29 = vadd.f32 %v4796_v19, %v2806_v59 }
 0x20e   : > { %v2565_v18 = vpop.f32.mrb[40].mxu0 }
 0x20f   : > { %3034 = vst [vmem:[%s4805_s10 + $0x90] sm:$0xff] %v2960_v28  ;;  %v2961_v31 = vmax.f32 %v2887_v29, 0.0  ;;  %v3708_v17 = vadd.f32 %v2565_v18, %v4694_v26  ;;  %v3550_v63 = vpop.f32.mrb[41].mxu0 }
 0x210   : > { %v2568_v0 = vpop.f32.mrb[42].mxu0 }
 0x211   : > { %3035 = vst [vmem:[%s4805_s10 + $0x98] sm:$0xff] %v2961_v31  ;;  %v2807_v22 = vmul.f32 %v3708_v17, %v4788_v6  ;;  %v3709_v45 = vadd.f32 %v2568_v0, %v4698_v32  ;;  %v3551_v35 = vpop.f32.mrb[43].mxu0 }
 0x213   : > { %v2888_v30 = vadd.f32 %v4796_v19, %v2807_v22  ;;  %v2808_v38 = vmul.f32 %v3709_v45, %v4788_v6 }
 0x215   : > { %v2962_v41 = vmax.f32 %v2888_v30, 0.0  ;;  %v2889_v49 = vadd.f32 %v4796_v19, %v2808_v38 }
 0x216   : > { %v2573_v44 = vpop.f32.mrb[44].mxu0 }
 0x217   : > { %3036 = vst [vmem:[%s4805_s10 + $0xa0] sm:$0xff] %v2962_v41  ;;  %v2963_v26 = vmax.f32 %v2889_v49, 0.0  ;;  %v3710_v46 = vadd.f32 %v2573_v44, %v4703_v36  ;;  %v3554_v34 = vpop.f32.mrb[45].mxu0 }
 0x218   : > { %v2576_v3 = vpop.f32.mrb[46].mxu0 }
 0x219   : > { %3037 = vst [vmem:[%s4805_s10 + $0xa8] sm:$0xff] %v2963_v26  ;;  %v2809_v32 = vmul.f32 %v3710_v46, %v4788_v6  ;;  %v3711_v50 = vadd.f32 %v2576_v3, %v4707_v43  ;;  %v3555_v51 = vpop.f32.mrb[47].mxu0 }
 0x21b   : > { %v2890_v55 = vadd.f32 %v4796_v19, %v2809_v32  ;;  %v2810_v7 = vmul.f32 %v3711_v50, %v4788_v6 }
 0x21d   : > { %v2964_v58 = vmax.f32 %v2890_v55, 0.0  ;;  %v2891_v60 = vadd.f32 %v4796_v19, %v2810_v7 }
 0x21e   : > { %v2581_v1 = vpop.f32.mrb[48].mxu0 }
 0x21f   : > { %3038 = vst [vmem:[%s4805_s10 + $0xb0] sm:$0xff] %v2964_v58  ;;  %v2965_v36 = vmax.f32 %v2891_v60, 0.0  ;;  %v3712_v52 = vadd.f32 %v2581_v1, %v4712_v47  ;;  %v3558_v2 = vpop.f32.mrb[49].mxu0 }
 0x220   : > { %v2584_v5 = vpop.f32.mrb[50].mxu0 }
 0x221   : > { %3039 = vst [vmem:[%s4805_s10 + $0xb8] sm:$0xff] %v2965_v36  ;;  %v2811_v43 = vmul.f32 %v3712_v52, %v4788_v6  ;;  %v3713_v23 = vadd.f32 %v2584_v5, %v4716_v53  ;;  %v3559_v37 = vpop.f32.mrb[51].mxu0 }
 0x223   : > { %v2892_v56 = vadd.f32 %v4796_v19, %v2811_v43  ;;  %v2812_v10 = vmul.f32 %v3713_v23, %v4788_v6 }
 0x225   : > { %v2966_v8 = vmax.f32 %v2892_v56, 0.0  ;;  %v2893_v11 = vadd.f32 %v4796_v19, %v2812_v10 }
 0x226   : > { %v2589_v12 = vpop.f32.mrb[52].mxu0 }
 0x227   : > { %3040 = vst [vmem:[%s4805_s10 + $0xc0] sm:$0xff] %v2966_v8  ;;  %v2967_v47 = vmax.f32 %v2893_v11, 0.0  ;;  %v3714_v14 = vadd.f32 %v2589_v12, %v4721_v57  ;;  %v3562_v15 = vpop.f32.mrb[53].mxu0 }
 0x228   : > { %v2592_v42 = vpop.f32.mrb[54].mxu0 }
 0x229   : > { %3041 = vst [vmem:[%s4805_s10 + $0xc8] sm:$0xff] %v2967_v47  ;;  %v2813_v53 = vmul.f32 %v3714_v14, %v4788_v6  ;;  %v3715_v27 = vadd.f32 %v2592_v42, %v4725_v62  ;;  %v3563_v16 = vpop.f32.mrb[55].mxu0 }
 0x22b   : > { %v2894_v21 = vadd.f32 %v4796_v19, %v2813_v53  ;;  %v2814_v24 = vmul.f32 %v3715_v27, %v4788_v6 }
 0x22d   : > { %v2968_v40 = vmax.f32 %v2894_v21, 0.0  ;;  %v2895_v59 = vadd.f32 %v4796_v19, %v2814_v24 }
 0x22e   : > { %v2597_v28 = vpop.f32.mrb[56].mxu0 }
 0x22f   : > { %3042 = vst [vmem:[%s4805_s10 + $0xd0] sm:$0xff] %v2968_v40  ;;  %v2969_v57 = vmax.f32 %v2895_v59, 0.0  ;;  %v3716_v29 = vadd.f32 %v2597_v28, %v4730_v4  ;;  %v3566_v18 = vpop.f32.mrb[57].mxu0 }
 0x230   : > { %v2600_v31 = vpop.f32.mrb[58].mxu0 }
 0x231   : > { %3043 = vst [vmem:[%s4805_s10 + $0xd8] sm:$0xff] %v2969_v57  ;;  %v2815_v62 = vmul.f32 %v3716_v29, %v4788_v6  ;;  %v3717_v17 = vadd.f32 %v2600_v31, %v4734_v9  ;;  %v3567_v63 = vpop.f32.mrb[59].mxu0 }
 0x233   : > { %v2896_v0 = vadd.f32 %v4796_v19, %v2815_v62  ;;  %v2816_v22 = vmul.f32 %v3717_v17, %v4788_v6 }
 0x235   : > { %v2970_v45 = vmax.f32 %v2896_v0, 0.0  ;;  %v2897_v35 = vadd.f32 %v4796_v19, %v2816_v22 }
 0x236   : > { %v2605_v30 = vpop.f32.mrb[60].mxu0 }
 0x237   : > { %3044 = vst [vmem:[%s4805_s10 + $0xe0] sm:$0xff] %v2970_v45  ;;  %v2971_v4 = vmax.f32 %v2897_v35, 0.0  ;;  %v3718_v38 = vadd.f32 %v2605_v30, %v4739_v13  ;;  %v3570_v41 = vpop.f32.mrb[61].mxu0 }
 0x238   : > { %v2608_v49 = vpop.f32.mrb[62].mxu0 }
 0x239   : > { %3045 = vst [vmem:[%s4805_s10 + $0xe8] sm:$0xff] %v2971_v4  ;;  %v2817_v9 = vmul.f32 %v3718_v38, %v4788_v6  ;;  %v3719_v44 = vadd.f32 %v2608_v49, %v4743_v20  ;;  %v3571_v26 = vpop.f32.mrb[63].mxu0 }
 0x23b   : > { %v2898_v46 = vadd.f32 %v4796_v19, %v2817_v9  ;;  %v2818_v34 = vmul.f32 %v3719_v44, %v4788_v6 }
 0x23d   : > { %v2972_v3 = vmax.f32 %v2898_v46, 0.0  ;;  %v2899_v32 = vadd.f32 %v4796_v19, %v2818_v34 }
 0x23e   : > { %v2613_v50 = vpop.f32.mrb[64].mxu0 }
 0x23f   : > { %3046 = vst [vmem:[%s4805_s10 + $0xf0] sm:$0xff] %v2972_v3  ;;  %v2973_v13 = vmax.f32 %v2899_v32, 0.0  ;;  %v3720_v51 = vadd.f32 %v2613_v50, %v4748_v25  ;;  %v3574_v55 = vpop.f32.mrb[65].mxu0 }
 0x240   : > { %v2616_v7 = vpop.f32.mrb[66].mxu0 }
 0x241   : > { %3047 = vst [vmem:[%s4805_s10 + $0xf8] sm:$0xff] %v2973_v13  ;;  %v2819_v20 = vmul.f32 %v3720_v51, %v4788_v6  ;;  %v3721_v58 = vadd.f32 %v2616_v7, %v4752_v33  ;;  %v3575_v60 = vpop.f32.mrb[67].mxu0 }
 0x243   : > { %v2900_v1 = vadd.f32 %v4796_v19, %v2819_v20  ;;  %v2820_v36 = vmul.f32 %v3721_v58, %v4788_v6 }
 0x245   : > { %v2974_v52 = vmax.f32 %v2900_v1, 0.0  ;;  %v2901_v2 = vadd.f32 %v4796_v19, %v2820_v36 }
 0x246   : > { %v2621_v5 = vpop.f32.mrb[68].mxu0 }
 0x247   : > { %3048 = vst [vmem:[%s4805_s10 + $0x100] sm:$0xff] %v2974_v52  ;;  %v2975_v25 = vmax.f32 %v2901_v2, 0.0  ;;  %v3722_v43 = vadd.f32 %v2621_v5, %v4757_v39  ;;  %v3578_v23 = vpop.f32.mrb[69].mxu0 }
 0x248   : > { %v2624_v37 = vpop.f32.mrb[70].mxu0 }
 0x249   : > { %3049 = vst [vmem:[%s4805_s10 + $0x108] sm:$0xff] %v2975_v25  ;;  %v2821_v56 = vmul.f32 %v3722_v43, %v4788_v6  ;;  %v3723_v33 = vadd.f32 %v2624_v37, %v4761_v48  ;;  %v3579_v10 = vpop.f32.mrb[71].mxu0 }
 0x24b   : > { %v2902_v8 = vadd.f32 %v4796_v19, %v2821_v56  ;;  %v2822_v11 = vmul.f32 %v3723_v33, %v4788_v6 }
 0x24d   : > { %v2976_v12 = vmax.f32 %v2902_v8, 0.0  ;;  %v2903_v47 = vadd.f32 %v4796_v19, %v2822_v11  ;;  %v2308_v14 = vpop.f32.mrb[76].mxu1 }
 0x24e   : > { %v2629_v15 = vpop.f32.mrb[72].mxu0  ;;  %v2310_v42 = vpop.f32.mrb[77].mxu1 }
 0x24f   : > { %3050 = vst [vmem:[%s4805_s10 + $0x110] sm:$0xff] %v2976_v12  ;;  %v2977_v39 = vmax.f32 %v2903_v47, 0.0  ;;  %v3724_v53 = vadd.f32 %v2629_v15, %v4766_v54  ;;  %v3582_v27 = vpop.f32.mrb[73].mxu0  ;;  %v2311_v16 = vpop.f32.mrb[78].mxu1 }
 0x250   : > { %v2632_v48 = vpop.f32.mrb[74].mxu0  ;;  %v2313_v21 = vpop.f32.mrb[79].mxu1 }
 0x251   : > { %3051 = vst [vmem:[%s4805_s10 + $0x118] sm:$0xff] %v2977_v39  ;;  %v2823_v24 = vmul.f32 %v3724_v53, %v4788_v6  ;;  %v3725_v40 = vadd.f32 %v2632_v48, %v4770_v61  ;;  %v3583_v59 = vpop.f32.mrb[75].mxu0 }
 0x253   : > { %v2904_v28 = vadd.f32 %v4796_v19, %v2823_v24  ;;  %v2824_v57 = vmul.f32 %v3725_v40, %v4788_v6 }
 0x255   : > { %v2978_v29 = vmax.f32 %v2904_v28, 0.0  ;;  %v2905_v18 = vadd.f32 %v4796_v19, %v2824_v57  ;;  %v2316_v54 = vpop.f32.mrb[80].mxu1 }
 0x256   : > { %v2637_v31 = vpop.f32.mrb[76].mxu0  ;;  %v2318_v62 = vpop.f32.mrb[81].mxu1 }
 0x257   : > { %3052 = vst [vmem:[%s4805_s10 + $0x120] sm:$0xff] %v2978_v29  ;;  %v2979_v17 = vmax.f32 %v2905_v18, 0.0  ;;  %v3726_v63 = vadd.f32 %v2637_v31, %v2308_v14  ;;  %v3586_v0 = vpop.f32.mrb[77].mxu0  ;;  %v2319_v22 = vpop.f32.mrb[82].mxu1 }
 0x258   : > { %v2640_v45 = vpop.f32.mrb[78].mxu0  ;;  %v2321_v61 = vpop.f32.mrb[83].mxu1 }
 0x259   : > { %3053 = vst [vmem:[%s4805_s10 + $0x128] sm:$0xff] %v2979_v17  ;;  %v2825_v35 = vmul.f32 %v3726_v63, %v4788_v6  ;;  %v3727_v30 = vadd.f32 %v2640_v45, %v2311_v16  ;;  %v3587_v4 = vpop.f32.mrb[79].mxu0 }
 0x25b   : > { %v2906_v38 = vadd.f32 %v4796_v19, %v2825_v35  ;;  %v2826_v41 = vmul.f32 %v3727_v30, %v4788_v6 }
 0x25d   : > { %v2980_v49 = vmax.f32 %v2906_v38, 0.0  ;;  %v2907_v9 = vadd.f32 %v4796_v19, %v2826_v41  ;;  %v2324_v44 = vpop.f32.mrb[84].mxu1 }
 0x25e   : > { %v2645_v26 = vpop.f32.mrb[80].mxu0  ;;  %v2326_v46 = vpop.f32.mrb[85].mxu1 }
 0x25f   : > { %3054 = vst [vmem:[%s4805_s10 + $0x130] sm:$0xff] %v2980_v49  ;;  %v2981_v34 = vmax.f32 %v2907_v9, 0.0  ;;  %v3728_v3 = vadd.f32 %v2645_v26, %v2316_v54  ;;  %v3590_v32 = vpop.f32.mrb[81].mxu0  ;;  %v2327_v50 = vpop.f32.mrb[86].mxu1 }
 0x260   : > { %v2648_v13 = vpop.f32.mrb[82].mxu0  ;;  %v2329_v51 = vpop.f32.mrb[87].mxu1 }
 0x261   : > { %3055 = vst [vmem:[%s4805_s10 + $0x138] sm:$0xff] %v2981_v34  ;;  %v2827_v55 = vmul.f32 %v3728_v3, %v4788_v6  ;;  %v3729_v7 = vadd.f32 %v2648_v13, %v2319_v22  ;;  %v3591_v20 = vpop.f32.mrb[83].mxu0 }
 0x263   : > { %v2908_v58 = vadd.f32 %v4796_v19, %v2827_v55  ;;  %v2828_v60 = vmul.f32 %v3729_v7, %v4788_v6 }
 0x265   : > { %v2982_v1 = vmax.f32 %v2908_v58, 0.0  ;;  %v2909_v36 = vadd.f32 %v4796_v19, %v2828_v60  ;;  %v2332_v52 = vpop.f32.mrb[88].mxu1 }
 0x266   : > { %v2653_v2 = vpop.f32.mrb[84].mxu0  ;;  %v2334_v5 = vpop.f32.mrb[89].mxu1 }
 0x267   : > { %3056 = vst [vmem:[%s4805_s10 + $0x140] sm:$0xff] %v2982_v1  ;;  %v2983_v25 = vmax.f32 %v2909_v36, 0.0  ;;  %v3730_v43 = vadd.f32 %v2653_v2, %v2324_v44  ;;  %v3594_v23 = vpop.f32.mrb[85].mxu0  ;;  %v2335_v37 = vpop.f32.mrb[90].mxu1 }
 0x268   : > { %v2656_v56 = vpop.f32.mrb[86].mxu0  ;;  %v2337_v33 = vpop.f32.mrb[91].mxu1 }
 0x269   : > { %3057 = vst [vmem:[%s4805_s10 + $0x148] sm:$0xff] %v2983_v25  ;;  %v2829_v10 = vmul.f32 %v3730_v43, %v4788_v6  ;;  %v3731_v8 = vadd.f32 %v2656_v56, %v2327_v50  ;;  %v3595_v11 = vpop.f32.mrb[87].mxu0 }
 0x26b   : > { %v2910_v12 = vadd.f32 %v4796_v19, %v2829_v10  ;;  %v2830_v47 = vmul.f32 %v3731_v8, %v4788_v6 }
 0x26d   : > { %v2984_v14 = vmax.f32 %v2910_v12, 0.0  ;;  %v2911_v15 = vadd.f32 %v4796_v19, %v2830_v47  ;;  %v2340_v42 = vpop.f32.mrb[92].mxu1 }
 0x26e   : > { %v2661_v39 = vpop.f32.mrb[88].mxu0  ;;  %v2342_v53 = vpop.f32.mrb[93].mxu1 }
 0x26f   : > { %3058 = vst [vmem:[%s4805_s10 + $0x150] sm:$0xff] %v2984_v14  ;;  %v2985_v27 = vmax.f32 %v2911_v15, 0.0  ;;  %v3732_v16 = vadd.f32 %v2661_v39, %v2332_v52  ;;  %v3598_v48 = vpop.f32.mrb[89].mxu0  ;;  %v2343_v21 = vpop.f32.mrb[94].mxu1 }
 0x270   : > { %v2664_v24 = vpop.f32.mrb[90].mxu0  ;;  %v2345_v40 = vpop.f32.mrb[95].mxu1 }
 0x271   : > { %3059 = vst [vmem:[%s4805_s10 + $0x158] sm:$0xff] %v2985_v27  ;;  %v2831_v59 = vmul.f32 %v3732_v16, %v4788_v6  ;;  %v3733_v28 = vadd.f32 %v2664_v24, %v2335_v37  ;;  %v3599_v57 = vpop.f32.mrb[91].mxu0 }
 0x273   : > { %v2912_v29 = vadd.f32 %v4796_v19, %v2831_v59  ;;  %v2832_v18 = vmul.f32 %v3733_v28, %v4788_v6 }
 0x275   : > { %v2986_v54 = vmax.f32 %v2912_v29, 0.0  ;;  %v2913_v31 = vadd.f32 %v4796_v19, %v2832_v18  ;;  %v2348_v62 = vpop.f32.mrb[96].mxu1 }
 0x276   : > { %v2669_v17 = vpop.f32.mrb[92].mxu0  ;;  %v2350_v63 = vpop.f32.mrb[97].mxu1 }
 0x277   : > { %3060 = vst [vmem:[%s4805_s10 + $0x160] sm:$0xff] %v2986_v54  ;;  %v2987_v0 = vmax.f32 %v2913_v31, 0.0  ;;  %v3734_v22 = vadd.f32 %v2669_v17, %v2340_v42  ;;  %v3602_v45 = vpop.f32.mrb[93].mxu0  ;;  %v2351_v61 = vpop.f32.mrb[98].mxu1 }
 0x278   : > { %v2672_v35 = vpop.f32.mrb[94].mxu0  ;;  %v2353_v30 = vpop.f32.mrb[99].mxu1 }
 0x279   : > { %3061 = vst [vmem:[%s4805_s10 + $0x168] sm:$0xff] %v2987_v0  ;;  %v2833_v4 = vmul.f32 %v3734_v22, %v4788_v6  ;;  %v3735_v38 = vadd.f32 %v2672_v35, %v2343_v21  ;;  %v3603_v41 = vpop.f32.mrb[95].mxu0 }
 0x27b   : > { %v2914_v49 = vadd.f32 %v4796_v19, %v2833_v4  ;;  %v2834_v9 = vmul.f32 %v3735_v38, %v4788_v6 }
 0x27d   : > { %v2988_v44 = vmax.f32 %v2914_v49, 0.0  ;;  %v2915_v26 = vadd.f32 %v4796_v19, %v2834_v9  ;;  %v2356_v46 = vpop.f32.mrb[100].mxu1 }
 0x27e   : > { %v2677_v34 = vpop.f32.mrb[96].mxu0  ;;  %v2358_v3 = vpop.f32.mrb[101].mxu1 }
 0x27f   : > { %3062 = vst [vmem:[%s4805_s10 + $0x170] sm:$0xff] %v2988_v44  ;;  %v2989_v32 = vmax.f32 %v2915_v26, 0.0  ;;  %v3736_v50 = vadd.f32 %v2677_v34, %v2348_v62  ;;  %v3606_v13 = vpop.f32.mrb[97].mxu0  ;;  %v2359_v51 = vpop.f32.mrb[102].mxu1 }
 0x280   : > { %v2680_v55 = vpop.f32.mrb[98].mxu0  ;;  %v2361_v7 = vpop.f32.mrb[103].mxu1 }
 0x281   : > { %3063 = vst [vmem:[%s4805_s10 + $0x178] sm:$0xff] %v2989_v32  ;;  %v2835_v20 = vmul.f32 %v3736_v50, %v4788_v6  ;;  %v3737_v58 = vadd.f32 %v2680_v55, %v2351_v61  ;;  %v3607_v60 = vpop.f32.mrb[99].mxu0 }
 0x283   : > { %v2916_v1 = vadd.f32 %v4796_v19, %v2835_v20  ;;  %v2836_v36 = vmul.f32 %v3737_v58, %v4788_v6 }
 0x285   : > { %v2990_v52 = vmax.f32 %v2916_v1, 0.0  ;;  %v2917_v2 = vadd.f32 %v4796_v19, %v2836_v36  ;;  %v2364_v5 = vpop.f32.mrb[104].mxu1 }
 0x286   : > { %v2685_v25 = vpop.f32.mrb[100].mxu0  ;;  %v2366_v43 = vpop.f32.mrb[105].mxu1 }
 0x287   : > { %3064 = vst [vmem:[%s4805_s10 + $0x180] sm:$0xff] %v2990_v52  ;;  %v2991_v23 = vmax.f32 %v2917_v2, 0.0  ;;  %v3738_v37 = vadd.f32 %v2685_v25, %v2356_v46  ;;  %v3610_v56 = vpop.f32.mrb[101].mxu0  ;;  %v2367_v33 = vpop.f32.mrb[106].mxu1 }
 0x288   : > { %v2688_v10 = vpop.f32.mrb[102].mxu0  ;;  %v2369_v8 = vpop.f32.mrb[107].mxu1 }
 0x289   : > { %3065 = vst [vmem:[%s4805_s10 + $0x188] sm:$0xff] %v2991_v23  ;;  %v2837_v11 = vmul.f32 %v3738_v37, %v4788_v6  ;;  %v3739_v12 = vadd.f32 %v2688_v10, %v2359_v51  ;;  %v3611_v47 = vpop.f32.mrb[103].mxu0 }
 0x28a   : > { %v5057_v47 = vld [vmem:[%s4777_s29] ss:$0 sm:$0xff] }
 0x28b   : > { %v2918_v14 = vadd.f32 %v4796_v19, %v2837_v11  ;;  %v2838_v15 = vmul.f32 %v3739_v12, %v4788_v6 }
 0x28d   : > { %v2992_v42 = vmax.f32 %v2918_v14, 0.0  ;;  %v2919_v39 = vadd.f32 %v4796_v19, %v2838_v15  ;;  %v2372_v53 = vpop.f32.mrb[108].mxu1 }
 0x28e   : > { %v2693_v27 = vpop.f32.mrb[104].mxu0  ;;  %v2374_v16 = vpop.f32.mrb[109].mxu1 }
 0x28f   : > { %3066 = vst [vmem:[%s4805_s10 + $0x190] sm:$0xff] %v2992_v42  ;;  %v2993_v48 = vmax.f32 %v2919_v39, 0.0  ;;  %v3740_v21 = vadd.f32 %v2693_v27, %v2364_v5  ;;  %v3614_v24 = vpop.f32.mrb[105].mxu0  ;;  %v2375_v40 = vpop.f32.mrb[110].mxu1 }
 0x290   : > { %v2696_v59 = vpop.f32.mrb[106].mxu0  ;;  %v2377_v28 = vpop.f32.mrb[111].mxu1 }
 0x291   : > { %3067 = vst [vmem:[%s4805_s10 + $0x198] sm:$0xff] %v2993_v48  ;;  %v2839_v57 = vmul.f32 %v3740_v21, %v4788_v6  ;;  %v3741_v29 = vadd.f32 %v2696_v59, %v2367_v33  ;;  %v3615_v18 = vpop.f32.mrb[107].mxu0 }
 0x293   : > { %v2920_v54 = vadd.f32 %v4796_v19, %v2839_v57  ;;  %v2840_v31 = vmul.f32 %v3741_v29, %v4788_v6 }
 0x295   : > { %v2994_v62 = vmax.f32 %v2920_v54, 0.0  ;;  %v2921_v17 = vadd.f32 %v4796_v19, %v2840_v31  ;;  %v2380_v63 = vpop.f32.mrb[112].mxu1 }
 0x296   : > { %v2701_v0 = vpop.f32.mrb[108].mxu0  ;;  %v2382_v22 = vpop.f32.mrb[113].mxu1 }
 0x297   : > { %3068 = vst [vmem:[%s4805_s10 + $0x1a0] sm:$0xff] %v2994_v62  ;;  %v2995_v45 = vmax.f32 %v2921_v17, 0.0  ;;  %v3742_v61 = vadd.f32 %v2701_v0, %v2372_v53  ;;  %v3618_v35 = vpop.f32.mrb[109].mxu0  ;;  %v2383_v30 = vpop.f32.mrb[114].mxu1 }
 0x298   : > { %v2704_v4 = vpop.f32.mrb[110].mxu0  ;;  %v2385_v38 = vpop.f32.mrb[115].mxu1 }
 0x299   : > { %3069 = vst [vmem:[%s4805_s10 + $0x1a8] sm:$0xff] %v2995_v45  ;;  %v2841_v41 = vmul.f32 %v3742_v61, %v4788_v6  ;;  %v3743_v49 = vadd.f32 %v2704_v4, %v2375_v40  ;;  %v3619_v9 = vpop.f32.mrb[111].mxu0 }
 0x29b   : > { %v2922_v44 = vadd.f32 %v4796_v19, %v2841_v41  ;;  %v2842_v26 = vmul.f32 %v3743_v49, %v4788_v6 }
 0x29d   : > { %v2996_v46 = vmax.f32 %v2922_v44, 0.0  ;;  %v2923_v34 = vadd.f32 %v4796_v19, %v2842_v26  ;;  %v2388_v3 = vpop.f32.mrb[116].mxu1 }
 0x29e   : > { %v2709_v32 = vpop.f32.mrb[112].mxu0  ;;  %v2390_v50 = vpop.f32.mrb[117].mxu1 }
 0x29f   : > { %3070 = vst [vmem:[%s4805_s10 + $0x1b0] sm:$0xff] %v2996_v46  ;;  %v2997_v13 = vmax.f32 %v2923_v34, 0.0  ;;  %v3744_v51 = vadd.f32 %v2709_v32, %v2380_v63  ;;  %v3622_v55 = vpop.f32.mrb[113].mxu0  ;;  %v2391_v7 = vpop.f32.mrb[118].mxu1 }
 0x2a0   : > { %v2712_v20 = vpop.f32.mrb[114].mxu0  ;;  %v2393_v58 = vpop.f32.mrb[119].mxu1 }
 0x2a1   : > { %3071 = vst [vmem:[%s4805_s10 + $0x1b8] sm:$0xff] %v2997_v13  ;;  %v2843_v60 = vmul.f32 %v3744_v51, %v4788_v6  ;;  %v3745_v1 = vadd.f32 %v2712_v20, %v2383_v30  ;;  %v3623_v36 = vpop.f32.mrb[115].mxu0 }
 0x2a3   : > { %v2924_v52 = vadd.f32 %v4796_v19, %v2843_v60  ;;  %v2844_v2 = vmul.f32 %v3745_v1, %v4788_v6 }
 0x2a5   : > { %v2998_v5 = vmax.f32 %v2924_v52, 0.0  ;;  %v2925_v25 = vadd.f32 %v4796_v19, %v2844_v2  ;;  %v2396_v43 = vpop.f32.mrb[120].mxu1  ;;  %v5061_v19 = vld [vmem:[%s4785_s6] ss:$0 sm:$0xff] }
 0x2a6   : > { %v2717_v23 = vpop.f32.mrb[116].mxu0  ;;  %v2398_v37 = vpop.f32.mrb[121].mxu1 }
 0x2a7   : > { %3072 = vst [vmem:[%s4805_s10 + $0x1c0] sm:$0xff] %v2998_v5  ;;  %v2999_v56 = vmax.f32 %v2925_v25, 0.0  ;;  %v3746_v33 = vadd.f32 %v2717_v23, %v2388_v3  ;;  %v3626_v10 = vpop.f32.mrb[117].mxu0  ;;  %v2399_v8 = vpop.f32.mrb[122].mxu1 }
 0x2a8   : > { %v2720_v11 = vpop.f32.mrb[118].mxu0  ;;  %v2401_v12 = vpop.f32.mrb[123].mxu1 }
 0x2a9   : > { %3073 = vst [vmem:[%s4805_s10 + $0x1c8] sm:$0xff] %v2999_v56  ;;  %v2845_v6 = vmul.f32 %v5057_v47, %v3746_v33  ;;  %v3747_v14 = vadd.f32 %v2720_v11, %v2391_v7  ;;  %v3627_v15 = vpop.f32.mrb[119].mxu0 }
 0x2ab   : > { %v2926_v42 = vadd.f32 %v5061_v19, %v2845_v6  ;;  %v2846_v39 = vmul.f32 %v5057_v47, %v3747_v14 }
 0x2ad   : > { %v3000_v53 = vmax.f32 %v2926_v42, 0.0  ;;  %v2927_v27 = vadd.f32 %v5061_v19, %v2846_v39  ;;  %v2404_v16 = vpop.f32.mrb[124].mxu1 }
 0x2ae   : > { %v2725_v48 = vpop.f32.mrb[120].mxu0  ;;  %v2406_v21 = vpop.f32.mrb[125].mxu1 }
 0x2af   : > { %3074 = vst [vmem:[%s4805_s10 + $0x1d0] sm:$0xff] %v3000_v53  ;;  %v3001_v24 = vmax.f32 %v2927_v27, 0.0  ;;  %v3748_v40 = vadd.f32 %v2725_v48, %v2396_v43  ;;  %v3630_v59 = vpop.f32.mrb[121].mxu0  ;;  %v2407_v28 = vpop.f32.mrb[126].mxu1 }
 0x2b0   : > { %v2728_v57 = vpop.f32.mrb[122].mxu0  ;;  %v2409_v29 = vpop.f32.mrb[127].mxu1 }
 0x2b1   : > { %3075 = vst [vmem:[%s4805_s10 + $0x1d8] sm:$0xff] %v3001_v24  ;;  %v2847_v18 = vmul.f32 %v5057_v47, %v3748_v40  ;;  %v3749_v54 = vadd.f32 %v2728_v57, %v2399_v8  ;;  %v3631_v31 = vpop.f32.mrb[123].mxu0 }
 0x2b3   : > { %v2928_v62 = vadd.f32 %v5061_v19, %v2847_v18  ;;  %v2848_v17 = vmul.f32 %v5057_v47, %v3749_v54 }
 0x2b5   : > { %v3002_v63 = vmax.f32 %v2928_v62, 0.0  ;;  %v2929_v0 = vadd.f32 %v5061_v19, %v2848_v17  ;;  %v2412_v22 = vpop.f32.mrb[128].mxu1 }
 0x2b6   : > { %v2733_v45 = vpop.f32.mrb[124].mxu0  ;;  %v2414_v61 = vpop.f32.mrb[129].mxu1 }
 0x2b7   : > { %3076 = vst [vmem:[%s4805_s10 + $0x1e0] sm:$0xff] %v3002_v63  ;;  %v3003_v35 = vmax.f32 %v2929_v0, 0.0  ;;  %v3750_v30 = vadd.f32 %v2733_v45, %v2404_v16  ;;  %v3634_v4 = vpop.f32.mrb[125].mxu0  ;;  %v2415_v38 = vpop.f32.mrb[130].mxu1 }
 0x2b8   : > { %v2736_v41 = vpop.f32.mrb[126].mxu0  ;;  %v2417_v49 = vpop.f32.mrb[131].mxu1 }
 0x2b9   : > { %3077 = vst [vmem:[%s4805_s10 + $0x1e8] sm:$0xff] %v3003_v35  ;;  %v2849_v9 = vmul.f32 %v5057_v47, %v3750_v30  ;;  %v3751_v44 = vadd.f32 %v2736_v41, %v2407_v28  ;;  %v3635_v26 = vpop.f32.mrb[127].mxu0 }
 0x2bb   : > { %v2930_v46 = vadd.f32 %v5061_v19, %v2849_v9  ;;  %v2850_v34 = vmul.f32 %v5057_v47, %v3751_v44 }
 0x2bd   : > { %v3004_v3 = vmax.f32 %v2930_v46, 0.0  ;;  %v2931_v32 = vadd.f32 %v5061_v19, %v2850_v34  ;;  %v2420_v50 = vpop.f32.mrb[132].mxu1 }
 0x2be   : > { %v2741_v13 = vpop.f32.mrb[128].mxu0  ;;  %v2422_v51 = vpop.f32.mrb[133].mxu1 }
 0x2bf   : > { %3078 = vst [vmem:[%s4805_s10 + $0x1f0] sm:$0xff] %v3004_v3  ;;  %v3005_v55 = vmax.f32 %v2931_v32, 0.0  ;;  %v3752_v7 = vadd.f32 %v2741_v13, %v2412_v22  ;;  %v3638_v20 = vpop.f32.mrb[129].mxu0  ;;  %v2423_v58 = vpop.f32.mrb[134].mxu1 }
 0x2c0   : > { %v2744_v60 = vpop.f32.mrb[130].mxu0  ;;  %v2425_v1 = vpop.f32.mrb[135].mxu1 }
 0x2c1   : > { %3079 = vst [vmem:[%s4805_s10 + $0x1f8] sm:$0xff] %v3005_v55  ;;  %v2851_v36 = vmul.f32 %v5057_v47, %v3752_v7  ;;  %v3753_v52 = vadd.f32 %v2744_v60, %v2415_v38  ;;  %v3639_v2 = vpop.f32.mrb[131].mxu0 }
 0x2c3   : > { %v2932_v5 = vadd.f32 %v5061_v19, %v2851_v36  ;;  %v2852_v25 = vmul.f32 %v5057_v47, %v3753_v52 }
 0x2c5   : > { %v3006_v43 = vmax.f32 %v2932_v5, 0.0  ;;  %v2933_v23 = vadd.f32 %v5061_v19, %v2852_v25  ;;  %v2428_v37 = vpop.f32.mrb[136].mxu1 }
 0x2c6   : > { %v2749_v56 = vpop.f32.mrb[132].mxu0  ;;  %v2430_v33 = vpop.f32.mrb[137].mxu1 }
 0x2c7   : > { %3080 = vst [vmem:[%s4805_s10 + $0x200] sm:$0xff] %v3006_v43  ;;  %v3007_v10 = vmax.f32 %v2933_v23, 0.0  ;;  %v3754_v8 = vadd.f32 %v2749_v56, %v2420_v50  ;;  %v3642_v11 = vpop.f32.mrb[133].mxu0  ;;  %v2431_v12 = vpop.f32.mrb[138].mxu1 }
 0x2c8   : > { %v2752_v6 = vpop.f32.mrb[134].mxu0  ;;  %v2433_v14 = vpop.f32.mrb[139].mxu1 }
 0x2c9   : > { %3081 = vst [vmem:[%s4805_s10 + $0x208] sm:$0xff] %v3007_v10  ;;  %v2853_v15 = vmul.f32 %v5057_v47, %v3754_v8  ;;  %v3755_v42 = vadd.f32 %v2752_v6, %v2423_v58  ;;  %v3643_v39 = vpop.f32.mrb[135].mxu0 }
 0x2cb   : > { %v2934_v53 = vadd.f32 %v5061_v19, %v2853_v15  ;;  %v2854_v27 = vmul.f32 %v5057_v47, %v3755_v42 }
 0x2cd   : > { %v3008_v16 = vmax.f32 %v2934_v53, 0.0  ;;  %v2935_v48 = vadd.f32 %v5061_v19, %v2854_v27  ;;  %v2436_v21 = vpop.f32.mrb[140].mxu1 }
 0x2ce   : > { %v2757_v24 = vpop.f32.mrb[136].mxu0  ;;  %v2438_v40 = vpop.f32.mrb[141].mxu1 }
 0x2cf   : > { %3082 = vst [vmem:[%s4805_s10 + $0x210] sm:$0xff] %v3008_v16  ;;  %v3009_v59 = vmax.f32 %v2935_v48, 0.0  ;;  %v3756_v28 = vadd.f32 %v2757_v24, %v2428_v37  ;;  %v3646_v57 = vpop.f32.mrb[137].mxu0  ;;  %v2439_v29 = vpop.f32.mrb[142].mxu1 }
 0x2d0   : > { %v2760_v18 = vpop.f32.mrb[138].mxu0  ;;  %v2441_v54 = vpop.f32.mrb[143].mxu1 }
 0x2d1   : > { %3083 = vst [vmem:[%s4805_s10 + $0x218] sm:$0xff] %v3009_v59  ;;  %v2855_v31 = vmul.f32 %v5057_v47, %v3756_v28  ;;  %v3757_v62 = vadd.f32 %v2760_v18, %v2431_v12  ;;  %v3647_v17 = vpop.f32.mrb[139].mxu0 }
 0x2d3   : > { %v2936_v63 = vadd.f32 %v5061_v19, %v2855_v31  ;;  %v2856_v0 = vmul.f32 %v5057_v47, %v3757_v62 }
 0x2d5   : > { %v3010_v22 = vmax.f32 %v2936_v63, 0.0  ;;  %v2937_v45 = vadd.f32 %v5061_v19, %v2856_v0  ;;  %v2444_v61 = vpop.f32.mrb[144].mxu1 }
 0x2d6   : > { %v2765_v35 = vpop.f32.mrb[140].mxu0  ;;  %v2446_v30 = vpop.f32.mrb[145].mxu1 }
 0x2d7   : > { %3084 = vst [vmem:[%s4805_s10 + $0x220] sm:$0xff] %v3010_v22  ;;  %v3011_v4 = vmax.f32 %v2937_v45, 0.0  ;;  %v3758_v38 = vadd.f32 %v2765_v35, %v2436_v21  ;;  %v3650_v41 = vpop.f32.mrb[141].mxu0  ;;  %v2447_v49 = vpop.f32.mrb[146].mxu1 }
 0x2d8   : > { %v2768_v9 = vpop.f32.mrb[142].mxu0  ;;  %v2449_v44 = vpop.f32.mrb[147].mxu1 }
 0x2d9   : > { %3085 = vst [vmem:[%s4805_s10 + $0x228] sm:$0xff] %v3011_v4  ;;  %v2857_v26 = vmul.f32 %v5057_v47, %v3758_v38  ;;  %v3759_v46 = vadd.f32 %v2768_v9, %v2439_v29  ;;  %v3651_v34 = vpop.f32.mrb[143].mxu0 }
 0x2db   : > { %v2938_v3 = vadd.f32 %v5061_v19, %v2857_v26  ;;  %v2858_v32 = vmul.f32 %v5057_v47, %v3759_v46 }
 0x2dd   : > { %v3012_v50 = vmax.f32 %v2938_v3, 0.0  ;;  %v2939_v13 = vadd.f32 %v5061_v19, %v2858_v32 }
 0x2de   : > { %v2773_v51 = vpop.f32.mrb[144].mxu0 }
 0x2df   : > { %3086 = vst [vmem:[%s4805_s10 + $0x230] sm:$0xff] %v3012_v50  ;;  %v3013_v55 = vmax.f32 %v2939_v13, 0.0  ;;  %v3760_v7 = vadd.f32 %v2773_v51, %v2444_v61  ;;  %v3654_v20 = vpop.f32.mrb[145].mxu0 }
 0x2e0   : > { %v2776_v58 = vpop.f32.mrb[146].mxu0 }
 0x2e1   : > { %3087 = vst [vmem:[%s4805_s10 + $0x238] sm:$0xff] %v3013_v55  ;;  %v2859_v60 = vmul.f32 %v5057_v47, %v3760_v7  ;;  %v3761_v1 = vadd.f32 %v2776_v58, %v2447_v49  ;;  %v3655_v36 = vpop.f32.mrb[147].mxu0 }
 0x2e3   : > { %v2940_v52 = vadd.f32 %v5061_v19, %v2859_v60  ;;  %v2860_v2 = vmul.f32 %v5057_v47, %v3761_v1 }
 0x2e5   : > { %v3014_v5 = vmax.f32 %v2940_v52, 0.0  ;;  %v2941_v25 = vadd.f32 %v5061_v19, %v2860_v2 }
 0x2e7   : > { %3088 = vst [vmem:[%s4805_s10 + $0x240] sm:$0xff] %v3014_v5  ;;  %v3015_v43 = vmax.f32 %v2941_v25, 0.0 }
 0x2e9   : > { %3089 = vst [vmem:[%s4805_s10 + $0x248] sm:$0xff] %v3015_v43 }
 0x2ea PF: > { %s14_s17 = sadd.s32 1, %s4263_s17   ;;  %s5124_s15 = smov %s4259_s16 }
 0x2eb   : > { %p11_p5 = scmp.ge.s32.totalorder %s14_s17, 4   ;;  %s5125_s16 = smov %s5127_s18 }
 0x2ed   :  { %13 = sbr.rel (!%p11_p5) target bundleno = 2 (0x2), region = 75 }

// kernel: alexnet_like_forward.10
= control target key start
LH: loop header
LB: loop body
LE: loop exit
PB: predicated region body
PF: predicated region fallthrough
CT: control target
= control target key end

     0   :  { %s282_s6 = smov 0   ;;  %s341_s0 = inlined_call_operand.vmem [shape: bf16[2,9,8,1024], index: 0, kind: input, shape index: {}]   ;;  %s342_s1 = inlined_call_operand.vmem [shape: bf16[2,8,1024], index: 1, kind: output, shape index: {}]  }
   0x1 LB: > { %s244_s7 = sadd.s32 4294967295, %s270_s6   ;;  %p248_p0 = scmp.ge.s32.totalorder %s270_s6, 1  ;;  %s270_s6 = sphi %s282_s6, %s11_s6  }
   0x2   : > { %p87_p1 = scmp.lt.s32.totalorder %s270_s6, 3 }
   0x4   : > { %p88_p2 = pnand %p248_p0, %p87_p1 }
   0x5   : > { %p107_p3 = scmp.lt.s32.totalorder (!%p88_p2), %s244_s7, 1 }
   0x6   : > { %91 = sbr.rel (%p88_p2) target bundleno = 40 (0x28), region = 24 }
   0xd   : > { %s344_s7 = smov (!%p107_p3, %s244_s7), 1 }
   0xe   : > { %s255_s8 = smul.u32 288, %s344_s7  ;;  %s254_s12 = sshll.u32 %s344_s7, 5 }
   0xf   : > { %s116_s15 = scalar_lea.vmem %s342_s1, %s254_s12 }
  0x10   : > { %s296_s11 = scalar_lea.vmem %s341_s0, %s255_s8 }
  0x11   : > { %v117_v0 = vld [vmem:[%s296_s11] sm:$0xff]  ;;  %v118_v6 = vld [vmem:[%s296_s11 + $0x8] sm:$0xff]  ;;  %v119_v15 = vld [vmem:[%s296_s11 + $0x10] sm:$0xff] }
  0x12   : > { %v121_v1 = vld [vmem:[%s296_s11 + $0x20] sm:$0xff]  ;;  %v122_v7 = vld [vmem:[%s296_s11 + $0x28] sm:$0xff]  ;;  %v123_v16 = vld [vmem:[%s296_s11 + $0x30] sm:$0xff] }
  0x13   : > { %v125_v2 = vld [vmem:[%s296_s11 + $0x40] sm:$0xff]  ;;  %v153_v3 = vmax.bf16 %v121_v1, %v117_v0  ;;  %v126_v8 = vld [vmem:[%s296_s11 + $0x48] sm:$0xff]  ;;  %v161_v10 = vmax.bf16 %v122_v7, %v118_v6  ;;  %v127_v17 = vld [vmem:[%s296_s11 + $0x50] sm:$0xff]  ;;  %v169_v20 = vmax.bf16 %v123_v16, %v119_v15 }
  0x14   : > { %v129_v4 = vld [vmem:[%s296_s11 + $0x60] sm:$0xff]  ;;  %v130_v13 = vld [vmem:[%s296_s11 + $0x68] sm:$0xff]  ;;  %v131_v24 = vld [vmem:[%s296_s11 + $0x70] sm:$0xff] }
  0x15   : > { %v154_v5 = vmax.bf16 %v153_v3, %v125_v2  ;;  %v133_v9 = vld [vmem:[%s296_s11 + $0x80] sm:$0xff]  ;;  %v162_v14 = vmax.bf16 %v161_v10, %v126_v8  ;;  %v134_v19 = vld [vmem:[%s296_s11 + $0x88] sm:$0xff]  ;;  %v170_v26 = vmax.bf16 %v169_v20, %v127_v17  ;;  %v120_v27 = vld [vmem:[%s296_s11 + $0x18] sm:$0xff] }
  0x16   : > { %v137_v11 = vld [vmem:[%s296_s11 + $0xa0] sm:$0xff]  ;;  %v138_v22 = vld [vmem:[%s296_s11 + $0xa8] sm:$0xff]  ;;  %v124_v28 = vld [vmem:[%s296_s11 + $0x38] sm:$0xff] }
  0x17   : > { %v155_v12 = vmax.bf16 %v154_v5, %v129_v4  ;;  %v141_v21 = vld [vmem:[%s296_s11 + $0xc0] sm:$0xff]  ;;  %v163_v23 = vmax.bf16 %v162_v14, %v130_v13  ;;  %v128_v29 = vld [vmem:[%s296_s11 + $0x58] sm:$0xff]  ;;  %v135_v32 = vld [vmem:[%s296_s11 + $0x90] sm:$0xff]  ;;  %v177_v33 = vmax.bf16 %v124_v28, %v120_v27  ;;  %v171_v36 = vmax.bf16 %v170_v26, %v131_v24 }
  0x18   : > { %v145_v30 = vld [vmem:[%s296_s11 + $0xe0] sm:$0xff]  ;;  %v142_v35 = vld [vmem:[%s296_s11 + $0xc8] sm:$0xff]  ;;  %v132_v37 = vld [vmem:[%s296_s11 + $0x78] sm:$0xff] }
  0x19   : > { %v156_v18 = vmax.bf16 %v155_v12, %v133_v9  ;;  %v164_v31 = vmax.bf16 %v163_v23, %v134_v19  ;;  %v149_v38 = vld [vmem:[%s296_s11 + $0x100] sm:$0xff]  ;;  %v139_v40 = vld [vmem:[%s296_s11 + $0xb0] sm:$0xff]  ;;  %v178_v41 = vmax.bf16 %v177_v33, %v128_v29  ;;  %v146_v43 = vld [vmem:[%s296_s11 + $0xe8] sm:$0xff]  ;;  %v172_v44 = vmax.bf16 %v171_v36, %v135_v32 }
  0x1a   : > { %v136_v45 = vld [vmem:[%s296_s11 + $0x98] sm:$0xff]  ;;  %v143_v47 = vld [vmem:[%s296_s11 + $0xd0] sm:$0xff]  ;;  %v150_v50 = vld [vmem:[%s296_s11 + $0x108] sm:$0xff] }
  0x1b   : > { %v157_v25 = vmax.bf16 %v156_v18, %v137_v11  ;;  %v165_v39 = vmax.bf16 %v164_v31, %v138_v22  ;;  %v179_v48 = vmax.bf16 %v178_v41, %v132_v37  ;;  %v173_v51 = vmax.bf16 %v172_v44, %v139_v40  ;;  %v140_v52 = vld [vmem:[%s296_s11 + $0xb8] sm:$0xff]  ;;  %v147_v54 = vld [vmem:[%s296_s11 + $0xf0] sm:$0xff] }
  0x1c   : > { %v144_v57 = vld [vmem:[%s296_s11 + $0xd8] sm:$0xff]  ;;  %v151_v59 = vld [vmem:[%s296_s11 + $0x110] sm:$0xff] }
  0x1d   : > { %v158_v34 = vmax.bf16 %v157_v25, %v141_v21  ;;  %v166_v46 = vmax.bf16 %v165_v39, %v142_v35  ;;  %v180_v55 = vmax.bf16 %v179_v48, %v136_v45  ;;  %v174_v56 = vmax.bf16 %v173_v51, %v143_v47  ;;  %v148_v62 = vld [vmem:[%s296_s11 + $0xf8] sm:$0xff] }
  0x1e   : > { %v152_v1 = vld [vmem:[%s296_s11 + $0x118] sm:$0xff] }
  0x1f   : > { %v159_v42 = vmax.bf16 %v158_v34, %v145_v30  ;;  %v167_v53 = vmax.bf16 %v166_v46, %v146_v43  ;;  %v181_v60 = vmax.bf16 %v180_v55, %v140_v52  ;;  %v175_v61 = vmax.bf16 %v174_v56, %v147_v54 }
  0x21   : > { %v160_v49 = vmax.bf16 %v159_v42, %v149_v38  ;;  %v168_v58 = vmax.bf16 %v167_v53, %v150_v50  ;;  %v182_v63 = vmax.bf16 %v181_v60, %v144_v57  ;;  %v176_v0 = vmax.bf16 %v175_v61, %v151_v59 }
  0x23   : > { %185 = vst [vmem:[%s116_s15] sm:$0xff] %v160_v49  ;;  %186 = vst [vmem:[%s116_s15 + $0x8] sm:$0xff] %v168_v58  ;;  %v183_v2 = vmax.bf16 %v182_v63, %v148_v62 }
  0x24   : > { %187 = vst [vmem:[%s116_s15 + $0x10] sm:$0xff] %v176_v0 }
  0x25   : > { %v184_v3 = vmax.bf16 %v183_v2, %v152_v1 }
  0x27   : > { %188 = vst [vmem:[%s116_s15 + $0x18] sm:$0xff] %v184_v3 }
  0x28 PF: > { %s11_s6 = sadd.s32 1, %s270_s6  }
  0x29   : > { %p8_p4 = scmp.ge.s32.totalorder %s11_s6, 4  }
  0x2b   :  { %10 = sbr.rel (!%p8_p4) target bundleno = 1 (0x1), region = 54 }

// kernel: alexnet_like_forward.11
= control target key start
LH: loop header
LB: loop body
LE: loop exit
PB: predicated region body
PF: predicated region fallthrough
CT: control target
= control target key end

     0   :  { %s2998_s1 = inlined_call_operand.vmem [shape: bf16[1,1152,256], index: 1, kind: input, shape index: {}]   ;;  %s2999_s0 = inlined_call_operand.vmem [shape: bf16[1,80,1152], index: 0, kind: input, shape index: {}]   ;;  %s3000_s2 = inlined_call_operand.vmem [shape: f32[1,1,256], index: 2, kind: input, shape index: {}]   ;;  %s3001_s3 = inlined_call_operand.vmem [shape: f32[1,1,256], index: 3, kind: input, shape index: {}]   ;;  %s3002_s4 = inlined_call_operand.vmem [shape: f32[1,80,256], index: 4, kind: output, shape index: {}]  }
   0x1   :  { %v1971_v0 = vld [vmem:[%s2998_s1 + $0x4] ss:$8 sps:$4 sm:$0xff]   ;;  %v1975_v2 = vld [vmem:[%s2998_s1] ss:$8 sps:$4 sm:$0xff]   ;;  %v1977_v4 = vld [vmem:[%s2998_s1 + $0x14] ss:$8 sps:$4 sm:$0xff]  }
   0x2   :  { %v1973_v1 = vld [vmem:[%s2998_s1 + $0x204] ss:$8 sps:$4 sm:$0xff]   ;;  %1162 = vmatprep.subr.bf16.mxu1 %v1971_v0  ;;  %v1976_v3 = vld [vmem:[%s2998_s1 + $0x200] ss:$8 sps:$4 sm:$0xff]   ;;  %v1979_v5 = vld [vmem:[%s2998_s1 + $0x214] ss:$8 sps:$4 sm:$0xff]  }
   0x3   :  { %1328 = vmatprep.subr.bf16.mxu0 %v1973_v1  ;;  %1163 = vmatpush1.bf16.msra.mxu1 %v1975_v2  ;;  %v1981_v6 = vld [vmem:[%s2998_s1 + $0x10] ss:$8 sps:$4 sm:$0xff]   ;;  %v1983_v8 = vld [vmem:[%s2998_s1 + $0x24] ss:$8 sps:$4 sm:$0xff]   ;;  %v1987_v10 = vld [vmem:[%s2998_s1 + $0x20] ss:$8 sps:$4 sm:$0xff]  }
   0x4   :  { %1329 = vmatpush1.bf16.msra.mxu0 %v1976_v3  ;;  %1164 = vmatprep.subr.bf16.mxu1 %v1977_v4  ;;  %v1982_v7 = vld [vmem:[%s2998_s1 + $0x210] ss:$8 sps:$4 sm:$0xff]   ;;  %v1985_v9 = vld [vmem:[%s2998_s1 + $0x224] ss:$8 sps:$4 sm:$0xff]   ;;  %v1988_v11 = vld [vmem:[%s2998_s1 + $0x220] ss:$8 sps:$4 sm:$0xff]  }
   0x5   :  { %1330 = vmatprep.subr.bf16.mxu0 %v1979_v5  ;;  %v1989_v12 = vld [vmem:[%s2998_s1 + $0x34] ss:$8 sps:$4 sm:$0xff]   ;;  %v1993_v14 = vld [vmem:[%s2998_s1 + $0x30] ss:$8 sps:$4 sm:$0xff]   ;;  %v1995_v16 = vld [vmem:[%s2998_s1 + $0x44] ss:$8 sps:$4 sm:$0xff]  }
   0x6   :  { %v1991_v13 = vld [vmem:[%s2998_s1 + $0x234] ss:$8 sps:$4 sm:$0xff]   ;;  %v1994_v15 = vld [vmem:[%s2998_s1 + $0x230] ss:$8 sps:$4 sm:$0xff]   ;;  %v1997_v17 = vld [vmem:[%s2998_s1 + $0x244] ss:$8 sps:$4 sm:$0xff]  }
   0x7   :  { %1165 = vmatpush1.bf16.msra.mxu1 %v1981_v6  ;;  %v1999_v18 = vld [vmem:[%s2998_s1 + $0x40] ss:$8 sps:$4 sm:$0xff]   ;;  %v2001_v20 = vld [vmem:[%s2998_s1 + $0x54] ss:$8 sps:$4 sm:$0xff]   ;;  %v2005_v22 = vld [vmem:[%s2998_s1 + $0x50] ss:$8 sps:$4 sm:$0xff]  }
   0x8   :  { %1331 = vmatpush1.bf16.msra.mxu0 %v1982_v7  ;;  %1166 = vmatprep.subr.bf16.mxu1 %v1983_v8  ;;  %v2000_v19 = vld [vmem:[%s2998_s1 + $0x240] ss:$8 sps:$4 sm:$0xff]   ;;  %v2003_v21 = vld [vmem:[%s2998_s1 + $0x254] ss:$8 sps:$4 sm:$0xff]   ;;  %v2006_v23 = vld [vmem:[%s2998_s1 + $0x250] ss:$8 sps:$4 sm:$0xff]  }
   0x9   :  { %1332 = vmatprep.subr.bf16.mxu0 %v1985_v9  ;;  %v2007_v24 = vld [vmem:[%s2998_s1 + $0x64] ss:$8 sps:$4 sm:$0xff]   ;;  %v2011_v26 = vld [vmem:[%s2998_s1 + $0x60] ss:$8 sps:$4 sm:$0xff]   ;;  %v2013_v28 = vld [vmem:[%s2998_s1 + $0x74] ss:$8 sps:$4 sm:$0xff]  }
   0xa   :  { %v2009_v25 = vld [vmem:[%s2998_s1 + $0x264] ss:$8 sps:$4 sm:$0xff]   ;;  %v2012_v27 = vld [vmem:[%s2998_s1 + $0x260] ss:$8 sps:$4 sm:$0xff]   ;;  %v2015_v29 = vld [vmem:[%s2998_s1 + $0x274] ss:$8 sps:$4 sm:$0xff]  }
   0xb   :  { %1167 = vmatpush1.bf16.msra.mxu1 %v1987_v10  ;;  %v2017_v30 = vld [vmem:[%s2998_s1 + $0x70] ss:$8 sps:$4 sm:$0xff]   ;;  %v2019_v32 = vld [vmem:[%s2998_s1 + $0x84] ss:$8 sps:$4 sm:$0xff]   ;;  %v2023_v34 = vld [vmem:[%s2998_s1 + $0x80] ss:$8 sps:$4 sm:$0xff]  }
   0xc   :  { %1333 = vmatpush1.bf16.msra.mxu0 %v1988_v11  ;;  %1168 = vmatprep.subr.bf16.mxu1 %v1989_v12  ;;  %v2018_v31 = vld [vmem:[%s2998_s1 + $0x270] ss:$8 sps:$4 sm:$0xff]   ;;  %v2021_v33 = vld [vmem:[%s2998_s1 + $0x284] ss:$8 sps:$4 sm:$0xff]   ;;  %v2024_v35 = vld [vmem:[%s2998_s1 + $0x280] ss:$8 sps:$4 sm:$0xff]  }
   0xd   :  { %1334 = vmatprep.subr.bf16.mxu0 %v1991_v13  ;;  %v2025_v36 = vld [vmem:[%s2998_s1 + $0x94] ss:$8 sps:$4 sm:$0xff]   ;;  %v2029_v38 = vld [vmem:[%s2998_s1 + $0x90] ss:$8 sps:$4 sm:$0xff]   ;;  %v2031_v40 = vld [vmem:[%s2998_s1 + $0xa4] ss:$8 sps:$4 sm:$0xff]  }
   0xe   :  { %v2027_v37 = vld [vmem:[%s2998_s1 + $0x294] ss:$8 sps:$4 sm:$0xff]   ;;  %v2030_v39 = vld [vmem:[%s2998_s1 + $0x290] ss:$8 sps:$4 sm:$0xff]   ;;  %v2033_v41 = vld [vmem:[%s2998_s1 + $0x2a4] ss:$8 sps:$4 sm:$0xff]  }
   0xf   :  { %1169 = vmatpush1.bf16.msra.mxu1 %v1993_v14  ;;  %v2035_v42 = vld [vmem:[%s2998_s1 + $0xa0] ss:$8 sps:$4 sm:$0xff]   ;;  %v2037_v44 = vld [vmem:[%s2998_s1 + $0xb4] ss:$8 sps:$4 sm:$0xff]   ;;  %v2041_v46 = vld [vmem:[%s2998_s1 + $0xb0] ss:$8 sps:$4 sm:$0xff]  }
  0x10   :  { %1335 = vmatpush1.bf16.msra.mxu0 %v1994_v15  ;;  %1170 = vmatprep.subr.bf16.mxu1 %v1995_v16  ;;  %v2036_v43 = vld [vmem:[%s2998_s1 + $0x2a0] ss:$8 sps:$4 sm:$0xff]   ;;  %v2039_v45 = vld [vmem:[%s2998_s1 + $0x2b4] ss:$8 sps:$4 sm:$0xff]   ;;  %v2042_v47 = vld [vmem:[%s2998_s1 + $0x2b0] ss:$8 sps:$4 sm:$0xff]  }
  0x11   :  { %1336 = vmatprep.subr.bf16.mxu0 %v1997_v17  ;;  %v2069_v48 = vld [vmem:[%s2999_s0 + $0x4] ss:$36 sps:$4 sm:$0xff]   ;;  %v2075_v51 = vld [vmem:[%s2999_s0 + $0x14] ss:$36 sps:$4 sm:$0xff]   ;;  %v2121_v12 = vld [vmem:[%s2999_s0 + $0x4c] ss:$36 sps:$4 sm:$0xff]  }
  0x12   :  { %v2043_v49 = vld [vmem:[%s2998_s1 + $0xc4] ss:$8 sps:$4 sm:$0xff]   ;;  %1194 = vmatprep.mubr.bf16.mxu1 %v2069_v48  ;;  %v2047_v52 = vld [vmem:[%s2998_s1 + $0xc0] ss:$8 sps:$4 sm:$0xff]   ;;  %v2049_v54 = vld [vmem:[%s2998_s1 + $0xd4] ss:$8 sps:$4 sm:$0xff]   ;;  %1360 = vmatprep.mubr.bf16.mxu0 %v2075_v51 }
  0x13   :  { %1171 = vmatpush1.bf16.msra.mxu1 %v1999_v18  ;;  %v2045_v50 = vld [vmem:[%s2998_s1 + $0x2c4] ss:$8 sps:$4 sm:$0xff]   ;;  %v2048_v53 = vld [vmem:[%s2998_s1 + $0x2c0] ss:$8 sps:$4 sm:$0xff]   ;;  %v2051_v55 = vld [vmem:[%s2998_s1 + $0x2d4] ss:$8 sps:$4 sm:$0xff]  }
  0x14   :  { %1337 = vmatpush1.bf16.msra.mxu0 %v2000_v19  ;;  %1172 = vmatprep.subr.bf16.mxu1 %v2001_v20  ;;  %v2053_v56 = vld [vmem:[%s2998_s1 + $0xd0] ss:$8 sps:$4 sm:$0xff]   ;;  %v2055_v58 = vld [vmem:[%s2998_s1 + $0xe4] ss:$8 sps:$4 sm:$0xff]   ;;  %v2059_v60 = vld [vmem:[%s2998_s1 + $0xe0] ss:$8 sps:$4 sm:$0xff]  }
  0x15   :  { %1338 = vmatprep.subr.bf16.mxu0 %v2003_v21  ;;  %v2054_v57 = vld [vmem:[%s2998_s1 + $0x2d0] ss:$8 sps:$4 sm:$0xff]   ;;  %v2057_v59 = vld [vmem:[%s2998_s1 + $0x2e4] ss:$8 sps:$4 sm:$0xff]   ;;  %v2060_v61 = vld [vmem:[%s2998_s1 + $0x2e0] ss:$8 sps:$4 sm:$0xff]  }
  0x16   :  { %v2061_v62 = vld [vmem:[%s2998_s1 + $0xf4] ss:$8 sps:$4 sm:$0xff]   ;;  %v2065_v0 = vld [vmem:[%s2998_s1 + $0xf0] ss:$8 sps:$4 sm:$0xff]   ;;  %v2072_v2 = vld [vmem:[%s2998_s1 + $0x104] ss:$8 sps:$4 sm:$0xff]  }
  0x17   :  { %1173 = vmatpush1.bf16.msra.mxu1 %v2005_v22  ;;  %v2063_v63 = vld [vmem:[%s2998_s1 + $0x2f4] ss:$8 sps:$4 sm:$0xff]   ;;  %v2066_v1 = vld [vmem:[%s2998_s1 + $0x2f0] ss:$8 sps:$4 sm:$0xff]   ;;  %v2078_v3 = vld [vmem:[%s2998_s1 + $0x304] ss:$8 sps:$4 sm:$0xff]  }
  0x18   :  { %1339 = vmatpush1.bf16.msra.mxu0 %v2006_v23  ;;  %1174 = vmatprep.subr.bf16.mxu1 %v2007_v24  ;;  %v2067_v4 = vld [vmem:[%s2999_s0] ss:$36 sps:$4 sm:$0xff]   ;;  %v2073_v6 = vld [vmem:[%s2999_s0 + $0x10] ss:$36 sps:$4 sm:$0xff]   ;;  %v2125_v18 = vld [vmem:[%s2999_s0 + $0x48] ss:$36 sps:$4 sm:$0xff]  }
  0x19   :  { %1340 = vmatprep.subr.bf16.mxu0 %v2009_v25  ;;  %v2070_v5 = vld [vmem:[%s2998_s1 + $0x100] ss:$8 sps:$4 sm:$0xff]   ;;  %v2081_v8 = vld [vmem:[%s2998_s1 + $0x114] ss:$8 sps:$4 sm:$0xff]   ;;  %v2079_v10 = vld [vmem:[%s2998_s1 + $0x110] ss:$8 sps:$4 sm:$0xff]  }
  0x1a   :  { %v2076_v7 = vld [vmem:[%s2998_s1 + $0x300] ss:$8 sps:$4 sm:$0xff]   ;;  %v2084_v9 = vld [vmem:[%s2998_s1 + $0x314] ss:$8 sps:$4 sm:$0xff]   ;;  %v2082_v11 = vld [vmem:[%s2998_s1 + $0x310] ss:$8 sps:$4 sm:$0xff]  }
  0x1b   :  { %1175 = vmatpush1.bf16.msra.mxu1 %v2011_v26  ;;  %v2087_v13 = vld [vmem:[%s2998_s1 + $0x124] ss:$8 sps:$4 sm:$0xff]   ;;  %v2123_v14 = vld [vmem:[%s2999_s0 + $0x5c] ss:$36 sps:$4 sm:$0xff]   ;;  %v2091_v22 = vld [vmem:[%s2998_s1 + $0x130] ss:$8 sps:$4 sm:$0xff]  }
  0x1c   :  { %1341 = vmatpush1.bf16.msra.mxu0 %v2012_v27  ;;  %1176 = vmatprep.subr.bf16.mxu1 %v2013_v28  ;;  %v2090_v15 = vld [vmem:[%s2998_s1 + $0x324] ss:$8 sps:$4 sm:$0xff]   ;;  %v2085_v16 = vld [vmem:[%s2998_s1 + $0x120] ss:$8 sps:$4 sm:$0xff]   ;;  %v2129_v19 = vld [vmem:[%s2999_s0 + $0x58] ss:$36 sps:$4 sm:$0xff]  }
  0x1d   :  { %1342 = vmatprep.subr.bf16.mxu0 %v2015_v29  ;;  %v2088_v17 = vld [vmem:[%s2998_s1 + $0x320] ss:$8 sps:$4 sm:$0xff]   ;;  %v2093_v20 = vld [vmem:[%s2998_s1 + $0x134] ss:$8 sps:$4 sm:$0xff]   ;;  %v2094_v23 = vld [vmem:[%s2998_s1 + $0x330] ss:$8 sps:$4 sm:$0xff]  }
  0x1e   :  { %v2096_v21 = vld [vmem:[%s2998_s1 + $0x334] ss:$8 sps:$4 sm:$0xff]   ;;  %v2099_v25 = vld [vmem:[%s2998_s1 + $0x144] ss:$8 sps:$4 sm:$0xff]   ;;  %v2097_v28 = vld [vmem:[%s2998_s1 + $0x140] ss:$8 sps:$4 sm:$0xff]  }
  0x1f   :  { %1177 = vmatpush1.bf16.msra.mxu1 %v2017_v30  ;;  %v2139_v24 = vld [vmem:[%s2999_s0 + $0x94] ss:$36 sps:$4 sm:$0xff]   ;;  %v2141_v26 = vld [vmem:[%s2999_s0 + $0xa4] ss:$36 sps:$4 sm:$0xff]  }
  0x20   :  { %1343 = vmatpush1.bf16.msra.mxu0 %v2018_v31  ;;  %1178 = vmatprep.subr.bf16.mxu1 %v2019_v32  ;;  %v2102_v27 = vld [vmem:[%s2998_s1 + $0x344] ss:$8 sps:$4 sm:$0xff]   ;;  %v2100_v29 = vld [vmem:[%s2998_s1 + $0x340] ss:$8 sps:$4 sm:$0xff]   ;;  %v2143_v30 = vld [vmem:[%s2999_s0 + $0x90] ss:$36 sps:$4 sm:$0xff]  }
  0x21   :  { %1344 = vmatprep.subr.bf16.mxu0 %v2021_v33  ;;  %v2147_v31 = vld [vmem:[%s2999_s0 + $0xa0] ss:$36 sps:$4 sm:$0xff]   ;;  %v2105_v32 = vld [vmem:[%s2998_s1 + $0x154] ss:$8 sps:$4 sm:$0xff]  }
  0x22   :  { %v2108_v33 = vld [vmem:[%s2998_s1 + $0x354] ss:$8 sps:$4 sm:$0xff]   ;;  %v2175_v48 = vld [vmem:[%s2999_s0 + $0x124] ss:$36 sps:$4 sm:$0xff]  }
  0x23   :  { %1179 = vmatpush1.bf16.msra.mxu1 %v2023_v34  ;;  %v2103_v34 = vld [vmem:[%s2998_s1 + $0x150] ss:$8 sps:$4 sm:$0xff]   ;;  %v2132_v51 = vld [vmem:[%s2998_s1 + $0x384] ss:$8 sps:$4 sm:$0xff]  }
  0x24   :  { %1345 = vmatpush1.bf16.msra.mxu0 %v2024_v35  ;;  %1180 = vmatprep.subr.bf16.mxu1 %v2025_v36  ;;  %v2106_v35 = vld [vmem:[%s2998_s1 + $0x350] ss:$8 sps:$4 sm:$0xff]   ;;  %v2157_v36 = vld [vmem:[%s2999_s0 + $0xdc] ss:$36 sps:$4 sm:$0xff]  }
  0x25   :  { %1346 = vmatprep.subr.bf16.mxu0 %v2027_v37  ;;  %v2111_v37 = vld [vmem:[%s2998_s1 + $0x164] ss:$8 sps:$4 sm:$0xff]  }
  0x27   :  { %1181 = vmatpush1.bf16.msra.mxu1 %v2029_v38  ;;  %v2159_v38 = vld [vmem:[%s2999_s0 + $0xec] ss:$36 sps:$4 sm:$0xff]  }
  0x28   :  { %1347 = vmatpush1.bf16.msra.mxu0 %v2030_v39  ;;  %1182 = vmatprep.subr.bf16.mxu1 %v2031_v40  ;;  %v2114_v39 = vld [vmem:[%s2998_s1 + $0x364] ss:$8 sps:$4 sm:$0xff]   ;;  %v2109_v40 = vld [vmem:[%s2998_s1 + $0x160] ss:$8 sps:$4 sm:$0xff]  }
  0x29   :  { %1348 = vmatprep.subr.bf16.mxu0 %v2033_v41  ;;  %v2112_v41 = vld [vmem:[%s2998_s1 + $0x360] ss:$8 sps:$4 sm:$0xff]  }
  0x2b   :  { %1183 = vmatpush1.bf16.msra.mxu1 %v2035_v42  ;;  %v2161_v42 = vld [vmem:[%s2999_s0 + $0xd8] ss:$36 sps:$4 sm:$0xff]  }
  0x2c   :  { %1349 = vmatpush1.bf16.msra.mxu0 %v2036_v43  ;;  %1184 = vmatprep.subr.bf16.mxu1 %v2037_v44  ;;  %v2165_v43 = vld [vmem:[%s2999_s0 + $0xe8] ss:$36 sps:$4 sm:$0xff]   ;;  %v2117_v44 = vld [vmem:[%s2998_s1 + $0x174] ss:$8 sps:$4 sm:$0xff]  }
  0x2d   :  { %1350 = vmatprep.subr.bf16.mxu0 %v2039_v45  ;;  %v2120_v45 = vld [vmem:[%s2998_s1 + $0x374] ss:$8 sps:$4 sm:$0xff]  }
  0x2f   :  { %1185 = vmatpush1.bf16.msra.mxu1 %v2041_v46  ;;  %v2115_v46 = vld [vmem:[%s2998_s1 + $0x170] ss:$8 sps:$4 sm:$0xff]  }
  0x30   :  { %1351 = vmatpush1.bf16.msra.mxu0 %v2042_v47  ;;  %1186 = vmatprep.subr.bf16.mxu1 %v2043_v49  ;;  %v2118_v47 = vld [vmem:[%s2998_s1 + $0x370] ss:$8 sps:$4 sm:$0xff]   ;;  %v2128_v49 = vld [vmem:[%s2998_s1 + $0x184] ss:$8 sps:$4 sm:$0xff]  }
  0x31   :  { %1352 = vmatprep.subr.bf16.mxu0 %v2045_v50  ;;  %v2177_v50 = vld [vmem:[%s2999_s0 + $0x134] ss:$36 sps:$4 sm:$0xff]  }
  0x33   :  { %1187 = vmatpush1.bf16.msra.mxu1 %v2047_v52  ;;  %v2126_v52 = vld [vmem:[%s2998_s1 + $0x180] ss:$8 sps:$4 sm:$0xff]  }
  0x34   :  { %1353 = vmatpush1.bf16.msra.mxu0 %v2048_v53  ;;  %1188 = vmatprep.subr.bf16.mxu1 %v2049_v54  ;;  %v2130_v53 = vld [vmem:[%s2998_s1 + $0x380] ss:$8 sps:$4 sm:$0xff]  }
  0x35   :  { %1354 = vmatprep.subr.bf16.mxu0 %v2051_v55  ;;  %v2179_v54 = vld [vmem:[%s2999_s0 + $0x120] ss:$36 sps:$4 sm:$0xff]   ;;  %v2183_v55 = vld [vmem:[%s2999_s0 + $0x130] ss:$36 sps:$4 sm:$0xff]  }
  0x37   :  { %1189 = vmatpush1.bf16.msra.mxu1 %v2053_v56  ;;  %v2135_v56 = vld [vmem:[%s2998_s1 + $0x194] ss:$8 sps:$4 sm:$0xff]  }
  0x38   :  { %1355 = vmatpush1.bf16.msra.mxu0 %v2054_v57  ;;  %1190 = vmatprep.subr.bf16.mxu1 %v2055_v58  ;;  %v2138_v57 = vld [vmem:[%s2998_s1 + $0x394] ss:$8 sps:$4 sm:$0xff]   ;;  %v2133_v58 = vld [vmem:[%s2998_s1 + $0x190] ss:$8 sps:$4 sm:$0xff]  }
  0x39   :  { %1356 = vmatprep.subr.bf16.mxu0 %v2057_v59  ;;  %v2136_v59 = vld [vmem:[%s2998_s1 + $0x390] ss:$8 sps:$4 sm:$0xff]  }
  0x3b   :  { %1191 = vmatpush1.bf16.msra.mxu1 %v2059_v60  ;;  %v2146_v60 = vld [vmem:[%s2998_s1 + $0x1a4] ss:$8 sps:$4 sm:$0xff]  }
  0x3c   :  { %1357 = vmatpush1.bf16.msra.mxu0 %v2060_v61  ;;  %1192 = vmatprep.subr.bf16.mxu1 %v2061_v62  ;;  %v2195_v61 = vld [vmem:[%s2999_s0 + $0xc] ss:$36 sps:$4 sm:$0xff]  }
  0x3d   :  { %1358 = vmatprep.subr.bf16.mxu0 %v2063_v63  ;;  %v2150_v62 = vld [vmem:[%s2998_s1 + $0x3a4] ss:$8 sps:$4 sm:$0xff]   ;;  %v2198_v63 = vld [vmem:[%s2999_s0 + $0x1c] ss:$36 sps:$4 sm:$0xff]  }
  0x3f   :  { %1193 = vmatpush1.bf16.msra.mxu1 %v2065_v0  ;;  %v2144_v0 = vld [vmem:[%s2998_s1 + $0x1a0] ss:$8 sps:$4 sm:$0xff]  }
  0x40   :  { %1359 = vmatpush1.bf16.msra.mxu0 %v2066_v1  ;;  %1245 = vmatprep.subr.bf16.mxu1 %v2072_v2  ;;  %v2148_v1 = vld [vmem:[%s2998_s1 + $0x3a0] ss:$8 sps:$4 sm:$0xff]   ;;  %v2153_v2 = vld [vmem:[%s2998_s1 + $0x1b4] ss:$8 sps:$4 sm:$0xff]  }
  0x41   :  { %1411 = vmatprep.subr.bf16.mxu0 %v2078_v3  ;;  %v2156_v3 = vld [vmem:[%s2998_s1 + $0x3b4] ss:$8 sps:$4 sm:$0xff]  }
  0x42   :  { %1195 = vmatmul.mubr.bf16.vlgmr.msra.gmra.mrb[0].mxu1 %v2067_v4  ;;  %v2151_v4 = vld [vmem:[%s2998_s1 + $0x1b0] ss:$8 sps:$4 sm:$0xff]  }
  0x43   :  { %1361 = vmatmul.mubr.bf16.vlgmr.msra.gmra.mrb[0].mxu0 %v2073_v6  ;;  %1246 = vmatpush1.bf16.msra.mxu1 %v2070_v5  ;;  %v2154_v5 = vld [vmem:[%s2998_s1 + $0x3b0] ss:$8 sps:$4 sm:$0xff]   ;;  %v2164_v6 = vld [vmem:[%s2998_s1 + $0x1c4] ss:$8 sps:$4 sm:$0xff]  }
  0x44   :  { %1412 = vmatpush1.bf16.msra.mxu0 %v2076_v7  ;;  %1247 = vmatprep.subr.bf16.mxu1 %v2081_v8  ;;  %v2168_v7 = vld [vmem:[%s2998_s1 + $0x3c4] ss:$8 sps:$4 sm:$0xff]   ;;  %v2162_v8 = vld [vmem:[%s2998_s1 + $0x1c0] ss:$8 sps:$4 sm:$0xff]  }
  0x45   :  { %1413 = vmatprep.subr.bf16.mxu0 %v2084_v9  ;;  %1204 = vmatprep.mubr.bf16.mxu1 %v2121_v12  ;;  %v2166_v9 = vld [vmem:[%s2998_s1 + $0x3c0] ss:$8 sps:$4 sm:$0xff]   ;;  %v2169_v12 = vld [vmem:[%s2998_s1 + $0x1d0] ss:$8 sps:$4 sm:$0xff]  }
  0x46   :  { %1370 = vmatprep.mubr.bf16.mxu0 %v2123_v14  ;;  %v2182_v14 = vld [vmem:[%s2998_s1 + $0x1e4] ss:$8 sps:$4 sm:$0xff]  }
  0x47   :  { %1248 = vmatpush1.bf16.msra.mxu1 %v2079_v10  ;;  %v2171_v10 = vld [vmem:[%s2998_s1 + $0x1d4] ss:$8 sps:$4 sm:$0xff]  }
  0x48   :  { %1414 = vmatpush1.bf16.msra.mxu0 %v2082_v11  ;;  %1249 = vmatprep.subr.bf16.mxu1 %v2087_v13  ;;  %v2174_v11 = vld [vmem:[%s2998_s1 + $0x3d4] ss:$8 sps:$4 sm:$0xff]   ;;  %v2172_v13 = vld [vmem:[%s2998_s1 + $0x3d0] ss:$8 sps:$4 sm:$0xff]  }
  0x49   :  { %1415 = vmatprep.subr.bf16.mxu0 %v2090_v15  ;;  %v2186_v15 = vld [vmem:[%s2998_s1 + $0x3e4] ss:$8 sps:$4 sm:$0xff]  }
  0x4a   :  { %1205 = vmatmul.mubr.bf16.gmra.mrb[4].mxu1 %v2125_v18  ;;  %v2189_v18 = vld [vmem:[%s2998_s1 + $0x1f4] ss:$8 sps:$4 sm:$0xff]  }
  0x4b   :  { %1371 = vmatmul.mubr.bf16.gmra.mrb[4].mxu0 %v2129_v19  ;;  %1250 = vmatpush1.bf16.msra.mxu1 %v2085_v16  ;;  %v2180_v16 = vld [vmem:[%s2998_s1 + $0x1e0] ss:$8 sps:$4 sm:$0xff]   ;;  %v2192_v19 = vld [vmem:[%s2998_s1 + $0x3f4] ss:$8 sps:$4 sm:$0xff]  }
  0x4c   :  { %1416 = vmatpush1.bf16.msra.mxu0 %v2088_v17  ;;  %1251 = vmatprep.subr.bf16.mxu1 %v2093_v20  ;;  %v2184_v17 = vld [vmem:[%s2998_s1 + $0x3e0] ss:$8 sps:$4 sm:$0xff]   ;;  %v2187_v20 = vld [vmem:[%s2998_s1 + $0x1f0] ss:$8 sps:$4 sm:$0xff]  }
  0x4d   :  { %1417 = vmatprep.subr.bf16.mxu0 %v2096_v21  ;;  %1214 = vmatprep.mubr.bf16.mxu1 %v2139_v24  ;;  %v2190_v21 = vld [vmem:[%s2998_s1 + $0x3f0] ss:$8 sps:$4 sm:$0xff]  }
  0x4e   :  { %1380 = vmatprep.mubr.bf16.mxu0 %v2141_v26  ;;  %v2196_v24 = vld [vmem:[%s2999_s0 + $0x18] ss:$36 sps:$4 sm:$0xff]  }
  0x4f   :  { %1252 = vmatpush1.bf16.msra.mxu1 %v2091_v22  ;;  %v2201_v22 = vld [vmem:[%s2998_s1 + $0x404] ss:$8 sps:$4 sm:$0xff]   ;;  %v2205_v26 = vld [vmem:[%s2999_s0 + $0x54] ss:$36 sps:$4 sm:$0xff]  }
  0x50   :  { %1418 = vmatpush1.bf16.msra.mxu0 %v2094_v23  ;;  %1253 = vmatprep.subr.bf16.mxu1 %v2099_v25  ;;  %v2193_v23 = vld [vmem:[%s2999_s0 + $0x8] ss:$36 sps:$4 sm:$0xff]  }
  0x51   :  { %1419 = vmatprep.subr.bf16.mxu0 %v2102_v27  ;;  %v2199_v25 = vld [vmem:[%s2998_s1 + $0x400] ss:$8 sps:$4 sm:$0xff]   ;;  %v2204_v27 = vld [vmem:[%s2998_s1 + $0x414] ss:$8 sps:$4 sm:$0xff]  }
  0x52   :  { %1215 = vmatmul.mubr.bf16.gmra.mrb[8].mxu1 %v2143_v30  ;;  %v2213_v30 = vld [vmem:[%s2998_s1 + $0x424] ss:$8 sps:$4 sm:$0xff]  }
  0x53   :  { %1381 = vmatmul.mubr.bf16.gmra.mrb[8].mxu0 %v2147_v31  ;;  %1254 = vmatpush1.bf16.msra.mxu1 %v2097_v28  ;;  %v2207_v28 = vld [vmem:[%s2999_s0 + $0x64] ss:$36 sps:$4 sm:$0xff]   ;;  %v2209_v31 = vld [vmem:[%s2999_s0 + $0x50] ss:$36 sps:$4 sm:$0xff]  }
  0x54   :  { %1420 = vmatpush1.bf16.msra.mxu0 %v2100_v29  ;;  %1255 = vmatprep.subr.bf16.mxu1 %v2105_v32  ;;  %v2202_v29 = vld [vmem:[%s2998_s1 + $0x410] ss:$8 sps:$4 sm:$0xff]   ;;  %v2210_v32 = vld [vmem:[%s2999_s0 + $0x60] ss:$36 sps:$4 sm:$0xff]  }
  0x55   :  { %1421 = vmatprep.subr.bf16.mxu0 %v2108_v33  ;;  %1224 = vmatprep.mubr.bf16.mxu1 %v2157_v36  ;;  %v2211_v33 = vld [vmem:[%s2998_s1 + $0x420] ss:$8 sps:$4 sm:$0xff]   ;;  %v2220_v36 = vld [vmem:[%s2998_s1 + $0x434] ss:$8 sps:$4 sm:$0xff]  }
  0x56   :  { %1390 = vmatprep.mubr.bf16.mxu0 %v2159_v38  ;;  %v2225_v38 = vld [vmem:[%s2998_s1 + $0x444] ss:$8 sps:$4 sm:$0xff]  }
  0x57   :  { %1256 = vmatpush1.bf16.msra.mxu1 %v2103_v34  ;;  %v2214_v34 = vld [vmem:[%s2999_s0 + $0x9c] ss:$36 sps:$4 sm:$0xff]  }
  0x58   :  { %1422 = vmatpush1.bf16.msra.mxu0 %v2106_v35  ;;  %1257 = vmatprep.subr.bf16.mxu1 %v2111_v37  ;;  %v2216_v35 = vld [vmem:[%s2999_s0 + $0xac] ss:$36 sps:$4 sm:$0xff]  }
  0x59   :  { %1423 = vmatprep.subr.bf16.mxu0 %v2114_v39  ;;  %v2218_v37 = vld [vmem:[%s2998_s1 + $0x430] ss:$8 sps:$4 sm:$0xff]  }
  0x5a   :  { %1225 = vmatmul.mubr.bf16.gmra.mrb[12].mxu1 %v2161_v42  ;;  %v2221_v39 = vld [vmem:[%s2999_s0 + $0x98] ss:$36 sps:$4 sm:$0xff]   ;;  %v2226_v42 = vld [vmem:[%s2999_s0 + $0xe4] ss:$36 sps:$4 sm:$0xff]  }
  0x5b   :  { %1391 = vmatmul.mubr.bf16.gmra.mrb[12].mxu0 %v2165_v43  ;;  %1258 = vmatpush1.bf16.msra.mxu1 %v2109_v40  ;;  %v2222_v40 = vld [vmem:[%s2999_s0 + $0xa8] ss:$36 sps:$4 sm:$0xff]   ;;  %v2228_v43 = vld [vmem:[%s2999_s0 + $0xf4] ss:$36 sps:$4 sm:$0xff]  }
  0x5c   :  { %1424 = vmatpush1.bf16.msra.mxu0 %v2112_v41  ;;  %1259 = vmatprep.subr.bf16.mxu1 %v2117_v44  ;;  %v2223_v41 = vld [vmem:[%s2998_s1 + $0x440] ss:$8 sps:$4 sm:$0xff]   ;;  %v2234_v44 = vld [vmem:[%s2998_s1 + $0x454] ss:$8 sps:$4 sm:$0xff]  }
  0x5d   :  { %1425 = vmatprep.subr.bf16.mxu0 %v2120_v45  ;;  %1234 = vmatprep.mubr.bf16.mxu1 %v2175_v48  ;;  %v2232_v45 = vld [vmem:[%s2998_s1 + $0x450] ss:$8 sps:$4 sm:$0xff]  }
  0x5e   :  { %1400 = vmatprep.mubr.bf16.mxu0 %v2177_v50  ;;  %v2231_v48 = vld [vmem:[%s2999_s0 + $0xf0] ss:$36 sps:$4 sm:$0xff]   ;;  %v2235_v50 = vld [vmem:[%s2998_s1 + $0x460] ss:$8 sps:$4 sm:$0xff]  }
  0x5f   :  { %1260 = vmatpush1.bf16.msra.mxu1 %v2115_v46  ;;  %v2237_v46 = vld [vmem:[%s2998_s1 + $0x464] ss:$8 sps:$4 sm:$0xff]  }
  0x60   :  { %1426 = vmatpush1.bf16.msra.mxu0 %v2118_v47  ;;  %1261 = vmatprep.subr.bf16.mxu1 %v2128_v49  ;;  %v2230_v47 = vld [vmem:[%s2999_s0 + $0xe0] ss:$36 sps:$4 sm:$0xff]   ;;  %v2238_v49 = vld [vmem:[%s2999_s0 + $0x12c] ss:$36 sps:$4 sm:$0xff]  }
  0x61   :  { %1427 = vmatprep.subr.bf16.mxu0 %v2132_v51  ;;  %v2240_v51 = vld [vmem:[%s2999_s0 + $0x13c] ss:$36 sps:$4 sm:$0xff]  }
  0x62   :  { %1235 = vmatmul.mubr.bf16.gmra.mrb[16].mxu1 %v2179_v54  ;;  %v2242_v54 = vld [vmem:[%s2999_s0 + $0x128] ss:$36 sps:$4 sm:$0xff]  }
  0x63   :  { %1401 = vmatmul.mubr.bf16.gmra.mrb[16].mxu0 %v2183_v55  ;;  %1262 = vmatpush1.bf16.msra.mxu1 %v2126_v52  ;;  %v2246_v52 = vld [vmem:[%s2998_s1 + $0x474] ss:$8 sps:$4 sm:$0xff]  }
  0x64   :  { %1428 = vmatpush1.bf16.msra.mxu0 %v2130_v53  ;;  %1263 = vmatprep.subr.bf16.mxu1 %v2135_v56  ;;  %v2244_v53 = vld [vmem:[%s2998_s1 + $0x470] ss:$8 sps:$4 sm:$0xff]   ;;  %v2252_v56 = vmov 0  }
  0x65   :  { %1429 = vmatprep.subr.bf16.mxu0 %v2138_v57  ;;  %1277 = vmatprep.mubr.bf16.mxu1 %v2195_v61  ;;  %v2243_v55 = vld [vmem:[%s2999_s0 + $0x138] ss:$36 sps:$4 sm:$0xff]   ;;  %v2247_v57 = vld [vmem:[%s2999_s0 + $0x20] ss:$36 sps:$4 sm:$0xff]   ;;  %v2251_v61 = vld [vmem:[%s2999_s0 + $0xb0] ss:$36 sps:$4 sm:$0xff]  }
  0x66   :  { %1443 = vmatprep.mubr.bf16.mxu0 %v2198_v63 }
  0x67   :  { %1264 = vmatpush1.bf16.msra.mxu1 %v2133_v58  ;;  %v2248_v58 = vld [vmem:[%s2999_s0 + $0xf8] ss:$36 sps:$4 sm:$0xff]  }
  0x68   :  { %1430 = vmatpush1.bf16.msra.mxu0 %v2136_v59  ;;  %1265 = vmatprep.subr.bf16.mxu1 %v2146_v60  ;;  %v2249_v59 = vld [vmem:[%s2999_s0 + $0x68] ss:$36 sps:$4 sm:$0xff]   ;;  %v2250_v60 = vld [vmem:[%s2999_s0 + $0x140] ss:$36 sps:$4 sm:$0xff]  }
  0x69   :  { %1431 = vmatprep.subr.bf16.mxu0 %v2150_v62 }
  0x6b   :  { %1266 = vmatpush1.bf16.msra.mxu1 %v2144_v0 }
  0x6c   :  { %1432 = vmatpush1.bf16.msra.mxu0 %v2148_v1  ;;  %1267 = vmatprep.subr.bf16.mxu1 %v2153_v2 }
  0x6d   :  { %1433 = vmatprep.subr.bf16.mxu0 %v2156_v3 }
  0x6f   :  { %1268 = vmatpush1.bf16.msra.mxu1 %v2151_v4 }
  0x70   :  { %1434 = vmatpush1.bf16.msra.mxu0 %v2154_v5  ;;  %1269 = vmatprep.subr.bf16.mxu1 %v2164_v6 }
  0x71   :  { %1435 = vmatprep.subr.bf16.mxu0 %v2168_v7 }
  0x73   :  { %1270 = vmatpush1.bf16.msra.mxu1 %v2162_v8 }
  0x74   :  { %1436 = vmatpush1.bf16.msra.mxu0 %v2166_v9  ;;  %1271 = vmatprep.subr.bf16.mxu1 %v2171_v10 }
  0x75   :  { %1437 = vmatprep.subr.bf16.mxu0 %v2174_v11 }
  0x77   :  { %1272 = vmatpush1.bf16.msra.mxu1 %v2169_v12 }
  0x78   :  { %1438 = vmatpush1.bf16.msra.mxu0 %v2172_v13  ;;  %1273 = vmatprep.subr.bf16.mxu1 %v2182_v14 }
  0x79   :  { %1439 = vmatprep.subr.bf16.mxu0 %v2186_v15 }
  0x7b   :  { %1274 = vmatpush1.bf16.msra.mxu1 %v2180_v16 }
  0x7c   :  { %1440 = vmatpush1.bf16.msra.mxu0 %v2184_v17  ;;  %1275 = vmatprep.subr.bf16.mxu1 %v2189_v18 }
  0x7d   :  { %1441 = vmatprep.subr.bf16.mxu0 %v2192_v19 }
  0x7f   :  { %1276 = vmatpush1.bf16.msra.mxu1 %v2187_v20 }
  0x80   :  { %1442 = vmatpush1.bf16.msra.mxu0 %v2190_v21  ;;  %1874 = vmatprep.subr.bf16.mxu1 %v2201_v22  ;;  %v1579_v21 = vlaneseq }
  0x81   :  { %1494 = vmatprep.subr.bf16.mxu0 %v2201_v22 }
  0x82   :  { %1278 = vmatmul.mubr.bf16.vlgmr.msra.gmra.mrb[0].mxu1 %v2193_v23  ;;  %v1580_v23 = vshrl.u32 %v1579_v21, 7 }
  0x83   :  { %1444 = vmatmul.mubr.bf16.vlgmr.msra.gmra.mrb[0].mxu0 %v2196_v24  ;;  %1287 = vmatprep.mubr.bf16.mxu1 %v2205_v26 }
  0x84   :  { %1495 = vmatpush1.bf16.msra.mxu0 %v2199_v25  ;;  %1453 = vmatprep.mubr.bf16.mxu0 %v2207_v28 }
  0x85   :  { %1496 = vmatprep.subr.bf16.mxu0 %v2204_v27  ;;  %1882 = vmatpush1.bf16.msra.mxu1 %v2199_v25 }
  0x86   :  { %1875 = vmatprep.subr.bf16.mxu1 %v2204_v27 }
  0x88   :  { %1497 = vmatpush1.bf16.msra.mxu0 %v2202_v29 }
  0x89   :  { %1498 = vmatprep.subr.bf16.mxu0 %v2213_v30  ;;  %1883 = vmatpush1.bf16.msra.mxu1 %v2202_v29 }
  0x8a   :  { %1288 = vmatmul.mubr.bf16.gmra.mrb[4].mxu1 %v2209_v31  ;;  %1876 = vmatprep.subr.bf16.mxu1 %v2213_v30 }
  0x8b   :  { %1454 = vmatmul.mubr.bf16.gmra.mrb[4].mxu0 %v2210_v32  ;;  %1297 = vmatprep.mubr.bf16.mxu1 %v2214_v34 }
  0x8c   :  { %1499 = vmatpush1.bf16.msra.mxu0 %v2211_v33  ;;  %1463 = vmatprep.mubr.bf16.mxu0 %v2216_v35  ;;  %v1581_v35 = vsub.s32 0, %v1580_v23 }
  0x8d   :  { %1500 = vmatprep.subr.bf16.mxu0 %v2220_v36  ;;  %1884 = vmatpush1.bf16.msra.mxu1 %v2211_v33 }
  0x8e   :  { %1877 = vmatprep.subr.bf16.mxu1 %v2220_v36 }
  0x90   :  { %1501 = vmatpush1.bf16.msra.mxu0 %v2218_v37 }
  0x91   :  { %1502 = vmatprep.subr.bf16.mxu0 %v2225_v38  ;;  %1885 = vmatpush1.bf16.msra.mxu1 %v2218_v37  ;;  %v1577_v37 = vld [vmem:[%s3000_s2] sm:$0x3] }
  0x92   :  { %1298 = vmatmul.mubr.bf16.gmra.mrb[8].mxu1 %v2221_v39  ;;  %1878 = vmatprep.subr.bf16.mxu1 %v2225_v38  ;;  %v1585_v38 = vsub.s32 1, %v1580_v23  ;;  %v1609_v39 = vld [vmem:[%s3001_s3] sm:$0x3] }
  0x93   :  { %1464 = vmatmul.mubr.bf16.gmra.mrb[8].mxu0 %v2222_v40  ;;  %1307 = vmatprep.mubr.bf16.mxu1 %v2226_v42  ;;  %v2877_v40 = vrot.slane %v1577_v37, %v1581_v35 }
  0x94   :  { %1503 = vmatpush1.bf16.msra.mxu0 %v2223_v41  ;;  %1473 = vmatprep.mubr.bf16.mxu0 %v2228_v43  ;;  %v2879_v43 = vrot.slane %v1577_v37, %v1585_v38 }
  0x95   :  { %1504 = vmatprep.subr.bf16.mxu0 %v2234_v44  ;;  %1886 = vmatpush1.bf16.msra.mxu1 %v2223_v41 }
  0x96   :  { %1879 = vmatprep.subr.bf16.mxu1 %v2234_v44 }
  0x98   :  { %1505 = vmatpush1.bf16.msra.mxu0 %v2232_v45 }
  0x99   :  { %1506 = vmatprep.subr.bf16.mxu0 %v2237_v46  ;;  %1887 = vmatpush1.bf16.msra.mxu1 %v2232_v45  ;;  %v2881_v45 = vrot.slane %v1609_v39, %v1581_v35 }
  0x9a   :  { %1308 = vmatmul.mubr.bf16.gmra.mrb[12].mxu1 %v2230_v47  ;;  %1880 = vmatprep.subr.bf16.mxu1 %v2237_v46 }
  0x9b   :  { %1474 = vmatmul.mubr.bf16.gmra.mrb[12].mxu0 %v2231_v48  ;;  %1317 = vmatprep.mubr.bf16.mxu1 %v2238_v49 }
  0x9c   :  { %1483 = vmatprep.mubr.bf16.mxu0 %v2240_v51  ;;  %1507 = vmatpush1.bf16.msra.mxu0 %v2235_v50 }
  0x9d   :  { %1508 = vmatprep.subr.bf16.mxu0 %v2246_v52  ;;  %1888 = vmatpush1.bf16.msra.mxu1 %v2235_v50  ;;  %v2883_v50 = vrot.slane %v1609_v39, %v1585_v38 }
  0x9e   :  { %1881 = vmatprep.subr.bf16.mxu1 %v2246_v52 }
  0xa0   :  { %1509 = vmatpush1.bf16.msra.mxu0 %v2244_v53 }
  0xa1   :  { %1889 = vmatpush1.bf16.msra.mxu1 %v2244_v53 }
  0xa2   :  { %1318 = vmatmul.mubr.bf16.gmra.mrb[16].mxu1 %v2242_v54 }
  0xa3   :  { %1484 = vmatmul.mubr.bf16.gmra.mrb[16].mxu0 %v2243_v55  ;;  %1556 = vmatprep.mubr.bf16.mxu1 %v2252_v56 }
  0xa4   :  { %1526 = vmatprep.mubr.bf16.mxu0 %v2252_v56 }
  0xaa   :  { %1557 = vmatmul.mubr.bf16.vlgmr.msra.gmra.mrb[20].mxu1 %v2248_v58 }
  0xab   :  { %1527 = vmatmul.mubr.bf16.vlgmr.msra.gmra.mrb[0].mxu0 %v2247_v57  ;;  %1566 = vmatprep.mubr.bf16.mxu1 %v2252_v56 }
  0xac   :  { %1536 = vmatprep.mubr.bf16.mxu0 %v2252_v56 }
  0xb2   :  { %1567 = vmatmul.mubr.bf16.gmra.mrb[24].mxu1 %v2250_v60 }
  0xb3   :  { %1537 = vmatmul.mubr.bf16.gmra.mrb[4].mxu0 %v2249_v59 }
  0xb4   :  { %1546 = vmatprep.mubr.bf16.mxu0 %v2252_v56 }
  0xbb   :  { %1547 = vmatmul.mubr.bf16.gmra.mrb[8].mxu0 %v2251_v61 }
 0x155   :  { %v1279_v62 = vpop.f32.mrb[0].mxu1 }
 0x156   :  { %v1281_v63 = vpop.f32.mrb[1].mxu1 }
 0x157   :  { %v1283_v0 = vpop.f32.mrb[2].mxu1 }
 0x158   :  { %v2845_v1 = vpop.f32.mrb[3].mxu1 }
 0x15d   :  { %v2847_v2 = vpop.f32.mrb[4].mxu1 }
 0x15e   :  { %v2849_v3 = vpop.f32.mrb[5].mxu1 }
 0x15f   :  { %v2851_v4 = vpop.f32.mrb[6].mxu1 }
 0x160   :  { %v2853_v5 = vpop.f32.mrb[7].mxu1 }
 0x165   :  { %v2855_v6 = vpop.f32.mrb[8].mxu1 }
 0x166   :  { %v2857_v7 = vpop.f32.mrb[9].mxu1 }
 0x167   :  { %v2859_v8 = vpop.f32.mrb[10].mxu1 }
 0x168   :  { %v2861_v9 = vpop.f32.mrb[11].mxu1 }
 0x16d   :  { %v1309_v10 = vpop.f32.mrb[12].mxu1 }
 0x16e   :  { %v1475_v11 = vpop.f32.mrb[12].mxu0  ;;  %v1311_v13 = vpop.f32.mrb[13].mxu1 }
 0x16f   :  { %v1902_v12 = vadd.f32 %v1475_v11, %v1309_v10  ;;  %v1477_v14 = vpop.f32.mrb[13].mxu0  ;;  %v1313_v16 = vpop.f32.mrb[14].mxu1 }
 0x170   :  { %v1904_v15 = vadd.f32 %v1477_v14, %v1311_v13  ;;  %v1479_v17 = vpop.f32.mrb[14].mxu0  ;;  %v1315_v19 = vpop.f32.mrb[15].mxu1 }
 0x171   :  { %v1906_v18 = vadd.f32 %v1479_v17, %v1313_v16  ;;  %v1481_v20 = vpop.f32.mrb[15].mxu0 }
 0x172   :  { %v1908_v22 = vadd.f32 %v1481_v20, %v1315_v19 }
 0x175   :  { %v1319_v24 = vpop.f32.mrb[16].mxu1 }
 0x176   :  { %v1485_v25 = vpop.f32.mrb[16].mxu0  ;;  %v1321_v27 = vpop.f32.mrb[17].mxu1 }
 0x177   :  { %v2863_v26 = vadd.f32 %v1485_v25, %v1319_v24  ;;  %v1487_v28 = vpop.f32.mrb[17].mxu0  ;;  %v1323_v30 = vpop.f32.mrb[18].mxu1 }
 0x178   :  { %v2865_v29 = vadd.f32 %v1487_v28, %v1321_v27  ;;  %v1489_v31 = vpop.f32.mrb[18].mxu0  ;;  %v1325_v33 = vpop.f32.mrb[19].mxu1 }
 0x179   :  { %v2867_v32 = vadd.f32 %v1489_v31, %v1323_v30  ;;  %v1491_v34 = vpop.f32.mrb[19].mxu0 }
 0x17a   :  { %v2869_v36 = vadd.f32 %v1491_v34, %v1325_v33 }
 0x17d   :  { %v1558_v42 = vpop.f32.mrb[20].mxu1 }
 0x17e   :  { %v1528_v41 = vpop.f32.mrb[0].mxu0  ;;  %v1903_v46 = vadd.f32 %v1902_v12, %v1558_v42  ;;  %v1560_v48 = vpop.f32.mrb[21].mxu1 }
 0x17f   :  { %v1890_v44 = vadd.f32 %v1528_v41, %v1279_v62  ;;  %v1530_v47 = vpop.f32.mrb[1].mxu0  ;;  %v1905_v51 = vadd.f32 %v1904_v15, %v1560_v48  ;;  %v1562_v53 = vpop.f32.mrb[22].mxu1 }
 0x180   :  { %v1891_v49 = vadd.f32 %v1530_v47, %v1281_v63  ;;  %v1532_v52 = vpop.f32.mrb[2].mxu0  ;;  %v1601_v55 = vmul.f32 %v1903_v46, %v2877_v40  ;;  %v1907_v57 = vadd.f32 %v1906_v18, %v1562_v53  ;;  %v1564_v59 = vpop.f32.mrb[23].mxu1 }
 0x181   :  { %v1589_v54 = vmul.f32 %v1890_v44, %v2877_v40  ;;  %v1892_v56 = vadd.f32 %v1532_v52, %v1283_v0  ;;  %v1534_v58 = vpop.f32.mrb[3].mxu0  ;;  %v1602_v61 = vmul.f32 %v1905_v51, %v2879_v43  ;;  %v1909_v63 = vadd.f32 %v1908_v22, %v1564_v59 }
 0x182   :  { %v1590_v60 = vmul.f32 %v1891_v49, %v2879_v43  ;;  %v1893_v62 = vadd.f32 %v1534_v58, %v2845_v1  ;;  %v1633_v11 = vadd.f32 %v2881_v45, %v1601_v55  ;;  %v1603_v13 = vmul.f32 %v1907_v57, %v2877_v40 }
 0x183   :  { %v1621_v10 = vadd.f32 %v2881_v45, %v1589_v54  ;;  %v1591_v12 = vmul.f32 %v1892_v56, %v2877_v40  ;;  %v1634_v14 = vadd.f32 %v2883_v50, %v1602_v61  ;;  %v1604_v16 = vmul.f32 %v1909_v63, %v2879_v43 }
 0x184   :  { %v1622_v0 = vadd.f32 %v2883_v50, %v1590_v60  ;;  %v1592_v15 = vmul.f32 %v1893_v62, %v2879_v43  ;;  %v1653_v18 = vmax.f32 %v1633_v11, 0.0  ;;  %v1635_v19 = vadd.f32 %v2881_v45, %v1603_v13 }
 0x185   :  { %v1641_v17 = vmax.f32 %v1621_v10, 0.0  ;;  %v1623_v1 = vadd.f32 %v2881_v45, %v1591_v12  ;;  %v1654_v21 = vmax.f32 %v1634_v14, 0.0  ;;  %v1636_v23 = vadd.f32 %v2883_v50, %v1604_v16  ;;  %v1568_v25 = vpop.f32.mrb[24].mxu1 }
 0x186   :  { %v1642_v20 = vmax.f32 %v1622_v0, 0.0  ;;  %v1624_v22 = vadd.f32 %v2883_v50, %v1592_v15  ;;  %v1538_v24 = vpop.f32.mrb[4].mxu0  ;;  %1673 = vst [vmem:[%s3002_s4 + $0x60] sm:$0xff] %v1653_v18  ;;  %v1655_v28 = vmax.f32 %v1635_v19, 0.0  ;;  %v1911_v31 = vadd.f32 %v2863_v26, %v1568_v25  ;;  %v1570_v34 = vpop.f32.mrb[25].mxu1 }
 0x187   :  { %1661 = vst [vmem:[%s3002_s4] sm:$0xff] %v1641_v17  ;;  %v1643_v27 = vmax.f32 %v1623_v1, 0.0  ;;  %v1894_v30 = vadd.f32 %v1538_v24, %v2847_v2  ;;  %v1540_v33 = vpop.f32.mrb[5].mxu0  ;;  %1674 = vst [vmem:[%s3002_s4 + $0x68] sm:$0xff] %v1654_v21  ;;  %v1656_v37 = vmax.f32 %v1636_v23, 0.0  ;;  %v1913_v39 = vadd.f32 %v2865_v29, %v1570_v34  ;;  %v1572_v2 = vpop.f32.mrb[26].mxu1 }
 0x188   :  { %1662 = vst [vmem:[%s3002_s4 + $0x8] sm:$0xff] %v1642_v20  ;;  %v1644_v35 = vmax.f32 %v1624_v22, 0.0  ;;  %v1895_v38 = vadd.f32 %v1540_v33, %v2849_v3  ;;  %v1542_v41 = vpop.f32.mrb[6].mxu0  ;;  %1675 = vst [vmem:[%s3002_s4 + $0x70] sm:$0xff] %v1655_v28  ;;  %v1605_v42 = vmul.f32 %v1911_v31, %v2877_v40  ;;  %v1915_v3 = vadd.f32 %v2867_v32, %v1572_v2  ;;  %v1574_v29 = vpop.f32.mrb[27].mxu1 }
 0x189   :  { %1663 = vst [vmem:[%s3002_s4 + $0x10] sm:$0xff] %v1643_v27  ;;  %v1593_v26 = vmul.f32 %v1894_v30, %v2877_v40  ;;  %v1896_v44 = vadd.f32 %v1542_v41, %v2851_v4  ;;  %v1544_v46 = vpop.f32.mrb[7].mxu0  ;;  %1676 = vst [vmem:[%s3002_s4 + $0x78] sm:$0xff] %v1656_v37  ;;  %v1606_v48 = vmul.f32 %v1913_v39, %v2879_v43 }
 0x18a   :  { %1664 = vst [vmem:[%s3002_s4 + $0x18] sm:$0xff] %v1644_v35  ;;  %v1594_v47 = vmul.f32 %v1895_v38, %v2879_v43  ;;  %v1897_v49 = vadd.f32 %v1544_v46, %v2853_v5  ;;  %v1917_v4 = vadd.f32 %v2869_v36, %v1574_v29  ;;  %v1637_v51 = vadd.f32 %v2881_v45, %v1605_v42 }
 0x18b   :  { %v1625_v32 = vadd.f32 %v2881_v45, %v1593_v26  ;;  %v1595_v52 = vmul.f32 %v1896_v44, %v2877_v40  ;;  %v1607_v53 = vmul.f32 %v1915_v3, %v2877_v40  ;;  %v1638_v55 = vadd.f32 %v2883_v50, %v1606_v48 }
 0x18c   :  { %v1626_v54 = vadd.f32 %v2883_v50, %v1594_v47  ;;  %v1596_v56 = vmul.f32 %v1897_v49, %v2879_v43  ;;  %v1608_v57 = vmul.f32 %v1917_v4, %v2879_v43  ;;  %v1657_v5 = vmax.f32 %v1637_v51, 0.0 }
 0x18d   :  { %v1645_v58 = vmax.f32 %v1625_v32, 0.0  ;;  %v1627_v36 = vadd.f32 %v2881_v45, %v1595_v52  ;;  %v1639_v59 = vadd.f32 %v2881_v45, %v1607_v53  ;;  %v1658_v61 = vmax.f32 %v1638_v55, 0.0 }
 0x18e   :  { %v1646_v60 = vmax.f32 %v1626_v54, 0.0  ;;  %v1628_v62 = vadd.f32 %v2883_v50, %v1596_v56  ;;  %v1640_v63 = vadd.f32 %v2883_v50, %v1608_v57  ;;  %v1548_v10 = vpop.f32.mrb[8].mxu0  ;;  %1677 = vst [vmem:[%s3002_s4 + $0x80] sm:$0xff] %v1657_v5 }
 0x18f   :  { %1665 = vst [vmem:[%s3002_s4 + $0x20] sm:$0xff] %v1645_v58  ;;  %v1647_v11 = vmax.f32 %v1627_v36, 0.0  ;;  %v1659_v12 = vmax.f32 %v1639_v59, 0.0  ;;  %v1898_v13 = vadd.f32 %v1548_v10, %v2855_v6  ;;  %v1550_v0 = vpop.f32.mrb[9].mxu0  ;;  %1678 = vst [vmem:[%s3002_s4 + $0x88] sm:$0xff] %v1658_v61 }
 0x190   :  { %1666 = vst [vmem:[%s3002_s4 + $0x28] sm:$0xff] %v1646_v60  ;;  %v1648_v14 = vmax.f32 %v1628_v62, 0.0  ;;  %v1660_v15 = vmax.f32 %v1640_v63, 0.0  ;;  %v1899_v16 = vadd.f32 %v1550_v0, %v2857_v7  ;;  %v1552_v17 = vpop.f32.mrb[10].mxu0 }
 0x191   :  { %1667 = vst [vmem:[%s3002_s4 + $0x30] sm:$0xff] %v1647_v11  ;;  %1679 = vst [vmem:[%s3002_s4 + $0x90] sm:$0xff] %v1659_v12  ;;  %v1597_v6 = vmul.f32 %v1898_v13, %v2877_v40  ;;  %v1900_v18 = vadd.f32 %v1552_v17, %v2859_v8  ;;  %v1554_v1 = vpop.f32.mrb[11].mxu0 }
 0x192   :  { %1668 = vst [vmem:[%s3002_s4 + $0x38] sm:$0xff] %v1648_v14  ;;  %1680 = vst [vmem:[%s3002_s4 + $0x98] sm:$0xff] %v1660_v15  ;;  %v1598_v7 = vmul.f32 %v1899_v16, %v2879_v43  ;;  %v1901_v19 = vadd.f32 %v1554_v1, %v2861_v9 }
 0x193   :  { %v1629_v20 = vadd.f32 %v2881_v45, %v1597_v6  ;;  %v1599_v21 = vmul.f32 %v1900_v18, %v2877_v40 }
 0x194   :  { %v1630_v22 = vadd.f32 %v2883_v50, %v1598_v7  ;;  %v1600_v8 = vmul.f32 %v1901_v19, %v2879_v43 }
 0x195   :  { %v1649_v23 = vmax.f32 %v1629_v20, 0.0  ;;  %v1631_v24 = vadd.f32 %v2881_v45, %v1599_v21 }
 0x196   :  { %v1650_v25 = vmax.f32 %v1630_v22, 0.0  ;;  %v1632_v27 = vadd.f32 %v2883_v50, %v1600_v8 }
 0x197   :  { %1669 = vst [vmem:[%s3002_s4 + $0x40] sm:$0xff] %v1649_v23  ;;  %v1651_v28 = vmax.f32 %v1631_v24, 0.0 }
 0x198   :  { %1670 = vst [vmem:[%s3002_s4 + $0x48] sm:$0xff] %v1650_v25  ;;  %v1652_v9 = vmax.f32 %v1632_v27, 0.0 }
 0x199   :  { %1671 = vst [vmem:[%s3002_s4 + $0x50] sm:$0xff] %v1651_v28 }
 0x19a   :  { %1672 = vst [vmem:[%s3002_s4 + $0x58] sm:$0xff] %v1652_v9 }

// kernel: alexnet_like_forward.12
= control target key start
LH: loop header
LB: loop body
LE: loop exit
PB: predicated region body
PF: predicated region fallthrough
CT: control target
= control target key end

     0   :  { %s1520_s15 = smov 0   ;;  %s1522_s16 = smov 0   ;;  %s1643_s0 = inlined_call_operand.vmem [shape: bf16[2,32,896], index: 0, kind: input, shape index: {}]   ;;  %s1644_s1 = inlined_call_operand.vmem [shape: bf16[2,896,128], index: 1, kind: input, shape index: {}]   ;;  %s1645_s2 = inlined_call_operand.vmem [shape: f32[2,1,128], index: 2, kind: input, shape index: {}]   ;;  %s1646_s3 = inlined_call_operand.vmem [shape: f32[2,1,128], index: 3, kind: input, shape index: {}]   ;;  %s1647_s4 = inlined_call_operand.vmem [shape: f32[2,32,128], index: 4, kind: output, shape index: {}]  }
   0x1   :  { %s1524_s17 = smov 0  }
   0x2 LB: > { %s26_s18 = sadd.s32 1, %s1489_s16  ;;  %p1175_p0 = scmp.ge.s32.totalorder %s1493_s17, 1  ;;  %s1493_s17 = sphi %s1524_s17, %s14_s17   ;;  %s1489_s16 = sphi %s1522_s16, %s1649_s16   ;;  %s1485_s15 = sphi %s1520_s15, %s1648_s15  }
   0x3   : > { %p28_p1 = scmp.ge.s32.totalorder %s26_s18, 2  ;;  %p210_p2 = scmp.lt.s32.totalorder %s1493_s17, 3 }
   0x5   : > { %s1651_s18 = smov (%p28_p1, %s26_s18), 0  ;;  %p211_p3 = pnand %p1175_p0, %p210_p2 }
   0x6   : > { %p257_p4 = scmp.lt.s32.totalorder (!%p211_p3), %s1485_s15, 1 }
   0x7   : > { %214 = sbr.rel (%p211_p3) target bundleno = 320 (0x140), region = 36 }
   0xe   : > { %s1653_s15 = smov (!%p257_p4, %s1485_s15), 1 }
   0xf   : > { %s1370_s19 = smul.u32 448, %s1653_s15  ;;  %s274_s29 = scalar_lea.vmem %s1645_s2, %s1653_s15 }
  0x10   : > { %s1369_s23 = smul.u32 112, %s1653_s15  ;;  %s277_s6 = scalar_lea.vmem %s1646_s3, %s1653_s15 }
  0x11   : > { %s1544_s22 = scalar_lea.vmem %s1644_s1, %s1370_s19  ;;  %s1254_s7 = sshll.u32 %s1653_s15, 5 }
  0x12   : > { %v1395_v0 = vld [vmem:[%s1544_s22 + $0x40] sm:$0xff]   ;;  %v1399_v4 = vld [vmem:[%s1544_s22 + $0x48] sm:$0xff]   ;;  %v1403_v8 = vld [vmem:[%s1544_s22 + $0x50] sm:$0xff]   ;;  %s1580_s26 = scalar_lea.vmem %s1643_s0, %s1369_s23  ;;  %s286_s10 = scalar_lea.vmem %s1647_s4, %s1254_s7 }
  0x13   : > { %v1396_v1 = vld [vmem:[%s1544_s22 + $0xc0] sm:$0xff]   ;;  %1255 = vmatprep.subr.bf16.mxu0 %v1395_v0  ;;  %v1400_v5 = vld [vmem:[%s1544_s22 + $0xc8] sm:$0xff]   ;;  %v1404_v9 = vld [vmem:[%s1544_s22 + $0xd0] sm:$0xff]  }
  0x14   : > { %v1397_v2 = vld [vmem:[%s1544_s22] sm:$0xff]   ;;  %1283 = vmatprep.subr.bf16.mxu1 %v1396_v1  ;;  %v1401_v6 = vld [vmem:[%s1544_s22 + $0x8] sm:$0xff]   ;;  %v1405_v10 = vld [vmem:[%s1544_s22 + $0x10] sm:$0xff]  }
  0x15   : > { %v1398_v3 = vld [vmem:[%s1544_s22 + $0x80] sm:$0xff]   ;;  %1256 = vmatpush3.bf16.msra.mxu0 %v1397_v2  ;;  %v1402_v7 = vld [vmem:[%s1544_s22 + $0x88] sm:$0xff]   ;;  %v1406_v11 = vld [vmem:[%s1544_s22 + $0x90] sm:$0xff]  }
  0x16   : > { %1284 = vmatpush3.bf16.msra.mxu1 %v1398_v3  ;;  %1257 = vmatprep.subr.bf16.mxu0 %v1399_v4  ;;  %v1407_v12 = vld [vmem:[%s1544_s22 + $0x58] sm:$0xff]   ;;  %v1411_v16 = vld [vmem:[%s1544_s22 + $0x60] sm:$0xff]   ;;  %v1415_v20 = vld [vmem:[%s1544_s22 + $0x68] sm:$0xff]  }
  0x17   : > { %1285 = vmatprep.subr.bf16.mxu1 %v1400_v5  ;;  %v1408_v13 = vld [vmem:[%s1544_s22 + $0xd8] sm:$0xff]   ;;  %v1412_v17 = vld [vmem:[%s1544_s22 + $0xe0] sm:$0xff]   ;;  %v1416_v21 = vld [vmem:[%s1544_s22 + $0xe8] sm:$0xff]  }
  0x18   : > { %v1409_v14 = vld [vmem:[%s1544_s22 + $0x18] sm:$0xff]   ;;  %v1413_v18 = vld [vmem:[%s1544_s22 + $0x20] sm:$0xff]   ;;  %v1417_v22 = vld [vmem:[%s1544_s22 + $0x28] sm:$0xff]  }
  0x19   : > { %1258 = vmatpush3.bf16.msra.mxu0 %v1401_v6  ;;  %v1410_v15 = vld [vmem:[%s1544_s22 + $0x98] sm:$0xff]   ;;  %v1414_v19 = vld [vmem:[%s1544_s22 + $0xa0] sm:$0xff]   ;;  %v1418_v23 = vld [vmem:[%s1544_s22 + $0xa8] sm:$0xff]  }
  0x1a   : > { %1286 = vmatpush3.bf16.msra.mxu1 %v1402_v7  ;;  %1259 = vmatprep.subr.bf16.mxu0 %v1403_v8  ;;  %v1419_v24 = vld [vmem:[%s1544_s22 + $0x70] sm:$0xff]   ;;  %v1423_v28 = vld [vmem:[%s1544_s22 + $0x78] sm:$0xff]   ;;  %v1429_v33 = vld [vmem:[%s1580_s26 + $0x4] ss:$28 sps:$4 sm:$0xff]  }
  0x1b   : > { %1287 = vmatprep.subr.bf16.mxu1 %v1404_v9  ;;  %v1420_v25 = vld [vmem:[%s1544_s22 + $0xf0] sm:$0xff]   ;;  %v1424_v29 = vld [vmem:[%s1544_s22 + $0xf8] sm:$0xff]   ;;  %v1430_v34 = vld [vmem:[%s1580_s26 + $0x8] ss:$28 sps:$4 sm:$0xff]   ;;  %857 = vmatprep.mubr.bf16.mxu0 %v1429_v33 }
  0x1c   : > { %v1421_v26 = vld [vmem:[%s1544_s22 + $0x30] sm:$0xff]   ;;  %v1425_v30 = vld [vmem:[%s1544_s22 + $0x38] sm:$0xff]   ;;  %v1432_v35 = vld [vmem:[%s1580_s26 + $0xc] ss:$28 sps:$4 sm:$0xff]  }
  0x1d   : > { %1260 = vmatpush3.bf16.msra.mxu0 %v1405_v10  ;;  %v1422_v27 = vld [vmem:[%s1544_s22 + $0xb0] sm:$0xff]   ;;  %v1426_v31 = vld [vmem:[%s1544_s22 + $0xb8] sm:$0xff]   ;;  %v1433_v36 = vld [vmem:[%s1544_s22 + $0x140] sm:$0xff]   ;;  %906 = vmatprep.mubr.bf16.mxu1 %v1432_v35 }
  0x1e   : > { %1288 = vmatpush3.bf16.msra.mxu1 %v1406_v11  ;;  %1261 = vmatprep.subr.bf16.mxu0 %v1407_v12  ;;  %v1427_v32 = vld [vmem:[%s1580_s26] ss:$28 sps:$4 sm:$0xff]   ;;  %v1435_v38 = vld [vmem:[%s1544_s22 + $0x148] sm:$0xff]   ;;  %v1438_v41 = vld [vmem:[%s1544_s22 + $0x150] sm:$0xff]  }
  0x1f   : > { %1289 = vmatprep.subr.bf16.mxu1 %v1408_v13  ;;  %v1434_v37 = vld [vmem:[%s1544_s22 + $0x100] sm:$0xff]   ;;  %v1437_v40 = vld [vmem:[%s1544_s22 + $0x108] sm:$0xff]   ;;  %v1440_v43 = vld [vmem:[%s1544_s22 + $0x110] sm:$0xff]  }
  0x20   : > { %v1436_v39 = vld [vmem:[%s1544_s22 + $0x180] sm:$0xff]   ;;  %v1439_v42 = vld [vmem:[%s1544_s22 + $0x188] sm:$0xff]   ;;  %v1441_v44 = vld [vmem:[%s1544_s22 + $0x158] sm:$0xff]  }
  0x21   : > { %1262 = vmatpush3.bf16.msra.mxu0 %v1409_v14  ;;  %v1442_v45 = vld [vmem:[%s1544_s22 + $0x190] sm:$0xff]   ;;  %v1443_v46 = vld [vmem:[%s1544_s22 + $0x118] sm:$0xff]   ;;  %v1444_v47 = vld [vmem:[%s1544_s22 + $0x160] sm:$0xff]  }
  0x22   : > { %1290 = vmatpush3.bf16.msra.mxu1 %v1410_v15  ;;  %1263 = vmatprep.subr.bf16.mxu0 %v1411_v16  ;;  %v1445_v48 = vld [vmem:[%s1544_s22 + $0x198] sm:$0xff]   ;;  %v1446_v49 = vld [vmem:[%s1544_s22 + $0x120] sm:$0xff]   ;;  %v1451_v52 = vld [vmem:[%s1544_s22 + $0x168] sm:$0xff]  }
  0x23   : > { %1291 = vmatprep.subr.bf16.mxu1 %v1412_v17  ;;  %v1447_v50 = vld [vmem:[%s1580_s26 + $0x3c] ss:$28 sps:$4 sm:$0xff]   ;;  %v1449_v51 = vld [vmem:[%s1580_s26 + $0x44] ss:$28 sps:$4 sm:$0xff]   ;;  %v1455_v56 = vld [vmem:[%s1544_s22 + $0x128] sm:$0xff]  }
  0x24   : > { %v1452_v53 = vld [vmem:[%s1544_s22 + $0x1a0] sm:$0xff]   ;;  %v1453_v54 = vld [vmem:[%s1580_s26 + $0x38] ss:$28 sps:$4 sm:$0xff]   ;;  %v1457_v58 = vld [vmem:[%s1544_s22 + $0x1a8] sm:$0xff]  }
  0x25   : > { %1264 = vmatpush3.bf16.msra.mxu0 %v1413_v18  ;;  %v1454_v55 = vld [vmem:[%s1580_s26 + $0x40] ss:$28 sps:$4 sm:$0xff]   ;;  %v1456_v57 = vld [vmem:[%s1544_s22 + $0x170] sm:$0xff]   ;;  %v1468_v3 = vld [vmem:[%s1580_s26 + $0x4c] ss:$28 sps:$4 sm:$0xff]  }
  0x26   : > { %1292 = vmatpush3.bf16.msra.mxu1 %v1414_v19  ;;  %1265 = vmatprep.subr.bf16.mxu0 %v1415_v20  ;;  %v1458_v59 = vld [vmem:[%s1544_s22 + $0x130] sm:$0xff]   ;;  %v1459_v60 = vld [vmem:[%s1544_s22 + $0x178] sm:$0xff]   ;;  %v1470_v5 = vld [vmem:[%s1580_s26 + $0x48] ss:$28 sps:$4 sm:$0xff]  }
  0x27   : > { %1293 = vmatprep.subr.bf16.mxu1 %v1416_v21  ;;  %v1460_v61 = vld [vmem:[%s1544_s22 + $0x1b0] sm:$0xff]   ;;  %v1461_v62 = vld [vmem:[%s1544_s22 + $0x138] sm:$0xff]  }
  0x28   : > { %v1464_v63 = vld [vmem:[%s1580_s26 + $0x14] ss:$28 sps:$4 sm:$0xff]   ;;  %v1465_v0 = vld [vmem:[%s1544_s22 + $0x1b8] sm:$0xff]  }
  0x29   : > { %1266 = vmatpush3.bf16.msra.mxu0 %v1417_v22  ;;  %v1466_v1 = vld [vmem:[%s1580_s26 + $0x18] ss:$28 sps:$4 sm:$0xff]   ;;  %v1462_v2 = vld [vmem:[%s1580_s26 + $0x10] ss:$28 sps:$4 sm:$0xff]  }
  0x2a   : > { %1294 = vmatpush3.bf16.msra.mxu1 %v1418_v23  ;;  %1267 = vmatprep.subr.bf16.mxu0 %v1419_v24  ;;  %v1467_v4 = vld [vmem:[%s1580_s26 + $0x50] ss:$28 sps:$4 sm:$0xff]  }
  0x2b   : > { %1295 = vmatprep.subr.bf16.mxu1 %v1420_v25 }
  0x2d   : > { %1268 = vmatpush3.bf16.msra.mxu0 %v1421_v26 }
  0x2e   : > { %1296 = vmatpush3.bf16.msra.mxu1 %v1422_v27  ;;  %1269 = vmatprep.subr.bf16.mxu0 %v1423_v28 }
  0x2f   : > { %1297 = vmatprep.subr.bf16.mxu1 %v1424_v29 }
  0x31   : > { %1270 = vmatpush3.bf16.msra.mxu0 %v1425_v30 }
  0x32   : > { %1298 = vmatpush3.bf16.msra.mxu1 %v1426_v31  ;;  %1311 = vmatprep.subr.bf16.mxu0 %v1433_v36 }
  0x33   : > { %1349 = vmatprep.subr.bf16.mxu1 %v1436_v39 }
  0x34   : > { %858 = vmatmul.mubr.bf16.vlgmr.msra.gmra.mrb[0].mxu0 %v1427_v32 }
  0x35   : > { %907 = vmatmul.mubr.bf16.vlgmr.msra.gmra.mrb[0].mxu1 %v1430_v34  ;;  %1312 = vmatpush3.bf16.msra.mxu0 %v1434_v37 }
  0x36   : > { %1313 = vmatprep.subr.bf16.mxu0 %v1435_v38  ;;  %1350 = vmatpush3.bf16.msra.mxu1 %v1436_v39 }
  0x37   : > { %1351 = vmatprep.subr.bf16.mxu1 %v1439_v42  ;;  %865 = vmatprep.mubr.bf16.mxu0 %v1447_v50 }
  0x38   : > { %914 = vmatprep.mubr.bf16.mxu1 %v1449_v51 }
  0x39   : > { %1314 = vmatpush3.bf16.msra.mxu0 %v1437_v40 }
  0x3a   : > { %1315 = vmatprep.subr.bf16.mxu0 %v1438_v41  ;;  %1352 = vmatpush3.bf16.msra.mxu1 %v1439_v42 }
  0x3b   : > { %1353 = vmatprep.subr.bf16.mxu1 %v1442_v45 }
  0x3c   : > { %866 = vmatmul.mubr.bf16.gmra.mrb[4].mxu0 %v1453_v54 }
  0x3d   : > { %1316 = vmatpush3.bf16.msra.mxu0 %v1440_v43  ;;  %915 = vmatmul.mubr.bf16.gmra.mrb[4].mxu1 %v1454_v55  ;;  %v1250_v43 = vld [vmem:[%s274_s29] ss:$0 sm:$0xff] }
  0x3e   : > { %1317 = vmatprep.subr.bf16.mxu0 %v1441_v44  ;;  %1354 = vmatpush3.bf16.msra.mxu1 %v1442_v45 }
  0x3f   : > { %1355 = vmatprep.subr.bf16.mxu1 %v1445_v48  ;;  %955 = vmatprep.mubr.bf16.mxu0 %v1464_v63 }
  0x40   : > { %1365 = vmatprep.mubr.bf16.mxu1 %v1466_v1 }
  0x41   : > { %1318 = vmatpush3.bf16.msra.mxu0 %v1443_v46 }
  0x42   : > { %1319 = vmatprep.subr.bf16.mxu0 %v1444_v47  ;;  %1356 = vmatpush3.bf16.msra.mxu1 %v1445_v48  ;;  %v1251_v48 = vld [vmem:[%s277_s6] ss:$0 sm:$0xff] }
  0x43   : > { %1357 = vmatprep.subr.bf16.mxu1 %v1452_v53 }
  0x45   : > { %1320 = vmatpush3.bf16.msra.mxu0 %v1446_v49 }
  0x46   : > { %1321 = vmatprep.subr.bf16.mxu0 %v1451_v52  ;;  %1358 = vmatpush3.bf16.msra.mxu1 %v1452_v53 }
  0x47   : > { %1359 = vmatprep.subr.bf16.mxu1 %v1457_v58 }
  0x49   : > { %1322 = vmatpush3.bf16.msra.mxu0 %v1455_v56 }
  0x4a   : > { %1323 = vmatprep.subr.bf16.mxu0 %v1456_v57  ;;  %1360 = vmatpush3.bf16.msra.mxu1 %v1457_v58 }
  0x4b   : > { %1361 = vmatprep.subr.bf16.mxu1 %v1460_v61 }
  0x4d   : > { %1324 = vmatpush3.bf16.msra.mxu0 %v1458_v59 }
  0x4e   : > { %1325 = vmatprep.subr.bf16.mxu0 %v1459_v60  ;;  %1362 = vmatpush3.bf16.msra.mxu1 %v1460_v61 }
  0x4f   : > { %1363 = vmatprep.subr.bf16.mxu1 %v1465_v0 }
  0x51   : > { %1326 = vmatpush3.bf16.msra.mxu0 %v1461_v62 }
  0x52   : > { %1364 = vmatpush3.bf16.msra.mxu1 %v1465_v0 }
  0x54   : > { %956 = vmatmul.mubr.bf16.vlgmr.msra.gmra.mrb[8].mxu0 %v1462_v2 }
  0x55   : > { %963 = vmatprep.mubr.bf16.mxu0 %v1468_v3  ;;  %1366 = vmatmul.mubr.bf16.vlgmr.msra.gmra.mrb[8].mxu1 %v1467_v4 }
  0x5c   : > { %964 = vmatmul.mubr.bf16.gmra.mrb[12].mxu0 %v1470_v5 }
 0x107   : > { %v1271_v6 = vpop.f32.mrb[0].mxu0 }
 0x108   : > { %v1299_v7 = vpop.f32.mrb[0].mxu1  ;;  %v1272_v8 = vpop.f32.mrb[1].mxu0 }
 0x109   : > { %v1273_v9 = vadd.f32 %v1272_v8, %v1271_v6  ;;  %v1300_v10 = vpop.f32.mrb[1].mxu1  ;;  %v1274_v11 = vpop.f32.mrb[2].mxu0 }
 0x10a   : > { %v1301_v12 = vadd.f32 %v1300_v10, %v1299_v7  ;;  %v1302_v13 = vpop.f32.mrb[2].mxu1  ;;  %v1275_v14 = vpop.f32.mrb[3].mxu0 }
 0x10b   : > { %v1276_v15 = vadd.f32 %v1275_v14, %v1274_v11  ;;  %v1303_v16 = vpop.f32.mrb[3].mxu1 }
 0x10c   : > { %v909_v17 = vadd.f32 %v1301_v12, %v1273_v9  ;;  %v1304_v18 = vadd.f32 %v1303_v16, %v1302_v13 }
 0x10e   : > { %v912_v19 = vadd.f32 %v1304_v18, %v1276_v15 }
 0x10f   : > { %v1277_v20 = vpop.f32.mrb[4].mxu0 }
 0x110   : > { %v1305_v21 = vpop.f32.mrb[4].mxu1  ;;  %v1278_v22 = vpop.f32.mrb[5].mxu0 }
 0x111   : > { %v1279_v23 = vadd.f32 %v1278_v22, %v1277_v20  ;;  %v1306_v24 = vpop.f32.mrb[5].mxu1  ;;  %v1280_v25 = vpop.f32.mrb[6].mxu0 }
 0x112   : > { %v1307_v26 = vadd.f32 %v1306_v24, %v1305_v21  ;;  %v1308_v27 = vpop.f32.mrb[6].mxu1  ;;  %v1281_v28 = vpop.f32.mrb[7].mxu0 }
 0x113   : > { %v1282_v29 = vadd.f32 %v1281_v28, %v1280_v25  ;;  %v1309_v30 = vpop.f32.mrb[7].mxu1 }
 0x114   : > { %v917_v31 = vadd.f32 %v1307_v26, %v1279_v23  ;;  %v1310_v32 = vadd.f32 %v1309_v30, %v1308_v27 }
 0x116   : > { %v920_v33 = vadd.f32 %v1310_v32, %v1282_v29 }
 0x127   : > { %v1327_v34 = vpop.f32.mrb[8].mxu0 }
 0x128   : > { %v1328_v35 = vpop.f32.mrb[9].mxu0  ;;  %v1367_v39 = vpop.f32.mrb[8].mxu1 }
 0x129   : > { %v1329_v36 = vadd.f32 %v1328_v35, %v1327_v34  ;;  %v1330_v37 = vpop.f32.mrb[10].mxu0  ;;  %v1006_v42 = vpop.f32.mrb[9].mxu1 }
 0x12a   : > { %v1331_v38 = vpop.f32.mrb[11].mxu0  ;;  %v1368_v44 = vpop.f32.mrb[10].mxu1 }
 0x12b   : > { %v1332_v40 = vadd.f32 %v1331_v38, %v1330_v37  ;;  %v958_v41 = vadd.f32 %v1329_v36, %v909_v17  ;;  %v1009_v47 = vpop.f32.mrb[11].mxu1 }
 0x12d   : > { %v1007_v45 = vadd.f32 %v1006_v42, %v958_v41  ;;  %v961_v46 = vadd.f32 %v1332_v40, %v912_v19 }
 0x12f   : > { %v1028_v49 = vmul.f32 %v1250_v43, %v1007_v45  ;;  %v1010_v50 = vadd.f32 %v1009_v47, %v961_v46  ;;  %v1333_v51 = vpop.f32.mrb[12].mxu0 }
 0x130   : > { %v1334_v52 = vpop.f32.mrb[13].mxu0 }
 0x131   : > { %v1039_v53 = vadd.f32 %v1251_v48, %v1028_v49  ;;  %v1029_v54 = vmul.f32 %v1250_v43, %v1010_v50  ;;  %v1335_v55 = vadd.f32 %v1334_v52, %v1333_v51  ;;  %v1336_v56 = vpop.f32.mrb[14].mxu0 }
 0x132   : > { %v1337_v57 = vpop.f32.mrb[15].mxu0 }
 0x133   : > { %v1043_v58 = vmax.f32 %v1039_v53, 0.0  ;;  %v1040_v59 = vadd.f32 %v1251_v48, %v1029_v54  ;;  %v966_v60 = vadd.f32 %v1335_v55, %v917_v31  ;;  %v1338_v61 = vadd.f32 %v1337_v57, %v1336_v56 }
 0x135   : > { %1047 = vst [vmem:[%s286_s10] sm:$0xff] %v1043_v58  ;;  %v1044_v62 = vmax.f32 %v1040_v59, 0.0  ;;  %v1015_v63 = vadd.f32 %v1367_v39, %v966_v60  ;;  %v969_v0 = vadd.f32 %v1338_v61, %v920_v33 }
 0x137   : > { %1048 = vst [vmem:[%s286_s10 + $0x8] sm:$0xff] %v1044_v62  ;;  %v1030_v1 = vmul.f32 %v1250_v43, %v1015_v63  ;;  %v1018_v2 = vadd.f32 %v1368_v44, %v969_v0 }
 0x139   : > { %v1041_v3 = vadd.f32 %v1251_v48, %v1030_v1  ;;  %v1031_v4 = vmul.f32 %v1250_v43, %v1018_v2 }
 0x13b   : > { %v1045_v5 = vmax.f32 %v1041_v3, 0.0  ;;  %v1042_v6 = vadd.f32 %v1251_v48, %v1031_v4 }
 0x13d   : > { %1049 = vst [vmem:[%s286_s10 + $0x10] sm:$0xff] %v1045_v5  ;;  %v1046_v7 = vmax.f32 %v1042_v6, 0.0 }
 0x13f   : > { %1050 = vst [vmem:[%s286_s10 + $0x18] sm:$0xff] %v1046_v7 }
 0x140 PF: > { %s14_s17 = sadd.s32 1, %s1493_s17   ;;  %s1648_s15 = smov %s1489_s16 }
 0x141   : > { %p11_p5 = scmp.ge.s32.totalorder %s14_s17, 4   ;;  %s1649_s16 = smov %s1651_s18 }
 0x143   :  { %13 = sbr.rel (!%p11_p5) target bundleno = 2 (0x2), region = 75 }

// kernel: alexnet_like_forward.13
= control target key start
LH: loop header
LB: loop body
LE: loop exit
PB: predicated region body
PF: predicated region fallthrough
CT: control target
= control target key end

     0   :  { %s1402_s15 = smov 0   ;;  %s1404_s16 = smov 0   ;;  %s1518_s0 = inlined_call_operand.vmem [shape: bf16[2,16,896], index: 0, kind: input, shape index: {}]   ;;  %s1519_s1 = inlined_call_operand.vmem [shape: bf16[2,896,128], index: 1, kind: input, shape index: {}]   ;;  %s1520_s2 = inlined_call_operand.vmem [shape: f32[2,1,128], index: 2, kind: input, shape index: {}]   ;;  %s1521_s3 = inlined_call_operand.vmem [shape: f32[2,1,128], index: 3, kind: input, shape index: {}]   ;;  %s1522_s4 = inlined_call_operand.vmem [shape: f32[2,16,128], index: 4, kind: output, shape index: {}]  }
   0x1   :  { %s1406_s17 = smov 0  }
   0x2 LB: > { %s26_s18 = sadd.s32 1, %s1369_s16  ;;  %p1089_p0 = scmp.ge.s32.totalorder %s1373_s17, 1  ;;  %s1373_s17 = sphi %s1406_s17, %s14_s17   ;;  %s1369_s16 = sphi %s1404_s16, %s1524_s16   ;;  %s1365_s15 = sphi %s1402_s15, %s1523_s15  }
   0x3   : > { %p28_p1 = scmp.ge.s32.totalorder %s26_s18, 2  ;;  %p210_p2 = scmp.lt.s32.totalorder %s1373_s17, 3 }
   0x5   : > { %s1526_s18 = smov (%p28_p1, %s26_s18), 0  ;;  %p211_p3 = pnand %p1089_p0, %p210_p2 }
   0x6   : > { %p257_p4 = scmp.lt.s32.totalorder (!%p211_p3), %s1365_s15, 1  ;;  %v1375_v36 = vmov (!%p211_p3), 0.0   ;;  %vm1376_vm0 = vmmov (!%p211_p3), 0  }
   0x7   : > { %214 = sbr.rel (%p211_p3) target bundleno = 310 (0x136), region = 36 }
   0xe   : > { %s1528_s15 = smov (!%p257_p4, %s1365_s15), 1 }
   0xf   : > { %s1258_s19 = smul.u32 448, %s1528_s15  ;;  %s274_s29 = scalar_lea.vmem %s1520_s2, %s1528_s15 }
  0x10   : > { %s1257_s23 = smul.u32 56, %s1528_s15  ;;  %s277_s6 = scalar_lea.vmem %s1521_s3, %s1528_s15 }
  0x11   : > { %s1426_s22 = scalar_lea.vmem %s1519_s1, %s1258_s19  ;;  %s1161_s7 = sshll.u32 %s1528_s15, 4 }
  0x12   : > { %v1285_v0 = vld [vmem:[%s1426_s22 + $0x40] sm:$0xff]   ;;  %v1289_v4 = vld [vmem:[%s1426_s22 + $0x48] sm:$0xff]   ;;  %v1293_v8 = vld [vmem:[%s1426_s22 + $0x50] sm:$0xff]   ;;  %s1462_s26 = scalar_lea.vmem %s1518_s0, %s1257_s23  ;;  %s286_s10 = scalar_lea.vmem %s1522_s4, %s1161_s7 }
  0x13   : > { %v1286_v1 = vld [vmem:[%s1426_s22 + $0xc0] sm:$0xff]   ;;  %1162 = vmatprep.subr.bf16.mxu0 %v1285_v0  ;;  %v1290_v5 = vld [vmem:[%s1426_s22 + $0xc8] sm:$0xff]   ;;  %v1294_v9 = vld [vmem:[%s1426_s22 + $0xd0] sm:$0xff]  }
  0x14   : > { %v1287_v2 = vld [vmem:[%s1426_s22] sm:$0xff]   ;;  %1184 = vmatprep.subr.bf16.mxu1 %v1286_v1  ;;  %v1291_v6 = vld [vmem:[%s1426_s22 + $0x8] sm:$0xff]   ;;  %v1295_v10 = vld [vmem:[%s1426_s22 + $0x10] sm:$0xff]  }
  0x15   : > { %v1288_v3 = vld [vmem:[%s1426_s22 + $0x80] sm:$0xff]   ;;  %1163 = vmatpush3.bf16.msra.mxu0 %v1287_v2  ;;  %v1292_v7 = vld [vmem:[%s1426_s22 + $0x88] sm:$0xff]   ;;  %v1296_v11 = vld [vmem:[%s1426_s22 + $0x90] sm:$0xff]  }
  0x16   : > { %1185 = vmatpush3.bf16.msra.mxu1 %v1288_v3  ;;  %1164 = vmatprep.subr.bf16.mxu0 %v1289_v4  ;;  %v1297_v12 = vld [vmem:[%s1426_s22 + $0x58] sm:$0xff]   ;;  %v1301_v16 = vld [vmem:[%s1426_s22 + $0x60] sm:$0xff]   ;;  %v1305_v20 = vld [vmem:[%s1426_s22 + $0x68] sm:$0xff]  }
  0x17   : > { %1186 = vmatprep.subr.bf16.mxu1 %v1290_v5  ;;  %v1298_v13 = vld [vmem:[%s1426_s22 + $0xd8] sm:$0xff]   ;;  %v1302_v17 = vld [vmem:[%s1426_s22 + $0xe0] sm:$0xff]   ;;  %v1306_v21 = vld [vmem:[%s1426_s22 + $0xe8] sm:$0xff]  }
  0x18   : > { %v1299_v14 = vld [vmem:[%s1426_s22 + $0x18] sm:$0xff]   ;;  %v1303_v18 = vld [vmem:[%s1426_s22 + $0x20] sm:$0xff]   ;;  %v1307_v22 = vld [vmem:[%s1426_s22 + $0x28] sm:$0xff]  }
  0x19   : > { %1165 = vmatpush3.bf16.msra.mxu0 %v1291_v6  ;;  %v1300_v15 = vld [vmem:[%s1426_s22 + $0x98] sm:$0xff]   ;;  %v1304_v19 = vld [vmem:[%s1426_s22 + $0xa0] sm:$0xff]   ;;  %v1308_v23 = vld [vmem:[%s1426_s22 + $0xa8] sm:$0xff]  }
  0x1a   : > { %1187 = vmatpush3.bf16.msra.mxu1 %v1292_v7  ;;  %1166 = vmatprep.subr.bf16.mxu0 %v1293_v8  ;;  %v1309_v24 = vld [vmem:[%s1426_s22 + $0x70] sm:$0xff]   ;;  %v1313_v28 = vld [vmem:[%s1426_s22 + $0x78] sm:$0xff]   ;;  %v1319_v33 = vld [vmem:[%s1462_s26 + $0x4] ss:$28 sps:$4 sm:$0xff]  }
  0x1b   : > { %1188 = vmatprep.subr.bf16.mxu1 %v1294_v9  ;;  %v1310_v25 = vld [vmem:[%s1426_s22 + $0xf0] sm:$0xff]   ;;  %v1314_v29 = vld [vmem:[%s1426_s22 + $0xf8] sm:$0xff]   ;;  %v1320_v34 = vld [vmem:[%s1462_s26 + $0x8] ss:$28 sps:$4 sm:$0xff]   ;;  %813 = vmatprep.mubr.bf16.mxu0 %v1319_v33 }
  0x1c   : > { %v1311_v26 = vld [vmem:[%s1426_s22 + $0x30] sm:$0xff]   ;;  %v1315_v30 = vld [vmem:[%s1426_s22 + $0x38] sm:$0xff]   ;;  %v1322_v35 = vld [vmem:[%s1462_s26 + $0xc] ss:$28 sps:$4 sm:$0xff]  }
  0x1d   : > { %1167 = vmatpush3.bf16.msra.mxu0 %v1295_v10  ;;  %v1312_v27 = vld [vmem:[%s1426_s22 + $0xb0] sm:$0xff]   ;;  %v1316_v31 = vld [vmem:[%s1426_s22 + $0xb8] sm:$0xff]   ;;  %v1323_v37 = vld [vmem:[%s1426_s22 + $0x140] sm:$0xff]   ;;  %854 = vmatprep.mubr.bf16.mxu1 %v1322_v35 }
  0x1e   : > { %1189 = vmatpush3.bf16.msra.mxu1 %v1296_v11  ;;  %1168 = vmatprep.subr.bf16.mxu0 %v1297_v12  ;;  %v1317_v32 = vld [vmem:[%s1462_s26] ss:$28 sps:$4 sm:$0xff]   ;;  %v1326_v40 = vld [vmem:[%s1426_s22 + $0x148] sm:$0xff]   ;;  %v1329_v43 = vld [vmem:[%s1426_s22 + $0x150] sm:$0xff]  }
  0x1f   : > { %1190 = vmatprep.subr.bf16.mxu1 %v1298_v13  ;;  %v1324_v38 = vld [vmem:[%s1426_s22 + $0x100] sm:$0xff]   ;;  %v1327_v41 = vld [vmem:[%s1426_s22 + $0x108] sm:$0xff]   ;;  %v1330_v44 = vld [vmem:[%s1426_s22 + $0x110] sm:$0xff]  }
  0x20   : > { %v1325_v39 = vld [vmem:[%s1426_s22 + $0x180] sm:$0xff]   ;;  %v1328_v42 = vld [vmem:[%s1426_s22 + $0x188] sm:$0xff]   ;;  %v1331_v45 = vld [vmem:[%s1426_s22 + $0x190] sm:$0xff]  }
  0x21   : > { %1169 = vmatpush3.bf16.msra.mxu0 %v1299_v14  ;;  %v1332_v46 = vld [vmem:[%s1426_s22 + $0x158] sm:$0xff]   ;;  %v1335_v49 = vld [vmem:[%s1426_s22 + $0x160] sm:$0xff]   ;;  %v1338_v52 = vld [vmem:[%s1426_s22 + $0x168] sm:$0xff]  }
  0x22   : > { %1191 = vmatpush3.bf16.msra.mxu1 %v1300_v15  ;;  %1170 = vmatprep.subr.bf16.mxu0 %v1301_v16  ;;  %v1333_v47 = vld [vmem:[%s1426_s22 + $0x118] sm:$0xff]   ;;  %v1336_v50 = vld [vmem:[%s1426_s22 + $0x120] sm:$0xff]   ;;  %v1339_v53 = vld [vmem:[%s1426_s22 + $0x128] sm:$0xff]  }
  0x23   : > { %1192 = vmatprep.subr.bf16.mxu1 %v1302_v17  ;;  %v1334_v48 = vld [vmem:[%s1426_s22 + $0x198] sm:$0xff]   ;;  %v1337_v51 = vld [vmem:[%s1426_s22 + $0x1a0] sm:$0xff]   ;;  %v1340_v54 = vld [vmem:[%s1426_s22 + $0x1a8] sm:$0xff]  }
  0x24   : > { %v1341_v55 = vld [vmem:[%s1426_s22 + $0x170] sm:$0xff]   ;;  %v1344_v59 = vld [vmem:[%s1426_s22 + $0x178] sm:$0xff]  }
  0x25   : > { %1171 = vmatpush3.bf16.msra.mxu0 %v1303_v18  ;;  %v1342_v56 = vld [vmem:[%s1426_s22 + $0x130] sm:$0xff]   ;;  %v1345_v60 = vld [vmem:[%s1426_s22 + $0x138] sm:$0xff]  }
  0x26   : > { %1193 = vmatpush3.bf16.msra.mxu1 %v1304_v19  ;;  %1172 = vmatprep.subr.bf16.mxu0 %v1305_v20  ;;  %v1343_v57 = vld [vmem:[%s1426_s22 + $0x1b0] sm:$0xff]   ;;  %v1349_v61 = vld [vmem:[%s1426_s22 + $0x1b8] sm:$0xff]  }
  0x27   : > { %1194 = vmatprep.subr.bf16.mxu1 %v1306_v21  ;;  %v1348_v58 = vld [vmem:[%s1462_s26 + $0x14] ss:$28 sps:$4 sm:$0xff]  }
  0x28   : > { %v1346_v62 = vld [vmem:[%s1462_s26 + $0x10] ss:$28 sps:$4 sm:$0xff]   ;;  %v1350_v63 = vld [vmem:[%s1462_s26 + $0x18] ss:$28 sps:$4 sm:$0xff]  }
  0x29   : > { %1173 = vmatpush3.bf16.msra.mxu0 %v1307_v22 }
  0x2a   : > { %1195 = vmatpush3.bf16.msra.mxu1 %v1308_v23  ;;  %1174 = vmatprep.subr.bf16.mxu0 %v1309_v24 }
  0x2b   : > { %1196 = vmatprep.subr.bf16.mxu1 %v1310_v25  ;;  %v1157_v25 = vld [vmem:[%s274_s29] ss:$0 sm:$0xff] }
  0x2d   : > { %1175 = vmatpush3.bf16.msra.mxu0 %v1311_v26 }
  0x2e   : > { %1197 = vmatpush3.bf16.msra.mxu1 %v1312_v27  ;;  %1176 = vmatprep.subr.bf16.mxu0 %v1313_v28  ;;  %v1158_v28 = vld [vmem:[%s277_s6] ss:$0 sm:$0xff] }
  0x2f   : > { %1198 = vmatprep.subr.bf16.mxu1 %v1314_v29 }
  0x31   : > { %1177 = vmatpush3.bf16.msra.mxu0 %v1315_v30 }
  0x32   : > { %1199 = vmatpush3.bf16.msra.mxu1 %v1316_v31  ;;  %1206 = vmatprep.subr.bf16.mxu0 %v1323_v37 }
  0x33   : > { %1237 = vmatprep.subr.bf16.mxu1 %v1375_v36 }
  0x34   : > { %814 = vmatmul.mubr.bf16.vlgmr.msra.gmra.mrb[0].mxu0 %v1317_v32 }
  0x35   : > { %855 = vmatmul.mubr.bf16.vlgmr.msra.gmra.mrb[0].mxu1 %v1320_v34  ;;  %1207 = vmatpush3.bf16.msra.mxu0 %v1324_v38 }
  0x36   : > { %1253 = vmatprep.mubr.msk.bf16.mxu1 %vm1376_vm0, %v1375_v36  ;;  %1238 = vmatpush3.bf16.msra.mxu1 %v1325_v39 }
  0x37   : > { %1208 = vmatprep.subr.bf16.mxu0 %v1326_v40  ;;  %1239 = vmatprep.subr.bf16.mxu1 %v1375_v36 }
  0x38   : > { %895 = vmatprep.mubr.bf16.mxu0 %v1348_v58 }
  0x39   : > { %1209 = vmatpush3.bf16.msra.mxu0 %v1327_v41 }
  0x3a   : > { %1240 = vmatpush3.bf16.msra.mxu1 %v1328_v42  ;;  %1210 = vmatprep.subr.bf16.mxu0 %v1329_v43 }
  0x3b   : > { %1241 = vmatprep.subr.bf16.mxu1 %v1375_v36 }
  0x3d   : > { %1211 = vmatpush3.bf16.msra.mxu0 %v1330_v44 }
  0x3e   : > { %1242 = vmatpush3.bf16.msra.mxu1 %v1331_v45  ;;  %1212 = vmatprep.subr.bf16.mxu0 %v1332_v46 }
  0x3f   : > { %1243 = vmatprep.subr.bf16.mxu1 %v1375_v36 }
  0x41   : > { %1213 = vmatpush3.bf16.msra.mxu0 %v1333_v47 }
  0x42   : > { %1244 = vmatpush3.bf16.msra.mxu1 %v1334_v48  ;;  %1214 = vmatprep.subr.bf16.mxu0 %v1335_v49 }
  0x43   : > { %1245 = vmatprep.subr.bf16.mxu1 %v1375_v36 }
  0x45   : > { %1215 = vmatpush3.bf16.msra.mxu0 %v1336_v50 }
  0x46   : > { %1246 = vmatpush3.bf16.msra.mxu1 %v1337_v51  ;;  %1216 = vmatprep.subr.bf16.mxu0 %v1338_v52 }
  0x47   : > { %1247 = vmatprep.subr.bf16.mxu1 %v1375_v36 }
  0x49   : > { %1217 = vmatpush3.bf16.msra.mxu0 %v1339_v53 }
  0x4a   : > { %1248 = vmatpush3.bf16.msra.mxu1 %v1340_v54  ;;  %1218 = vmatprep.subr.bf16.mxu0 %v1341_v55 }
  0x4b   : > { %1249 = vmatprep.subr.bf16.mxu1 %v1375_v36 }
  0x4d   : > { %1219 = vmatpush3.bf16.msra.mxu0 %v1342_v56 }
  0x4e   : > { %1250 = vmatpush3.bf16.msra.mxu1 %v1343_v57  ;;  %1220 = vmatprep.subr.bf16.mxu0 %v1344_v59 }
  0x4f   : > { %1251 = vmatprep.subr.bf16.mxu1 %v1375_v36 }
  0x51   : > { %1221 = vmatpush3.bf16.msra.mxu0 %v1345_v60 }
  0x52   : > { %1252 = vmatpush3.bf16.msra.mxu1 %v1349_v61 }
  0x54   : > { %896 = vmatmul.mubr.bf16.vlgmr.msra.gmra.mrb[4].mxu0 %v1346_v62 }
  0x55   : > { %1254 = vmatmul.mubr.bf16.vlgmr.msra.gmra.mrb[4].mxu1 %v1350_v63 }
 0x107   : > { %v1178_v0 = vpop.f32.mrb[0].mxu0 }
 0x108   : > { %v1200_v1 = vpop.f32.mrb[0].mxu1  ;;  %v1179_v2 = vpop.f32.mrb[1].mxu0 }
 0x109   : > { %v1180_v3 = vadd.f32 %v1179_v2, %v1178_v0  ;;  %v1201_v4 = vpop.f32.mrb[1].mxu1  ;;  %v1181_v5 = vpop.f32.mrb[2].mxu0 }
 0x10a   : > { %v1202_v6 = vadd.f32 %v1201_v4, %v1200_v1  ;;  %v1203_v7 = vpop.f32.mrb[2].mxu1  ;;  %v1182_v8 = vpop.f32.mrb[3].mxu0 }
 0x10b   : > { %v1183_v9 = vadd.f32 %v1182_v8, %v1181_v5  ;;  %v1204_v10 = vpop.f32.mrb[3].mxu1 }
 0x10c   : > { %v857_v11 = vadd.f32 %v1202_v6, %v1180_v3  ;;  %v1205_v12 = vadd.f32 %v1204_v10, %v1203_v7 }
 0x10e   : > { %v860_v13 = vadd.f32 %v1205_v12, %v1183_v9 }
 0x127   : > { %v1222_v14 = vpop.f32.mrb[4].mxu0 }
 0x128   : > { %v1223_v15 = vpop.f32.mrb[5].mxu0  ;;  %v938_v16 = vpop.f32.mrb[4].mxu1 }
 0x129   : > { %v1224_v17 = vadd.f32 %v1223_v15, %v1222_v14  ;;  %v1225_v18 = vpop.f32.mrb[6].mxu0  ;;  %v1255_v19 = vpop.f32.mrb[5].mxu1 }
 0x12a   : > { %v1226_v20 = vpop.f32.mrb[7].mxu0  ;;  %v941_v21 = vpop.f32.mrb[6].mxu1 }
 0x12b   : > { %v898_v22 = vadd.f32 %v1224_v17, %v857_v11  ;;  %v1227_v23 = vadd.f32 %v1226_v20, %v1225_v18  ;;  %v1256_v24 = vpop.f32.mrb[7].mxu1 }
 0x12d   : > { %v939_v26 = vadd.f32 %v938_v16, %v898_v22  ;;  %v901_v27 = vadd.f32 %v1227_v23, %v860_v13 }
 0x12f   : > { %v952_v29 = vmul.f32 %v1157_v25, %v939_v26  ;;  %v942_v30 = vadd.f32 %v941_v21, %v901_v27 }
 0x131   : > { %v961_v31 = vadd.f32 %v1158_v28, %v952_v29  ;;  %v953_v32 = vmul.f32 %v1157_v25, %v942_v30 }
 0x133   : > { %963 = vst [vmem:[%s286_s10] sm:$0xff] %v961_v31  ;;  %v962_v33 = vadd.f32 %v1158_v28, %v953_v32 }
 0x135   : > { %964 = vst [vmem:[%s286_s10 + $0x8] sm:$0xff] %v962_v33 }
 0x136 PF: > { %s14_s17 = sadd.s32 1, %s1373_s17   ;;  %s1523_s15 = smov %s1369_s16 }
 0x137   : > { %p11_p5 = scmp.ge.s32.totalorder %s14_s17, 4   ;;  %s1524_s16 = smov %s1526_s18 }
 0x139   :  { %13 = sbr.rel (!%p11_p5) target bundleno = 2 (0x2), region = 75 }

</bundles_post_ra>
